<compile_context>
chip_gen: v7x
topology: tpu7x:2x2x1
jax: 0.10.0
libtpu: 0.0.40
codegen_flags: <defaults>
</compile_context>

<pallas_src>
import functools

import jax
import jax.numpy as jnp
from jax import lax
from jax.experimental import pallas as pl
from jax.experimental.pallas import tpu as pltpu


LATENT = 32
# Representative layer_config for SimpleAutoencoder: encoder Conv2d+ReLU stack down to a
# 1x1xLATENT code, decoder = mirrored ConvTranspose2d stack.
# TODO(synk): get_model() accepts arbitrary torch.nn layer configs; only
# Conv2d / ConvTranspose2d (+ fused ReLU) stacks are lowered here.
LAYER_CFGS = (
    dict(type="conv",  cin=4,      cout=8,      k=4, s=2, p=1, relu=True),
    dict(type="conv",  cin=8,      cout=16,     k=4, s=2, p=1, relu=True),
    dict(type="conv",  cin=16,     cout=LATENT, k=4, s=1, p=0, relu=False),
    dict(type="convT", cin=LATENT, cout=16,     k=4, s=1, p=0, relu=True),
    dict(type="convT", cin=16,     cout=8,      k=4, s=2, p=1, relu=True),
    dict(type="convT", cin=8,      cout=4,      k=4, s=2, p=1, relu=False),
)


def _build_plan(h, w):
    """Static per-layer geometry. ConvTranspose2d is lowered to zero-dilation by s +
    stride-1 conv with the spatially-flipped, channel-swapped kernel and padding k-1-p."""
    plan = []
    for cfg in LAYER_CFGS:
        k, s, p = cfg["k"], cfg["s"], cfg["p"]
        if cfg["type"] == "conv":
            dil, pad, cs = 1, p, s
        else:
            dil, pad, cs = s, k - 1 - p, 1
        hd, wd = (h - 1) * dil + 1, (w - 1) * dil + 1
        hp, wp = hd + 2 * pad, wd + 2 * pad
        ho, wo = (hp - k) // cs + 1, (wp - k) // cs + 1
        plan.append(dict(cin=cfg["cin"], cout=cfg["cout"], k=k, cs=cs, dil=dil, pad=pad,
                         relu=cfg["relu"], hin=h, win=w, hp=hp, wp=wp, ho=ho, wo=wo))
        h, w = ho, wo
    return tuple(plan)


# ----------------------------------------------------------------------------
# In-kernel building blocks (all operate on VMEM refs / values only)
# ----------------------------------------------------------------------------
def _zero_interleave(dil, wd, win):
    """(wd, win) 0/1 matrix D with D[dil*j, j] = 1: zero-dilation along W as a matmul."""
    i = lax.broadcasted_iota(jnp.int32, (wd, win), 0)
    j = lax.broadcasted_iota(jnp.int32, (wd, win), 1)
    return (i == dil * j).astype(jnp.float32)


def _col_select(stride, kj, wo, wp):
    """(wo, wp) 0/1 matrix S with S[o, stride*o + kj] = 1: strided column gather as matmul."""
    o = lax.broadcasted_iota(jnp.int32, (wo, wp), 0)
    w = lax.broadcasted_iota(jnp.int32, (wo, wp), 1)
    return (w == stride * o + kj).astype(jnp.float32)


def _pad_or_dilate_into(dst_ref, src_ref, *, dil, pad, hin, win):
    """Write a zero-padded (and, for dil>1, zero-dilated) copy of src into dst scratch."""
    dst_ref[...] = jnp.zeros(dst_ref.shape, dst_ref.dtype)
    if dil == 1:
        dst_ref[pad:pad + hin, pad:pad + win, :] = src_ref[...].astype(dst_ref.dtype)
    else:
        wd = (win - 1) * dil + 1
        d_mat = _zero_interleave(dil, wd, win)
        for hi in range(hin):
            row = src_ref[hi].astype(jnp.float32)                  # (win, cin)
            dst_ref[pad + dil * hi, pad:pad + wd, :] = jnp.dot(
                d_mat, row, preferred_element_type=jnp.float32).astype(dst_ref.dtype)


def _conv_into(src_ref, dst_ref, w_ref, b_ref, *, k, stride, ho, wo, wp, cout, relu):
    """k x k, stride-`stride` conv of the padded NHWC VMEM buffer into dst, fused bias+ReLU.
    In-kernel im2col: one (wo, cin) x (cin, cout) GEMM per kernel tap, f32 accumulation."""
    bias = jnp.broadcast_to(b_ref[...].astype(jnp.float32), (wo, cout))   # hoisted
    if stride > 1:
        sel = [_col_select(stride, kj, wo, wp) for kj in range(k)]        # hoisted

    def row_body(r, carry):
        acc = bias
        for ki in range(k):
            hi = stride * r + ki
            if stride == 1:
                for kj in range(k):
                    xs = src_ref[hi, kj:kj + wo, :].astype(jnp.float32)   # (wo, cin)
                    acc = acc + jnp.dot(xs, w_ref[ki * k + kj].astype(jnp.float32),
                                        preferred_element_type=jnp.float32)
            else:
                row = src_ref[hi].astype(jnp.float32)                     # (wp, cin)
                for kj in range(k):
                    xs = jnp.dot(sel[kj], row, preferred_element_type=jnp.float32)
                    acc = acc + jnp.dot(xs, w_ref[ki * k + kj].astype(jnp.float32),
                                        preferred_element_type=jnp.float32)
        if relu:
            acc = jnp.maximum(acc, 0.0)
        dst_ref[r] = acc.astype(dst_ref.dtype)
        return carry

    lax.fori_loop(0, ho, row_body, 0)


def _fused_autoencoder_kernel(plan, *refs):
    """One grid step == one sample. refs = [x, (w,b)*L, out, scratch...]."""
    nl = len(plan)
    x_ref = refs[0]
    wb_refs = refs[1:1 + 2 * nl]
    out_ref = refs[1 + 2 * nl]
    scratch = refs[2 + 2 * nl:]

    si = 0
    cur = x_ref                                        # (H, W, Cin) of this sample
    for l, cfg in enumerate(plan):
        w_ref, b_ref = wb_refs[2 * l], wb_refs[2 * l + 1]
        if cfg["dil"] > 1 or cfg["pad"] > 0:
            pbuf = scratch[si]; si += 1
            _pad_or_dilate_into(pbuf, cur, dil=cfg["dil"], pad=cfg["pad"],
                                hin=cfg["hin"], win=cfg["win"])
            src = pbuf
        else:
            src = cur
        if l == nl - 1:
            dst = out_ref
        else:
            dst = scratch[si]; si += 1
        _conv_into(src, dst, w_ref, b_ref, k=cfg["k"], stride=cfg["cs"],
                   ho=cfg["ho"], wo=cfg["wo"], wp=cfg["wp"], cout=cfg["cout"],
                   relu=cfg["relu"])
        cur = dst
        # After the encoder's last layer the spatial size is 1x1, so the PyTorch
        # flatten (view) + unsqueeze pair between encoder and decoder is an exact
        # identity on the data and needs no op here.


# ----------------------------------------------------------------------------
# Host-side wrapper
# ----------------------------------------------------------------------------
def _conv_weight_to_taps(lcfg, w):
    """PyTorch weight -> (k*k, cin, cout) per-tap GEMM matrices of the equivalent conv."""
    k = lcfg["k"]
    if lcfg["type"] == "conv":
        w_eq = w                                                   # (cout, cin, k, k)
    else:
        w_eq = jnp.flip(w, axis=(2, 3)).transpose(1, 0, 2, 3)       # (cout, cin, k, k)
    return (w_eq.transpose(2, 3, 1, 0)
                .reshape(k * k, w_eq.shape[1], w_eq.shape[0])
                .astype(jnp.float32))


@jax.jit
def forward(params, x_nchw):
    """SimpleAutoencoder.forward: NCHW in/out; single fused Pallas kernel inside."""
    n, c, h, w = x_nchw.shape
    plan = _build_plan(h, w)
    assert plan[len(LAYER_CFGS) // 2 - 1]["ho"] == 1, "encoder must reduce to 1x1 spatial"

    x_nhwc = jnp.transpose(x_nchw, (0, 2, 3, 1)).astype(jnp.float32)

    inputs = [x_nhwc]
    in_specs = [pl.BlockSpec((None, h, w, c), lambda i: (i, 0, 0, 0))]
    for cfg, lcfg, (wt, bias) in zip(plan, LAYER_CFGS, params):
        k, cin, cout = cfg["k"], cfg["cin"], cfg["cout"]
        inputs.append(_conv_weight_to_taps(lcfg, wt))
        in_specs.append(pl.BlockSpec((k * k, cin, cout), lambda i: (0, 0, 0)))
        inputs.append(bias.reshape(1, cout).astype(jnp.float32))
        in_specs.append(pl.BlockSpec((1, cout), lambda i: (0, 0)))

    last = plan[-1]
    out_spec = pl.BlockSpec((None, last["ho"], last["wo"], last["cout"]),
                            lambda i: (i, 0, 0, 0))

    scratch = []
    for l, cfg in enumerate(plan):
        if cfg["dil"] > 1 or cfg["pad"] > 0:
            scratch.append(pltpu.VMEM((cfg["hp"], cfg["wp"], cfg["cin"]), jnp.float32))
        if l < len(plan) - 1:
            scratch.append(pltpu.VMEM((cfg["ho"], cfg["wo"], cfg["cout"]), jnp.float32))

    y_nhwc = pl.pallas_call(
        functools.partial(_fused_autoencoder_kernel, plan),
        out_shape=jax.ShapeDtypeStruct((n, last["ho"], last["wo"], last["cout"]),
                                       jnp.float32),
        grid=(n,),
        in_specs=in_specs,
        out_specs=out_spec,
        scratch_shapes=scratch,
        compiler_params=pltpu.CompilerParams(dimension_semantics=("parallel",)),
    )(*inputs)
    return jnp.transpose(y_nhwc, (0, 3, 1, 2))       # NHWC -> NCHW at the model boundary


def init_params(key):
    """Deterministic PyTorch-layout parameters (Conv2d: OIHW, ConvTranspose2d: IOHW)."""
    params = []
    for cfg in LAYER_CFGS:
        key, kw_, kb_ = jax.random.split(key, 3)
        fan_in = cfg["cin"] * cfg["k"] * cfg["k"]
        bound = 1.0 / (fan_in ** 0.5)
        if cfg["type"] == "conv":
            shape = (cfg["cout"], cfg["cin"], cfg["k"], cfg["k"])
        else:
            shape = (cfg["cin"], cfg["cout"], cfg["k"], cfg["k"])
        w = jax.random.uniform(kw_, shape, jnp.float32, -bound, bound)
        b = jax.random.uniform(kb_, (cfg["cout"],), jnp.float32, -bound, bound)
        params.append((w, b))
    return params


def reference_forward(params, x_nchw):
    """Pure-JAX (XLA conv) reference for numerical verification."""
    h = x_nchw
    for cfg, (wt, b) in zip(LAYER_CFGS, params):
        if cfg["type"] == "conv":
            h = lax.conv_general_dilated(
                h, wt, window_strides=(cfg["s"],) * 2,
                padding=[(cfg["p"], cfg["p"])] * 2,
                dimension_numbers=("NCHW", "OIHW", "NCHW"),
                precision=lax.Precision.HIGHEST)
        else:
            w_eq = jnp.flip(wt, axis=(2, 3)).transpose(1, 0, 2, 3)
            pe = cfg["k"] - 1 - cfg["p"]
            h = lax.conv_general_dilated(
                h, w_eq, window_strides=(1, 1),
                padding=[(pe, pe)] * 2,
                lhs_dilation=(cfg["s"],) * 2,
                dimension_numbers=("NCHW", "OIHW", "NCHW"),
                precision=lax.Precision.HIGHEST)
        h = h + b.reshape(1, -1, 1, 1)
        if cfg["relu"]:
            h = jnp.maximum(h, 0.0)
    return h


if __name__ == "__main__":
    key = jax.random.PRNGKey(0)
    kp, kx = jax.random.split(key)
    params = init_params(kp)
    x = jax.random.normal(kx, (2, 4, 16, 16), dtype=jnp.float32)   # NCHW, like PyTorch

    y = jax.block_until_ready(forward(params, x))
    assert y.shape == (2, 4, 16, 16), y.shape
    assert bool(jnp.all(jnp.isfinite(y)))

    y_ref = reference_forward(params, x)
    err = float(jnp.max(jnp.abs(y - y_ref)))
    assert err < 5e-2, f"mismatch vs XLA reference: max abs err = {err}"
    print("KERNEL_OK")
</pallas_src>

<mosaic_0001>
module attributes {stable_mosaic.version = 11 : i64} {
  func.func @_fused_autoencoder_kernel(%arg0: i32, %arg1: memref<1x16x16x4xf32, #tpu.memory_space<vmem>>, %arg2: memref<16x4x8xf32, #tpu.memory_space<vmem>>, %arg3: memref<1x8xf32, #tpu.memory_space<vmem>>, %arg4: memref<16x8x16xf32, #tpu.memory_space<vmem>>, %arg5: memref<1x16xf32, #tpu.memory_space<vmem>>, %arg6: memref<16x16x32xf32, #tpu.memory_space<vmem>>, %arg7: memref<1x32xf32, #tpu.memory_space<vmem>>, %arg8: memref<16x32x16xf32, #tpu.memory_space<vmem>>, %arg9: memref<1x16xf32, #tpu.memory_space<vmem>>, %arg10: memref<16x16x8xf32, #tpu.memory_space<vmem>>, %arg11: memref<1x8xf32, #tpu.memory_space<vmem>>, %arg12: memref<16x8x4xf32, #tpu.memory_space<vmem>>, %arg13: memref<1x4xf32, #tpu.memory_space<vmem>>, %arg14: memref<1x16x16x4xf32, #tpu.memory_space<vmem>>, %arg15: memref<18x18x4xf32, #tpu.memory_space<vmem>>, %arg16: memref<8x8x8xf32, #tpu.memory_space<vmem>>, %arg17: memref<10x10x8xf32, #tpu.memory_space<vmem>>, %arg18: memref<4x4x16xf32, #tpu.memory_space<vmem>>, %arg19: memref<1x1x32xf32, #tpu.memory_space<vmem>>, %arg20: memref<7x7x32xf32, #tpu.memory_space<vmem>>, %arg21: memref<4x4x16xf32, #tpu.memory_space<vmem>>, %arg22: memref<11x11x16xf32, #tpu.memory_space<vmem>>, %arg23: memref<8x8x8xf32, #tpu.memory_space<vmem>>, %arg24: memref<19x19x8xf32, #tpu.memory_space<vmem>>) attributes {dimension_semantics = [#tpu.dimension_semantics<parallel>], iteration_bounds = array<i64: 2>, scalar_prefetch = 0 : i64, scratch_operands = 10 : i64, tpu.core_type = #tpu.core_type<tc>, window_params = [{transform_indices = @transform_0, window_bounds = array<i64: 1, 16, 16, 4>}, {pipeline_mode = #tpu.pipeline_mode<synchronous>, transform_indices = @transform_1, window_bounds = array<i64: 16, 4, 8>}, {pipeline_mode = #tpu.pipeline_mode<synchronous>, transform_indices = @transform_2, window_bounds = array<i64: 1, 8>}, {pipeline_mode = #tpu.pipeline_mode<synchronous>, transform_indices = @transform_3, window_bounds = array<i64: 16, 8, 16>}, {pipeline_mode = #tpu.pipeline_mode<synchronous>, transform_indices = @transform_4, window_bounds = array<i64: 1, 16>}, {pipeline_mode = #tpu.pipeline_mode<synchronous>, transform_indices = @transform_5, window_bounds = array<i64: 16, 16, 32>}, {pipeline_mode = #tpu.pipeline_mode<synchronous>, transform_indices = @transform_6, window_bounds = array<i64: 1, 32>}, {pipeline_mode = #tpu.pipeline_mode<synchronous>, transform_indices = @transform_7, window_bounds = array<i64: 16, 32, 16>}, {pipeline_mode = #tpu.pipeline_mode<synchronous>, transform_indices = @transform_8, window_bounds = array<i64: 1, 16>}, {pipeline_mode = #tpu.pipeline_mode<synchronous>, transform_indices = @transform_9, window_bounds = array<i64: 16, 16, 8>}, {pipeline_mode = #tpu.pipeline_mode<synchronous>, transform_indices = @transform_10, window_bounds = array<i64: 1, 8>}, {pipeline_mode = #tpu.pipeline_mode<synchronous>, transform_indices = @transform_11, window_bounds = array<i64: 16, 8, 4>}, {pipeline_mode = #tpu.pipeline_mode<synchronous>, transform_indices = @transform_12, window_bounds = array<i64: 1, 4>}, {transform_indices = @transform_13, window_bounds = array<i64: 1, 16, 16, 4>}]} {
    %cst = arith.constant 0.000000e+00 : f32
    %0 = vector.broadcast %cst : f32 to vector<18x18x4xf32>
    %c0 = arith.constant 0 : index
    %c0_0 = arith.constant 0 : index
    %c0_1 = arith.constant 0 : index
    %1 = vector.load %arg15[%c0, %c0_0, %c0_1] : memref<18x18x4xf32, #tpu.memory_space<vmem>>, vector<18x18x4xf32>
    tpu.vector_store %arg15[%c0, %c0_0, %c0_1], %0 {strides = array<i32>} : memref<18x18x4xf32, #tpu.memory_space<vmem>>, vector<18x18x4xf32>,
    %c0_2 = arith.constant 0 : index
    %c0_3 = arith.constant 0 : index
    %c0_4 = arith.constant 0 : index
    %c0_5 = arith.constant 0 : index
    %2 = vector.load %arg1[%c0_2, %c0_3, %c0_4, %c0_5] : memref<1x16x16x4xf32, #tpu.memory_space<vmem>>, vector<1x16x16x4xf32>
    %3 = vector.shape_cast %2 : vector<1x16x16x4xf32> to vector<16x16x4xf32>
    %c1 = arith.constant 1 : index
    %c1_6 = arith.constant 1 : index
    %c0_7 = arith.constant 0 : index
    %4 = vector.load %arg15[%c1, %c1_6, %c0_7] : memref<18x18x4xf32, #tpu.memory_space<vmem>>, vector<16x16x4xf32>
    tpu.vector_store %arg15[%c1, %c1_6, %c0_7], %3 {strides = array<i32>} : memref<18x18x4xf32, #tpu.memory_space<vmem>>, vector<16x16x4xf32>,
    %c0_8 = arith.constant 0 : index
    %c0_9 = arith.constant 0 : index
    %5 = vector.load %arg3[%c0_8, %c0_9] : memref<1x8xf32, #tpu.memory_space<vmem>>, vector<1x8xf32>
    %6 = vector.shape_cast %5 : vector<1x8xf32> to vector<1x8xf32>
    %7 = vector.broadcast %6 : vector<1x8xf32> to vector<8x8xf32>
    %8 = tpu.iota {dimensions = array<i32: 0>} : vector<8x18xi32>
    %9 = tpu.iota {dimensions = array<i32: 1>} : vector<8x18xi32>
    %c2_i32 = arith.constant 2 : i32
    %10 = vector.broadcast %c2_i32 : i32 to vector<8x18xi32>
    %11 = arith.muli %10, %8 : vector<8x18xi32>
    %c0_i32 = arith.constant 0 : i32
    %12 = vector.broadcast %c0_i32 : i32 to vector<8x18xi32>
    %13 = arith.addi %11, %12 : vector<8x18xi32>
    %14 = arith.cmpi eq, %9, %13 : vector<8x18xi32>
    %15 = arith.extui %14 : vector<8x18xi1> to vector<8x18xi32>
    %16 = arith.sitofp %15 : vector<8x18xi32> to vector<8x18xf32>
    %17 = tpu.iota {dimensions = array<i32: 0>} : vector<8x18xi32>
    %18 = tpu.iota {dimensions = array<i32: 1>} : vector<8x18xi32>
    %c2_i32_10 = arith.constant 2 : i32
    %19 = vector.broadcast %c2_i32_10 : i32 to vector<8x18xi32>
    %20 = arith.muli %19, %17 : vector<8x18xi32>
    %c1_i32 = arith.constant 1 : i32
    %21 = vector.broadcast %c1_i32 : i32 to vector<8x18xi32>
    %22 = arith.addi %20, %21 : vector<8x18xi32>
    %23 = arith.cmpi eq, %18, %22 : vector<8x18xi32>
    %24 = arith.extui %23 : vector<8x18xi1> to vector<8x18xi32>
    %25 = arith.sitofp %24 : vector<8x18xi32> to vector<8x18xf32>
    %26 = tpu.iota {dimensions = array<i32: 0>} : vector<8x18xi32>
    %27 = tpu.iota {dimensions = array<i32: 1>} : vector<8x18xi32>
    %c2_i32_11 = arith.constant 2 : i32
    %28 = vector.broadcast %c2_i32_11 : i32 to vector<8x18xi32>
    %29 = arith.muli %28, %26 : vector<8x18xi32>
    %c2_i32_12 = arith.constant 2 : i32
    %30 = vector.broadcast %c2_i32_12 : i32 to vector<8x18xi32>
    %31 = arith.addi %29, %30 : vector<8x18xi32>
    %32 = arith.cmpi eq, %27, %31 : vector<8x18xi32>
    %33 = arith.extui %32 : vector<8x18xi1> to vector<8x18xi32>
    %34 = arith.sitofp %33 : vector<8x18xi32> to vector<8x18xf32>
    %35 = tpu.iota {dimensions = array<i32: 0>} : vector<8x18xi32>
    %36 = tpu.iota {dimensions = array<i32: 1>} : vector<8x18xi32>
    %c2_i32_13 = arith.constant 2 : i32
    %37 = vector.broadcast %c2_i32_13 : i32 to vector<8x18xi32>
    %38 = arith.muli %37, %35 : vector<8x18xi32>
    %c3_i32 = arith.constant 3 : i32
    %39 = vector.broadcast %c3_i32 : i32 to vector<8x18xi32>
    %40 = arith.addi %38, %39 : vector<8x18xi32>
    %41 = arith.cmpi eq, %36, %40 : vector<8x18xi32>
    %42 = arith.extui %41 : vector<8x18xi1> to vector<8x18xi32>
    %43 = arith.sitofp %42 : vector<8x18xi32> to vector<8x18xf32>
    %c0_i32_14 = arith.constant 0 : i32
    %c8_i32 = arith.constant 8 : i32
    %44 = arith.addi %c0_i32_14, %c8_i32 : i32
    %c1_i32_15 = arith.constant 1 : i32
    scf.for %arg25 = %c0_i32_14 to %44 step %c1_i32_15  : i32 {
      %c2_i32_256 = arith.constant 2 : i32
      %320 = arith.muli %c2_i32_256, %arg25 : i32
      %c0_i32_257 = arith.constant 0 : i32
      %321 = arith.addi %320, %c0_i32_257 : i32
      %322 = arith.index_cast %321 : i32 to index
      %c0_258 = arith.constant 0 : index
      %c0_259 = arith.constant 0 : index
      %323 = vector.load %arg15[%322, %c0_258, %c0_259] : memref<18x18x4xf32, #tpu.memory_space<vmem>>, vector<1x18x4xf32>
      %324 = vector.shape_cast %323 : vector<1x18x4xf32> to vector<18x4xf32>
      %cst_260 = arith.constant dense<0.000000e+00> : vector<8x4xf32>
      %325 = tpu.matmul %16, %324, %cst_260 {dimension_numbers = #tpu.dot_dimension_numbers<[1], [0], [0], [1], [0, 0, 1, 1], [], []>} : vector<8x18xf32>, vector<18x4xf32>, vector<8x4xf32> -> vector<8x4xf32>
      %c0_261 = arith.constant 0 : index
      %c0_262 = arith.constant 0 : index
      %c0_263 = arith.constant 0 : index
      %326 = vector.load %arg2[%c0_261, %c0_262, %c0_263] : memref<16x4x8xf32, #tpu.memory_space<vmem>>, vector<1x4x8xf32>
      %327 = vector.shape_cast %326 : vector<1x4x8xf32> to vector<4x8xf32>
      %cst_264 = arith.constant dense<0.000000e+00> : vector<8x8xf32>
      %328 = tpu.matmul %325, %327, %cst_264 {dimension_numbers = #tpu.dot_dimension_numbers<[1], [0], [0], [1], [0, 0, 1, 1], [], []>} : vector<8x4xf32>, vector<4x8xf32>, vector<8x8xf32> -> vector<8x8xf32>
      %329 = arith.addf %7, %328 : vector<8x8xf32>
      %cst_265 = arith.constant dense<0.000000e+00> : vector<8x4xf32>
      %330 = tpu.matmul %25, %324, %cst_265 {dimension_numbers = #tpu.dot_dimension_numbers<[1], [0], [0], [1], [0, 0, 1, 1], [], []>} : vector<8x18xf32>, vector<18x4xf32>, vector<8x4xf32> -> vector<8x4xf32>
      %c1_266 = arith.constant 1 : index
      %c0_267 = arith.constant 0 : index
      %c0_268 = arith.constant 0 : index
      %331 = vector.load %arg2[%c1_266, %c0_267, %c0_268] : memref<16x4x8xf32, #tpu.memory_space<vmem>>, vector<1x4x8xf32>
      %332 = vector.shape_cast %331 : vector<1x4x8xf32> to vector<4x8xf32>
      %cst_269 = arith.constant dense<0.000000e+00> : vector<8x8xf32>
      %333 = tpu.matmul %330, %332, %cst_269 {dimension_numbers = #tpu.dot_dimension_numbers<[1], [0], [0], [1], [0, 0, 1, 1], [], []>} : vector<8x4xf32>, vector<4x8xf32>, vector<8x8xf32> -> vector<8x8xf32>
      %334 = arith.addf %329, %333 : vector<8x8xf32>
      %cst_270 = arith.constant dense<0.000000e+00> : vector<8x4xf32>
      %335 = tpu.matmul %34, %324, %cst_270 {dimension_numbers = #tpu.dot_dimension_numbers<[1], [0], [0], [1], [0, 0, 1, 1], [], []>} : vector<8x18xf32>, vector<18x4xf32>, vector<8x4xf32> -> vector<8x4xf32>
      %c2_271 = arith.constant 2 : index
      %c0_272 = arith.constant 0 : index
      %c0_273 = arith.constant 0 : index
      %336 = vector.load %arg2[%c2_271, %c0_272, %c0_273] : memref<16x4x8xf32, #tpu.memory_space<vmem>>, vector<1x4x8xf32>
      %337 = vector.shape_cast %336 : vector<1x4x8xf32> to vector<4x8xf32>
      %cst_274 = arith.constant dense<0.000000e+00> : vector<8x8xf32>
      %338 = tpu.matmul %335, %337, %cst_274 {dimension_numbers = #tpu.dot_dimension_numbers<[1], [0], [0], [1], [0, 0, 1, 1], [], []>} : vector<8x4xf32>, vector<4x8xf32>, vector<8x8xf32> -> vector<8x8xf32>
      %339 = arith.addf %334, %338 : vector<8x8xf32>
      %cst_275 = arith.constant dense<0.000000e+00> : vector<8x4xf32>
      %340 = tpu.matmul %43, %324, %cst_275 {dimension_numbers = #tpu.dot_dimension_numbers<[1], [0], [0], [1], [0, 0, 1, 1], [], []>} : vector<8x18xf32>, vector<18x4xf32>, vector<8x4xf32> -> vector<8x4xf32>
      %c3_276 = arith.constant 3 : index
      %c0_277 = arith.constant 0 : index
      %c0_278 = arith.constant 0 : index
      %341 = vector.load %arg2[%c3_276, %c0_277, %c0_278] : memref<16x4x8xf32, #tpu.memory_space<vmem>>, vector<1x4x8xf32>
      %342 = vector.shape_cast %341 : vector<1x4x8xf32> to vector<4x8xf32>
      %cst_279 = arith.constant dense<0.000000e+00> : vector<8x8xf32>
      %343 = tpu.matmul %340, %342, %cst_279 {dimension_numbers = #tpu.dot_dimension_numbers<[1], [0], [0], [1], [0, 0, 1, 1], [], []>} : vector<8x4xf32>, vector<4x8xf32>, vector<8x8xf32> -> vector<8x8xf32>
      %344 = arith.addf %339, %343 : vector<8x8xf32>
      %c2_i32_280 = arith.constant 2 : i32
      %345 = arith.muli %c2_i32_280, %arg25 : i32
      %c1_i32_281 = arith.constant 1 : i32
      %346 = arith.addi %345, %c1_i32_281 : i32
      %347 = arith.index_cast %346 : i32 to index
      %c0_282 = arith.constant 0 : index
      %c0_283 = arith.constant 0 : index
      %348 = vector.load %arg15[%347, %c0_282, %c0_283] : memref<18x18x4xf32, #tpu.memory_space<vmem>>, vector<1x18x4xf32>
      %349 = vector.shape_cast %348 : vector<1x18x4xf32> to vector<18x4xf32>
      %cst_284 = arith.constant dense<0.000000e+00> : vector<8x4xf32>
      %350 = tpu.matmul %16, %349, %cst_284 {dimension_numbers = #tpu.dot_dimension_numbers<[1], [0], [0], [1], [0, 0, 1, 1], [], []>} : vector<8x18xf32>, vector<18x4xf32>, vector<8x4xf32> -> vector<8x4xf32>
      %c4_285 = arith.constant 4 : index
      %c0_286 = arith.constant 0 : index
      %c0_287 = arith.constant 0 : index
      %351 = vector.load %arg2[%c4_285, %c0_286, %c0_287] : memref<16x4x8xf32, #tpu.memory_space<vmem>>, vector<1x4x8xf32>
      %352 = vector.shape_cast %351 : vector<1x4x8xf32> to vector<4x8xf32>
      %cst_288 = arith.constant dense<0.000000e+00> : vector<8x8xf32>
      %353 = tpu.matmul %350, %352, %cst_288 {dimension_numbers = #tpu.dot_dimension_numbers<[1], [0], [0], [1], [0, 0, 1, 1], [], []>} : vector<8x4xf32>, vector<4x8xf32>, vector<8x8xf32> -> vector<8x8xf32>
      %354 = arith.addf %344, %353 : vector<8x8xf32>
      %cst_289 = arith.constant dense<0.000000e+00> : vector<8x4xf32>
      %355 = tpu.matmul %25, %349, %cst_289 {dimension_numbers = #tpu.dot_dimension_numbers<[1], [0], [0], [1], [0, 0, 1, 1], [], []>} : vector<8x18xf32>, vector<18x4xf32>, vector<8x4xf32> -> vector<8x4xf32>
      %c5_290 = arith.constant 5 : index
      %c0_291 = arith.constant 0 : index
      %c0_292 = arith.constant 0 : index
      %356 = vector.load %arg2[%c5_290, %c0_291, %c0_292] : memref<16x4x8xf32, #tpu.memory_space<vmem>>, vector<1x4x8xf32>
      %357 = vector.shape_cast %356 : vector<1x4x8xf32> to vector<4x8xf32>
      %cst_293 = arith.constant dense<0.000000e+00> : vector<8x8xf32>
      %358 = tpu.matmul %355, %357, %cst_293 {dimension_numbers = #tpu.dot_dimension_numbers<[1], [0], [0], [1], [0, 0, 1, 1], [], []>} : vector<8x4xf32>, vector<4x8xf32>, vector<8x8xf32> -> vector<8x8xf32>
      %359 = arith.addf %354, %358 : vector<8x8xf32>
      %cst_294 = arith.constant dense<0.000000e+00> : vector<8x4xf32>
      %360 = tpu.matmul %34, %349, %cst_294 {dimension_numbers = #tpu.dot_dimension_numbers<[1], [0], [0], [1], [0, 0, 1, 1], [], []>} : vector<8x18xf32>, vector<18x4xf32>, vector<8x4xf32> -> vector<8x4xf32>
      %c6_295 = arith.constant 6 : index
      %c0_296 = arith.constant 0 : index
      %c0_297 = arith.constant 0 : index
      %361 = vector.load %arg2[%c6_295, %c0_296, %c0_297] : memref<16x4x8xf32, #tpu.memory_space<vmem>>, vector<1x4x8xf32>
      %362 = vector.shape_cast %361 : vector<1x4x8xf32> to vector<4x8xf32>
      %cst_298 = arith.constant dense<0.000000e+00> : vector<8x8xf32>
      %363 = tpu.matmul %360, %362, %cst_298 {dimension_numbers = #tpu.dot_dimension_numbers<[1], [0], [0], [1], [0, 0, 1, 1], [], []>} : vector<8x4xf32>, vector<4x8xf32>, vector<8x8xf32> -> vector<8x8xf32>
      %364 = arith.addf %359, %363 : vector<8x8xf32>
      %cst_299 = arith.constant dense<0.000000e+00> : vector<8x4xf32>
      %365 = tpu.matmul %43, %349, %cst_299 {dimension_numbers = #tpu.dot_dimension_numbers<[1], [0], [0], [1], [0, 0, 1, 1], [], []>} : vector<8x18xf32>, vector<18x4xf32>, vector<8x4xf32> -> vector<8x4xf32>
      %c7_300 = arith.constant 7 : index
      %c0_301 = arith.constant 0 : index
      %c0_302 = arith.constant 0 : index
      %366 = vector.load %arg2[%c7_300, %c0_301, %c0_302] : memref<16x4x8xf32, #tpu.memory_space<vmem>>, vector<1x4x8xf32>
      %367 = vector.shape_cast %366 : vector<1x4x8xf32> to vector<4x8xf32>
      %cst_303 = arith.constant dense<0.000000e+00> : vector<8x8xf32>
      %368 = tpu.matmul %365, %367, %cst_303 {dimension_numbers = #tpu.dot_dimension_numbers<[1], [0], [0], [1], [0, 0, 1, 1], [], []>} : vector<8x4xf32>, vector<4x8xf32>, vector<8x8xf32> -> vector<8x8xf32>
      %369 = arith.addf %364, %368 : vector<8x8xf32>
      %c2_i32_304 = arith.constant 2 : i32
      %370 = arith.muli %c2_i32_304, %arg25 : i32
      %c2_i32_305 = arith.constant 2 : i32
      %371 = arith.addi %370, %c2_i32_305 : i32
      %372 = arith.index_cast %371 : i32 to index
      %c0_306 = arith.constant 0 : index
      %c0_307 = arith.constant 0 : index
      %373 = vector.load %arg15[%372, %c0_306, %c0_307] : memref<18x18x4xf32, #tpu.memory_space<vmem>>, vector<1x18x4xf32>
      %374 = vector.shape_cast %373 : vector<1x18x4xf32> to vector<18x4xf32>
      %cst_308 = arith.constant dense<0.000000e+00> : vector<8x4xf32>
      %375 = tpu.matmul %16, %374, %cst_308 {dimension_numbers = #tpu.dot_dimension_numbers<[1], [0], [0], [1], [0, 0, 1, 1], [], []>} : vector<8x18xf32>, vector<18x4xf32>, vector<8x4xf32> -> vector<8x4xf32>
      %c8_309 = arith.constant 8 : index
      %c0_310 = arith.constant 0 : index
      %c0_311 = arith.constant 0 : index
      %376 = vector.load %arg2[%c8_309, %c0_310, %c0_311] : memref<16x4x8xf32, #tpu.memory_space<vmem>>, vector<1x4x8xf32>
      %377 = vector.shape_cast %376 : vector<1x4x8xf32> to vector<4x8xf32>
      %cst_312 = arith.constant dense<0.000000e+00> : vector<8x8xf32>
      %378 = tpu.matmul %375, %377, %cst_312 {dimension_numbers = #tpu.dot_dimension_numbers<[1], [0], [0], [1], [0, 0, 1, 1], [], []>} : vector<8x4xf32>, vector<4x8xf32>, vector<8x8xf32> -> vector<8x8xf32>
      %379 = arith.addf %369, %378 : vector<8x8xf32>
      %cst_313 = arith.constant dense<0.000000e+00> : vector<8x4xf32>
      %380 = tpu.matmul %25, %374, %cst_313 {dimension_numbers = #tpu.dot_dimension_numbers<[1], [0], [0], [1], [0, 0, 1, 1], [], []>} : vector<8x18xf32>, vector<18x4xf32>, vector<8x4xf32> -> vector<8x4xf32>
      %c9_314 = arith.constant 9 : index
      %c0_315 = arith.constant 0 : index
      %c0_316 = arith.constant 0 : index
      %381 = vector.load %arg2[%c9_314, %c0_315, %c0_316] : memref<16x4x8xf32, #tpu.memory_space<vmem>>, vector<1x4x8xf32>
      %382 = vector.shape_cast %381 : vector<1x4x8xf32> to vector<4x8xf32>
      %cst_317 = arith.constant dense<0.000000e+00> : vector<8x8xf32>
      %383 = tpu.matmul %380, %382, %cst_317 {dimension_numbers = #tpu.dot_dimension_numbers<[1], [0], [0], [1], [0, 0, 1, 1], [], []>} : vector<8x4xf32>, vector<4x8xf32>, vector<8x8xf32> -> vector<8x8xf32>
      %384 = arith.addf %379, %383 : vector<8x8xf32>
      %cst_318 = arith.constant dense<0.000000e+00> : vector<8x4xf32>
      %385 = tpu.matmul %34, %374, %cst_318 {dimension_numbers = #tpu.dot_dimension_numbers<[1], [0], [0], [1], [0, 0, 1, 1], [], []>} : vector<8x18xf32>, vector<18x4xf32>, vector<8x4xf32> -> vector<8x4xf32>
      %c10_319 = arith.constant 10 : index
      %c0_320 = arith.constant 0 : index
      %c0_321 = arith.constant 0 : index
      %386 = vector.load %arg2[%c10_319, %c0_320, %c0_321] : memref<16x4x8xf32, #tpu.memory_space<vmem>>, vector<1x4x8xf32>
      %387 = vector.shape_cast %386 : vector<1x4x8xf32> to vector<4x8xf32>
      %cst_322 = arith.constant dense<0.000000e+00> : vector<8x8xf32>
      %388 = tpu.matmul %385, %387, %cst_322 {dimension_numbers = #tpu.dot_dimension_numbers<[1], [0], [0], [1], [0, 0, 1, 1], [], []>} : vector<8x4xf32>, vector<4x8xf32>, vector<8x8xf32> -> vector<8x8xf32>
      %389 = arith.addf %384, %388 : vector<8x8xf32>
      %cst_323 = arith.constant dense<0.000000e+00> : vector<8x4xf32>
      %390 = tpu.matmul %43, %374, %cst_323 {dimension_numbers = #tpu.dot_dimension_numbers<[1], [0], [0], [1], [0, 0, 1, 1], [], []>} : vector<8x18xf32>, vector<18x4xf32>, vector<8x4xf32> -> vector<8x4xf32>
      %c11_324 = arith.constant 11 : index
      %c0_325 = arith.constant 0 : index
      %c0_326 = arith.constant 0 : index
      %391 = vector.load %arg2[%c11_324, %c0_325, %c0_326] : memref<16x4x8xf32, #tpu.memory_space<vmem>>, vector<1x4x8xf32>
      %392 = vector.shape_cast %391 : vector<1x4x8xf32> to vector<4x8xf32>
      %cst_327 = arith.constant dense<0.000000e+00> : vector<8x8xf32>
      %393 = tpu.matmul %390, %392, %cst_327 {dimension_numbers = #tpu.dot_dimension_numbers<[1], [0], [0], [1], [0, 0, 1, 1], [], []>} : vector<8x4xf32>, vector<4x8xf32>, vector<8x8xf32> -> vector<8x8xf32>
      %394 = arith.addf %389, %393 : vector<8x8xf32>
      %c2_i32_328 = arith.constant 2 : i32
      %395 = arith.muli %c2_i32_328, %arg25 : i32
      %c3_i32_329 = arith.constant 3 : i32
      %396 = arith.addi %395, %c3_i32_329 : i32
      %397 = arith.index_cast %396 : i32 to index
      %c0_330 = arith.constant 0 : index
      %c0_331 = arith.constant 0 : index
      %398 = vector.load %arg15[%397, %c0_330, %c0_331] : memref<18x18x4xf32, #tpu.memory_space<vmem>>, vector<1x18x4xf32>
      %399 = vector.shape_cast %398 : vector<1x18x4xf32> to vector<18x4xf32>
      %cst_332 = arith.constant dense<0.000000e+00> : vector<8x4xf32>
      %400 = tpu.matmul %16, %399, %cst_332 {dimension_numbers = #tpu.dot_dimension_numbers<[1], [0], [0], [1], [0, 0, 1, 1], [], []>} : vector<8x18xf32>, vector<18x4xf32>, vector<8x4xf32> -> vector<8x4xf32>
      %c12_333 = arith.constant 12 : index
      %c0_334 = arith.constant 0 : index
      %c0_335 = arith.constant 0 : index
      %401 = vector.load %arg2[%c12_333, %c0_334, %c0_335] : memref<16x4x8xf32, #tpu.memory_space<vmem>>, vector<1x4x8xf32>
      %402 = vector.shape_cast %401 : vector<1x4x8xf32> to vector<4x8xf32>
      %cst_336 = arith.constant dense<0.000000e+00> : vector<8x8xf32>
      %403 = tpu.matmul %400, %402, %cst_336 {dimension_numbers = #tpu.dot_dimension_numbers<[1], [0], [0], [1], [0, 0, 1, 1], [], []>} : vector<8x4xf32>, vector<4x8xf32>, vector<8x8xf32> -> vector<8x8xf32>
      %404 = arith.addf %394, %403 : vector<8x8xf32>
      %cst_337 = arith.constant dense<0.000000e+00> : vector<8x4xf32>
      %405 = tpu.matmul %25, %399, %cst_337 {dimension_numbers = #tpu.dot_dimension_numbers<[1], [0], [0], [1], [0, 0, 1, 1], [], []>} : vector<8x18xf32>, vector<18x4xf32>, vector<8x4xf32> -> vector<8x4xf32>
      %c13_338 = arith.constant 13 : index
      %c0_339 = arith.constant 0 : index
      %c0_340 = arith.constant 0 : index
      %406 = vector.load %arg2[%c13_338, %c0_339, %c0_340] : memref<16x4x8xf32, #tpu.memory_space<vmem>>, vector<1x4x8xf32>
      %407 = vector.shape_cast %406 : vector<1x4x8xf32> to vector<4x8xf32>
      %cst_341 = arith.constant dense<0.000000e+00> : vector<8x8xf32>
      %408 = tpu.matmul %405, %407, %cst_341 {dimension_numbers = #tpu.dot_dimension_numbers<[1], [0], [0], [1], [0, 0, 1, 1], [], []>} : vector<8x4xf32>, vector<4x8xf32>, vector<8x8xf32> -> vector<8x8xf32>
      %409 = arith.addf %404, %408 : vector<8x8xf32>
      %cst_342 = arith.constant dense<0.000000e+00> : vector<8x4xf32>
      %410 = tpu.matmul %34, %399, %cst_342 {dimension_numbers = #tpu.dot_dimension_numbers<[1], [0], [0], [1], [0, 0, 1, 1], [], []>} : vector<8x18xf32>, vector<18x4xf32>, vector<8x4xf32> -> vector<8x4xf32>
      %c14_343 = arith.constant 14 : index
      %c0_344 = arith.constant 0 : index
      %c0_345 = arith.constant 0 : index
      %411 = vector.load %arg2[%c14_343, %c0_344, %c0_345] : memref<16x4x8xf32, #tpu.memory_space<vmem>>, vector<1x4x8xf32>
      %412 = vector.shape_cast %411 : vector<1x4x8xf32> to vector<4x8xf32>
      %cst_346 = arith.constant dense<0.000000e+00> : vector<8x8xf32>
      %413 = tpu.matmul %410, %412, %cst_346 {dimension_numbers = #tpu.dot_dimension_numbers<[1], [0], [0], [1], [0, 0, 1, 1], [], []>} : vector<8x4xf32>, vector<4x8xf32>, vector<8x8xf32> -> vector<8x8xf32>
      %414 = arith.addf %409, %413 : vector<8x8xf32>
      %cst_347 = arith.constant dense<0.000000e+00> : vector<8x4xf32>
      %415 = tpu.matmul %43, %399, %cst_347 {dimension_numbers = #tpu.dot_dimension_numbers<[1], [0], [0], [1], [0, 0, 1, 1], [], []>} : vector<8x18xf32>, vector<18x4xf32>, vector<8x4xf32> -> vector<8x4xf32>
      %c15_348 = arith.constant 15 : index
      %c0_349 = arith.constant 0 : index
      %c0_350 = arith.constant 0 : index
      %416 = vector.load %arg2[%c15_348, %c0_349, %c0_350] : memref<16x4x8xf32, #tpu.memory_space<vmem>>, vector<1x4x8xf32>
      %417 = vector.shape_cast %416 : vector<1x4x8xf32> to vector<4x8xf32>
      %cst_351 = arith.constant dense<0.000000e+00> : vector<8x8xf32>
      %418 = tpu.matmul %415, %417, %cst_351 {dimension_numbers = #tpu.dot_dimension_numbers<[1], [0], [0], [1], [0, 0, 1, 1], [], []>} : vector<8x4xf32>, vector<4x8xf32>, vector<8x8xf32> -> vector<8x8xf32>
      %419 = arith.addf %414, %418 : vector<8x8xf32>
      %cst_352 = arith.constant 0.000000e+00 : f32
      %420 = vector.broadcast %cst_352 : f32 to vector<8x8xf32>
      %421 = arith.maximumf %419, %420 : vector<8x8xf32>
      %422 = arith.index_cast %arg25 : i32 to index
      %c0_353 = arith.constant 0 : index
      %c0_354 = arith.constant 0 : index
      %423 = vector.load %arg16[%422, %c0_353, %c0_354] : memref<8x8x8xf32, #tpu.memory_space<vmem>>, vector<1x8x8xf32>
      %424 = vector.shape_cast %423 : vector<1x8x8xf32> to vector<8x8xf32>
      %425 = vector.shape_cast %421 : vector<8x8xf32> to vector<1x8x8xf32>
      tpu.vector_store %arg16[%422, %c0_353, %c0_354], %425 {strides = array<i32>} : memref<8x8x8xf32, #tpu.memory_space<vmem>>, vector<1x8x8xf32>,
    }
    %c8_i32_16 = arith.constant 8 : i32
    %cst_17 = arith.constant 0.000000e+00 : f32
    %45 = vector.broadcast %cst_17 : f32 to vector<10x10x8xf32>
    %c0_18 = arith.constant 0 : index
    %c0_19 = arith.constant 0 : index
    %c0_20 = arith.constant 0 : index
    %46 = vector.load %arg17[%c0_18, %c0_19, %c0_20] : memref<10x10x8xf32, #tpu.memory_space<vmem>>, vector<10x10x8xf32>
    tpu.vector_store %arg17[%c0_18, %c0_19, %c0_20], %45 {strides = array<i32>} : memref<10x10x8xf32, #tpu.memory_space<vmem>>, vector<10x10x8xf32>,
    %c0_21 = arith.constant 0 : index
    %c0_22 = arith.constant 0 : index
    %c0_23 = arith.constant 0 : index
    %47 = vector.load %arg16[%c0_21, %c0_22, %c0_23] : memref<8x8x8xf32, #tpu.memory_space<vmem>>, vector<8x8x8xf32>
    %c1_24 = arith.constant 1 : index
    %c1_25 = arith.constant 1 : index
    %c0_26 = arith.constant 0 : index
    %48 = vector.load %arg17[%c1_24, %c1_25, %c0_26] : memref<10x10x8xf32, #tpu.memory_space<vmem>>, vector<8x8x8xf32>
    tpu.vector_store %arg17[%c1_24, %c1_25, %c0_26], %47 {strides = array<i32>} : memref<10x10x8xf32, #tpu.memory_space<vmem>>, vector<8x8x8xf32>,
    %c0_27 = arith.constant 0 : index
    %c0_28 = arith.constant 0 : index
    %49 = vector.load %arg5[%c0_27, %c0_28] : memref<1x16xf32, #tpu.memory_space<vmem>>, vector<1x16xf32>
    %50 = vector.shape_cast %49 : vector<1x16xf32> to vector<1x16xf32>
    %51 = vector.broadcast %50 : vector<1x16xf32> to vector<4x16xf32>
    %52 = tpu.iota {dimensions = array<i32: 0>} : vector<4x10xi32>
    %53 = tpu.iota {dimensions = array<i32: 1>} : vector<4x10xi32>
    %c2_i32_29 = arith.constant 2 : i32
    %54 = vector.broadcast %c2_i32_29 : i32 to vector<4x10xi32>
    %55 = arith.muli %54, %52 : vector<4x10xi32>
    %c0_i32_30 = arith.constant 0 : i32
    %56 = vector.broadcast %c0_i32_30 : i32 to vector<4x10xi32>
    %57 = arith.addi %55, %56 : vector<4x10xi32>
    %58 = arith.cmpi eq, %53, %57 : vector<4x10xi32>
    %59 = arith.extui %58 : vector<4x10xi1> to vector<4x10xi32>
    %60 = arith.sitofp %59 : vector<4x10xi32> to vector<4x10xf32>
    %61 = tpu.iota {dimensions = array<i32: 0>} : vector<4x10xi32>
    %62 = tpu.iota {dimensions = array<i32: 1>} : vector<4x10xi32>
    %c2_i32_31 = arith.constant 2 : i32
    %63 = vector.broadcast %c2_i32_31 : i32 to vector<4x10xi32>
    %64 = arith.muli %63, %61 : vector<4x10xi32>
    %c1_i32_32 = arith.constant 1 : i32
    %65 = vector.broadcast %c1_i32_32 : i32 to vector<4x10xi32>
    %66 = arith.addi %64, %65 : vector<4x10xi32>
    %67 = arith.cmpi eq, %62, %66 : vector<4x10xi32>
    %68 = arith.extui %67 : vector<4x10xi1> to vector<4x10xi32>
    %69 = arith.sitofp %68 : vector<4x10xi32> to vector<4x10xf32>
    %70 = tpu.iota {dimensions = array<i32: 0>} : vector<4x10xi32>
    %71 = tpu.iota {dimensions = array<i32: 1>} : vector<4x10xi32>
    %c2_i32_33 = arith.constant 2 : i32
    %72 = vector.broadcast %c2_i32_33 : i32 to vector<4x10xi32>
    %73 = arith.muli %72, %70 : vector<4x10xi32>
    %c2_i32_34 = arith.constant 2 : i32
    %74 = vector.broadcast %c2_i32_34 : i32 to vector<4x10xi32>
    %75 = arith.addi %73, %74 : vector<4x10xi32>
    %76 = arith.cmpi eq, %71, %75 : vector<4x10xi32>
    %77 = arith.extui %76 : vector<4x10xi1> to vector<4x10xi32>
    %78 = arith.sitofp %77 : vector<4x10xi32> to vector<4x10xf32>
    %79 = tpu.iota {dimensions = array<i32: 0>} : vector<4x10xi32>
    %80 = tpu.iota {dimensions = array<i32: 1>} : vector<4x10xi32>
    %c2_i32_35 = arith.constant 2 : i32
    %81 = vector.broadcast %c2_i32_35 : i32 to vector<4x10xi32>
    %82 = arith.muli %81, %79 : vector<4x10xi32>
    %c3_i32_36 = arith.constant 3 : i32
    %83 = vector.broadcast %c3_i32_36 : i32 to vector<4x10xi32>
    %84 = arith.addi %82, %83 : vector<4x10xi32>
    %85 = arith.cmpi eq, %80, %84 : vector<4x10xi32>
    %86 = arith.extui %85 : vector<4x10xi1> to vector<4x10xi32>
    %87 = arith.sitofp %86 : vector<4x10xi32> to vector<4x10xf32>
    %c0_i32_37 = arith.constant 0 : i32
    %c4_i32 = arith.constant 4 : i32
    %88 = arith.addi %c0_i32_37, %c4_i32 : i32
    %c1_i32_38 = arith.constant 1 : i32
    scf.for %arg25 = %c0_i32_37 to %88 step %c1_i32_38  : i32 {
      %c2_i32_256 = arith.constant 2 : i32
      %320 = arith.muli %c2_i32_256, %arg25 : i32
      %c0_i32_257 = arith.constant 0 : i32
      %321 = arith.addi %320, %c0_i32_257 : i32
      %322 = arith.index_cast %321 : i32 to index
      %c0_258 = arith.constant 0 : index
      %c0_259 = arith.constant 0 : index
      %323 = vector.load %arg17[%322, %c0_258, %c0_259] : memref<10x10x8xf32, #tpu.memory_space<vmem>>, vector<1x10x8xf32>
      %324 = vector.shape_cast %323 : vector<1x10x8xf32> to vector<10x8xf32>
      %cst_260 = arith.constant dense<0.000000e+00> : vector<4x8xf32>
      %325 = tpu.matmul %60, %324, %cst_260 {dimension_numbers = #tpu.dot_dimension_numbers<[1], [0], [0], [1], [0, 0, 1, 1], [], []>} : vector<4x10xf32>, vector<10x8xf32>, vector<4x8xf32> -> vector<4x8xf32>
      %c0_261 = arith.constant 0 : index
      %c0_262 = arith.constant 0 : index
      %c0_263 = arith.constant 0 : index
      %326 = vector.load %arg4[%c0_261, %c0_262, %c0_263] : memref<16x8x16xf32, #tpu.memory_space<vmem>>, vector<1x8x16xf32>
      %327 = vector.shape_cast %326 : vector<1x8x16xf32> to vector<8x16xf32>
      %cst_264 = arith.constant dense<0.000000e+00> : vector<4x16xf32>
      %328 = tpu.matmul %325, %327, %cst_264 {dimension_numbers = #tpu.dot_dimension_numbers<[1], [0], [0], [1], [0, 0, 1, 1], [], []>} : vector<4x8xf32>, vector<8x16xf32>, vector<4x16xf32> -> vector<4x16xf32>
      %329 = arith.addf %51, %328 : vector<4x16xf32>
      %cst_265 = arith.constant dense<0.000000e+00> : vector<4x8xf32>
      %330 = tpu.matmul %69, %324, %cst_265 {dimension_numbers = #tpu.dot_dimension_numbers<[1], [0], [0], [1], [0, 0, 1, 1], [], []>} : vector<4x10xf32>, vector<10x8xf32>, vector<4x8xf32> -> vector<4x8xf32>
      %c1_266 = arith.constant 1 : index
      %c0_267 = arith.constant 0 : index
      %c0_268 = arith.constant 0 : index
      %331 = vector.load %arg4[%c1_266, %c0_267, %c0_268] : memref<16x8x16xf32, #tpu.memory_space<vmem>>, vector<1x8x16xf32>
      %332 = vector.shape_cast %331 : vector<1x8x16xf32> to vector<8x16xf32>
      %cst_269 = arith.constant dense<0.000000e+00> : vector<4x16xf32>
      %333 = tpu.matmul %330, %332, %cst_269 {dimension_numbers = #tpu.dot_dimension_numbers<[1], [0], [0], [1], [0, 0, 1, 1], [], []>} : vector<4x8xf32>, vector<8x16xf32>, vector<4x16xf32> -> vector<4x16xf32>
      %334 = arith.addf %329, %333 : vector<4x16xf32>
      %cst_270 = arith.constant dense<0.000000e+00> : vector<4x8xf32>
      %335 = tpu.matmul %78, %324, %cst_270 {dimension_numbers = #tpu.dot_dimension_numbers<[1], [0], [0], [1], [0, 0, 1, 1], [], []>} : vector<4x10xf32>, vector<10x8xf32>, vector<4x8xf32> -> vector<4x8xf32>
      %c2_271 = arith.constant 2 : index
      %c0_272 = arith.constant 0 : index
      %c0_273 = arith.constant 0 : index
      %336 = vector.load %arg4[%c2_271, %c0_272, %c0_273] : memref<16x8x16xf32, #tpu.memory_space<vmem>>, vector<1x8x16xf32>
      %337 = vector.shape_cast %336 : vector<1x8x16xf32> to vector<8x16xf32>
      %cst_274 = arith.constant dense<0.000000e+00> : vector<4x16xf32>
      %338 = tpu.matmul %335, %337, %cst_274 {dimension_numbers = #tpu.dot_dimension_numbers<[1], [0], [0], [1], [0, 0, 1, 1], [], []>} : vector<4x8xf32>, vector<8x16xf32>, vector<4x16xf32> -> vector<4x16xf32>
      %339 = arith.addf %334, %338 : vector<4x16xf32>
      %cst_275 = arith.constant dense<0.000000e+00> : vector<4x8xf32>
      %340 = tpu.matmul %87, %324, %cst_275 {dimension_numbers = #tpu.dot_dimension_numbers<[1], [0], [0], [1], [0, 0, 1, 1], [], []>} : vector<4x10xf32>, vector<10x8xf32>, vector<4x8xf32> -> vector<4x8xf32>
      %c3_276 = arith.constant 3 : index
      %c0_277 = arith.constant 0 : index
      %c0_278 = arith.constant 0 : index
      %341 = vector.load %arg4[%c3_276, %c0_277, %c0_278] : memref<16x8x16xf32, #tpu.memory_space<vmem>>, vector<1x8x16xf32>
      %342 = vector.shape_cast %341 : vector<1x8x16xf32> to vector<8x16xf32>
      %cst_279 = arith.constant dense<0.000000e+00> : vector<4x16xf32>
      %343 = tpu.matmul %340, %342, %cst_279 {dimension_numbers = #tpu.dot_dimension_numbers<[1], [0], [0], [1], [0, 0, 1, 1], [], []>} : vector<4x8xf32>, vector<8x16xf32>, vector<4x16xf32> -> vector<4x16xf32>
      %344 = arith.addf %339, %343 : vector<4x16xf32>
      %c2_i32_280 = arith.constant 2 : i32
      %345 = arith.muli %c2_i32_280, %arg25 : i32
      %c1_i32_281 = arith.constant 1 : i32
      %346 = arith.addi %345, %c1_i32_281 : i32
      %347 = arith.index_cast %346 : i32 to index
      %c0_282 = arith.constant 0 : index
      %c0_283 = arith.constant 0 : index
      %348 = vector.load %arg17[%347, %c0_282, %c0_283] : memref<10x10x8xf32, #tpu.memory_space<vmem>>, vector<1x10x8xf32>
      %349 = vector.shape_cast %348 : vector<1x10x8xf32> to vector<10x8xf32>
      %cst_284 = arith.constant dense<0.000000e+00> : vector<4x8xf32>
      %350 = tpu.matmul %60, %349, %cst_284 {dimension_numbers = #tpu.dot_dimension_numbers<[1], [0], [0], [1], [0, 0, 1, 1], [], []>} : vector<4x10xf32>, vector<10x8xf32>, vector<4x8xf32> -> vector<4x8xf32>
      %c4_285 = arith.constant 4 : index
      %c0_286 = arith.constant 0 : index
      %c0_287 = arith.constant 0 : index
      %351 = vector.load %arg4[%c4_285, %c0_286, %c0_287] : memref<16x8x16xf32, #tpu.memory_space<vmem>>, vector<1x8x16xf32>
      %352 = vector.shape_cast %351 : vector<1x8x16xf32> to vector<8x16xf32>
      %cst_288 = arith.constant dense<0.000000e+00> : vector<4x16xf32>
      %353 = tpu.matmul %350, %352, %cst_288 {dimension_numbers = #tpu.dot_dimension_numbers<[1], [0], [0], [1], [0, 0, 1, 1], [], []>} : vector<4x8xf32>, vector<8x16xf32>, vector<4x16xf32> -> vector<4x16xf32>
      %354 = arith.addf %344, %353 : vector<4x16xf32>
      %cst_289 = arith.constant dense<0.000000e+00> : vector<4x8xf32>
      %355 = tpu.matmul %69, %349, %cst_289 {dimension_numbers = #tpu.dot_dimension_numbers<[1], [0], [0], [1], [0, 0, 1, 1], [], []>} : vector<4x10xf32>, vector<10x8xf32>, vector<4x8xf32> -> vector<4x8xf32>
      %c5_290 = arith.constant 5 : index
      %c0_291 = arith.constant 0 : index
      %c0_292 = arith.constant 0 : index
      %356 = vector.load %arg4[%c5_290, %c0_291, %c0_292] : memref<16x8x16xf32, #tpu.memory_space<vmem>>, vector<1x8x16xf32>
      %357 = vector.shape_cast %356 : vector<1x8x16xf32> to vector<8x16xf32>
      %cst_293 = arith.constant dense<0.000000e+00> : vector<4x16xf32>
      %358 = tpu.matmul %355, %357, %cst_293 {dimension_numbers = #tpu.dot_dimension_numbers<[1], [0], [0], [1], [0, 0, 1, 1], [], []>} : vector<4x8xf32>, vector<8x16xf32>, vector<4x16xf32> -> vector<4x16xf32>
      %359 = arith.addf %354, %358 : vector<4x16xf32>
      %cst_294 = arith.constant dense<0.000000e+00> : vector<4x8xf32>
      %360 = tpu.matmul %78, %349, %cst_294 {dimension_numbers = #tpu.dot_dimension_numbers<[1], [0], [0], [1], [0, 0, 1, 1], [], []>} : vector<4x10xf32>, vector<10x8xf32>, vector<4x8xf32> -> vector<4x8xf32>
      %c6_295 = arith.constant 6 : index
      %c0_296 = arith.constant 0 : index
      %c0_297 = arith.constant 0 : index
      %361 = vector.load %arg4[%c6_295, %c0_296, %c0_297] : memref<16x8x16xf32, #tpu.memory_space<vmem>>, vector<1x8x16xf32>
      %362 = vector.shape_cast %361 : vector<1x8x16xf32> to vector<8x16xf32>
      %cst_298 = arith.constant dense<0.000000e+00> : vector<4x16xf32>
      %363 = tpu.matmul %360, %362, %cst_298 {dimension_numbers = #tpu.dot_dimension_numbers<[1], [0], [0], [1], [0, 0, 1, 1], [], []>} : vector<4x8xf32>, vector<8x16xf32>, vector<4x16xf32> -> vector<4x16xf32>
      %364 = arith.addf %359, %363 : vector<4x16xf32>
      %cst_299 = arith.constant dense<0.000000e+00> : vector<4x8xf32>
      %365 = tpu.matmul %87, %349, %cst_299 {dimension_numbers = #tpu.dot_dimension_numbers<[1], [0], [0], [1], [0, 0, 1, 1], [], []>} : vector<4x10xf32>, vector<10x8xf32>, vector<4x8xf32> -> vector<4x8xf32>
      %c7_300 = arith.constant 7 : index
      %c0_301 = arith.constant 0 : index
      %c0_302 = arith.constant 0 : index
      %366 = vector.load %arg4[%c7_300, %c0_301, %c0_302] : memref<16x8x16xf32, #tpu.memory_space<vmem>>, vector<1x8x16xf32>
      %367 = vector.shape_cast %366 : vector<1x8x16xf32> to vector<8x16xf32>
      %cst_303 = arith.constant dense<0.000000e+00> : vector<4x16xf32>
      %368 = tpu.matmul %365, %367, %cst_303 {dimension_numbers = #tpu.dot_dimension_numbers<[1], [0], [0], [1], [0, 0, 1, 1], [], []>} : vector<4x8xf32>, vector<8x16xf32>, vector<4x16xf32> -> vector<4x16xf32>
      %369 = arith.addf %364, %368 : vector<4x16xf32>
      %c2_i32_304 = arith.constant 2 : i32
      %370 = arith.muli %c2_i32_304, %arg25 : i32
      %c2_i32_305 = arith.constant 2 : i32
      %371 = arith.addi %370, %c2_i32_305 : i32
      %372 = arith.index_cast %371 : i32 to index
      %c0_306 = arith.constant 0 : index
      %c0_307 = arith.constant 0 : index
      %373 = vector.load %arg17[%372, %c0_306, %c0_307] : memref<10x10x8xf32, #tpu.memory_space<vmem>>, vector<1x10x8xf32>
      %374 = vector.shape_cast %373 : vector<1x10x8xf32> to vector<10x8xf32>
      %cst_308 = arith.constant dense<0.000000e+00> : vector<4x8xf32>
      %375 = tpu.matmul %60, %374, %cst_308 {dimension_numbers = #tpu.dot_dimension_numbers<[1], [0], [0], [1], [0, 0, 1, 1], [], []>} : vector<4x10xf32>, vector<10x8xf32>, vector<4x8xf32> -> vector<4x8xf32>
      %c8_309 = arith.constant 8 : index
      %c0_310 = arith.constant 0 : index
      %c0_311 = arith.constant 0 : index
      %376 = vector.load %arg4[%c8_309, %c0_310, %c0_311] : memref<16x8x16xf32, #tpu.memory_space<vmem>>, vector<1x8x16xf32>
      %377 = vector.shape_cast %376 : vector<1x8x16xf32> to vector<8x16xf32>
      %cst_312 = arith.constant dense<0.000000e+00> : vector<4x16xf32>
      %378 = tpu.matmul %375, %377, %cst_312 {dimension_numbers = #tpu.dot_dimension_numbers<[1], [0], [0], [1], [0, 0, 1, 1], [], []>} : vector<4x8xf32>, vector<8x16xf32>, vector<4x16xf32> -> vector<4x16xf32>
      %379 = arith.addf %369, %378 : vector<4x16xf32>
      %cst_313 = arith.constant dense<0.000000e+00> : vector<4x8xf32>
      %380 = tpu.matmul %69, %374, %cst_313 {dimension_numbers = #tpu.dot_dimension_numbers<[1], [0], [0], [1], [0, 0, 1, 1], [], []>} : vector<4x10xf32>, vector<10x8xf32>, vector<4x8xf32> -> vector<4x8xf32>
      %c9_314 = arith.constant 9 : index
      %c0_315 = arith.constant 0 : index
      %c0_316 = arith.constant 0 : index
      %381 = vector.load %arg4[%c9_314, %c0_315, %c0_316] : memref<16x8x16xf32, #tpu.memory_space<vmem>>, vector<1x8x16xf32>
      %382 = vector.shape_cast %381 : vector<1x8x16xf32> to vector<8x16xf32>
      %cst_317 = arith.constant dense<0.000000e+00> : vector<4x16xf32>
      %383 = tpu.matmul %380, %382, %cst_317 {dimension_numbers = #tpu.dot_dimension_numbers<[1], [0], [0], [1], [0, 0, 1, 1], [], []>} : vector<4x8xf32>, vector<8x16xf32>, vector<4x16xf32> -> vector<4x16xf32>
      %384 = arith.addf %379, %383 : vector<4x16xf32>
      %cst_318 = arith.constant dense<0.000000e+00> : vector<4x8xf32>
      %385 = tpu.matmul %78, %374, %cst_318 {dimension_numbers = #tpu.dot_dimension_numbers<[1], [0], [0], [1], [0, 0, 1, 1], [], []>} : vector<4x10xf32>, vector<10x8xf32>, vector<4x8xf32> -> vector<4x8xf32>
      %c10_319 = arith.constant 10 : index
      %c0_320 = arith.constant 0 : index
      %c0_321 = arith.constant 0 : index
      %386 = vector.load %arg4[%c10_319, %c0_320, %c0_321] : memref<16x8x16xf32, #tpu.memory_space<vmem>>, vector<1x8x16xf32>
      %387 = vector.shape_cast %386 : vector<1x8x16xf32> to vector<8x16xf32>
      %cst_322 = arith.constant dense<0.000000e+00> : vector<4x16xf32>
      %388 = tpu.matmul %385, %387, %cst_322 {dimension_numbers = #tpu.dot_dimension_numbers<[1], [0], [0], [1], [0, 0, 1, 1], [], []>} : vector<4x8xf32>, vector<8x16xf32>, vector<4x16xf32> -> vector<4x16xf32>
      %389 = arith.addf %384, %388 : vector<4x16xf32>
      %cst_323 = arith.constant dense<0.000000e+00> : vector<4x8xf32>
      %390 = tpu.matmul %87, %374, %cst_323 {dimension_numbers = #tpu.dot_dimension_numbers<[1], [0], [0], [1], [0, 0, 1, 1], [], []>} : vector<4x10xf32>, vector<10x8xf32>, vector<4x8xf32> -> vector<4x8xf32>
      %c11_324 = arith.constant 11 : index
      %c0_325 = arith.constant 0 : index
      %c0_326 = arith.constant 0 : index
      %391 = vector.load %arg4[%c11_324, %c0_325, %c0_326] : memref<16x8x16xf32, #tpu.memory_space<vmem>>, vector<1x8x16xf32>
      %392 = vector.shape_cast %391 : vector<1x8x16xf32> to vector<8x16xf32>
      %cst_327 = arith.constant dense<0.000000e+00> : vector<4x16xf32>
      %393 = tpu.matmul %390, %392, %cst_327 {dimension_numbers = #tpu.dot_dimension_numbers<[1], [0], [0], [1], [0, 0, 1, 1], [], []>} : vector<4x8xf32>, vector<8x16xf32>, vector<4x16xf32> -> vector<4x16xf32>
      %394 = arith.addf %389, %393 : vector<4x16xf32>
      %c2_i32_328 = arith.constant 2 : i32
      %395 = arith.muli %c2_i32_328, %arg25 : i32
      %c3_i32_329 = arith.constant 3 : i32
      %396 = arith.addi %395, %c3_i32_329 : i32
      %397 = arith.index_cast %396 : i32 to index
      %c0_330 = arith.constant 0 : index
      %c0_331 = arith.constant 0 : index
      %398 = vector.load %arg17[%397, %c0_330, %c0_331] : memref<10x10x8xf32, #tpu.memory_space<vmem>>, vector<1x10x8xf32>
      %399 = vector.shape_cast %398 : vector<1x10x8xf32> to vector<10x8xf32>
      %cst_332 = arith.constant dense<0.000000e+00> : vector<4x8xf32>
      %400 = tpu.matmul %60, %399, %cst_332 {dimension_numbers = #tpu.dot_dimension_numbers<[1], [0], [0], [1], [0, 0, 1, 1], [], []>} : vector<4x10xf32>, vector<10x8xf32>, vector<4x8xf32> -> vector<4x8xf32>
      %c12_333 = arith.constant 12 : index
      %c0_334 = arith.constant 0 : index
      %c0_335 = arith.constant 0 : index
      %401 = vector.load %arg4[%c12_333, %c0_334, %c0_335] : memref<16x8x16xf32, #tpu.memory_space<vmem>>, vector<1x8x16xf32>
      %402 = vector.shape_cast %401 : vector<1x8x16xf32> to vector<8x16xf32>
      %cst_336 = arith.constant dense<0.000000e+00> : vector<4x16xf32>
      %403 = tpu.matmul %400, %402, %cst_336 {dimension_numbers = #tpu.dot_dimension_numbers<[1], [0], [0], [1], [0, 0, 1, 1], [], []>} : vector<4x8xf32>, vector<8x16xf32>, vector<4x16xf32> -> vector<4x16xf32>
      %404 = arith.addf %394, %403 : vector<4x16xf32>
      %cst_337 = arith.constant dense<0.000000e+00> : vector<4x8xf32>
      %405 = tpu.matmul %69, %399, %cst_337 {dimension_numbers = #tpu.dot_dimension_numbers<[1], [0], [0], [1], [0, 0, 1, 1], [], []>} : vector<4x10xf32>, vector<10x8xf32>, vector<4x8xf32> -> vector<4x8xf32>
      %c13_338 = arith.constant 13 : index
      %c0_339 = arith.constant 0 : index
      %c0_340 = arith.constant 0 : index
      %406 = vector.load %arg4[%c13_338, %c0_339, %c0_340] : memref<16x8x16xf32, #tpu.memory_space<vmem>>, vector<1x8x16xf32>
      %407 = vector.shape_cast %406 : vector<1x8x16xf32> to vector<8x16xf32>
      %cst_341 = arith.constant dense<0.000000e+00> : vector<4x16xf32>
      %408 = tpu.matmul %405, %407, %cst_341 {dimension_numbers = #tpu.dot_dimension_numbers<[1], [0], [0], [1], [0, 0, 1, 1], [], []>} : vector<4x8xf32>, vector<8x16xf32>, vector<4x16xf32> -> vector<4x16xf32>
      %409 = arith.addf %404, %408 : vector<4x16xf32>
      %cst_342 = arith.constant dense<0.000000e+00> : vector<4x8xf32>
      %410 = tpu.matmul %78, %399, %cst_342 {dimension_numbers = #tpu.dot_dimension_numbers<[1], [0], [0], [1], [0, 0, 1, 1], [], []>} : vector<4x10xf32>, vector<10x8xf32>, vector<4x8xf32> -> vector<4x8xf32>
      %c14_343 = arith.constant 14 : index
      %c0_344 = arith.constant 0 : index
      %c0_345 = arith.constant 0 : index
      %411 = vector.load %arg4[%c14_343, %c0_344, %c0_345] : memref<16x8x16xf32, #tpu.memory_space<vmem>>, vector<1x8x16xf32>
      %412 = vector.shape_cast %411 : vector<1x8x16xf32> to vector<8x16xf32>
      %cst_346 = arith.constant dense<0.000000e+00> : vector<4x16xf32>
      %413 = tpu.matmul %410, %412, %cst_346 {dimension_numbers = #tpu.dot_dimension_numbers<[1], [0], [0], [1], [0, 0, 1, 1], [], []>} : vector<4x8xf32>, vector<8x16xf32>, vector<4x16xf32> -> vector<4x16xf32>
      %414 = arith.addf %409, %413 : vector<4x16xf32>
      %cst_347 = arith.constant dense<0.000000e+00> : vector<4x8xf32>
      %415 = tpu.matmul %87, %399, %cst_347 {dimension_numbers = #tpu.dot_dimension_numbers<[1], [0], [0], [1], [0, 0, 1, 1], [], []>} : vector<4x10xf32>, vector<10x8xf32>, vector<4x8xf32> -> vector<4x8xf32>
      %c15_348 = arith.constant 15 : index
      %c0_349 = arith.constant 0 : index
      %c0_350 = arith.constant 0 : index
      %416 = vector.load %arg4[%c15_348, %c0_349, %c0_350] : memref<16x8x16xf32, #tpu.memory_space<vmem>>, vector<1x8x16xf32>
      %417 = vector.shape_cast %416 : vector<1x8x16xf32> to vector<8x16xf32>
      %cst_351 = arith.constant dense<0.000000e+00> : vector<4x16xf32>
      %418 = tpu.matmul %415, %417, %cst_351 {dimension_numbers = #tpu.dot_dimension_numbers<[1], [0], [0], [1], [0, 0, 1, 1], [], []>} : vector<4x8xf32>, vector<8x16xf32>, vector<4x16xf32> -> vector<4x16xf32>
      %419 = arith.addf %414, %418 : vector<4x16xf32>
      %cst_352 = arith.constant 0.000000e+00 : f32
      %420 = vector.broadcast %cst_352 : f32 to vector<4x16xf32>
      %421 = arith.maximumf %419, %420 : vector<4x16xf32>
      %422 = arith.index_cast %arg25 : i32 to index
      %c0_353 = arith.constant 0 : index
      %c0_354 = arith.constant 0 : index
      %423 = vector.load %arg18[%422, %c0_353, %c0_354] : memref<4x4x16xf32, #tpu.memory_space<vmem>>, vector<1x4x16xf32>
      %424 = vector.shape_cast %423 : vector<1x4x16xf32> to vector<4x16xf32>
      %425 = vector.shape_cast %421 : vector<4x16xf32> to vector<1x4x16xf32>
      tpu.vector_store %arg18[%422, %c0_353, %c0_354], %425 {strides = array<i32>} : memref<4x4x16xf32, #tpu.memory_space<vmem>>, vector<1x4x16xf32>,
    }
    %c4_i32_39 = arith.constant 4 : i32
    %c0_40 = arith.constant 0 : index
    %c0_41 = arith.constant 0 : index
    %89 = vector.load %arg7[%c0_40, %c0_41] : memref<1x32xf32, #tpu.memory_space<vmem>>, vector<1x32xf32>
    %c0_i32_42 = arith.constant 0 : i32
    %c1_i32_43 = arith.constant 1 : i32
    %90 = arith.muli %c1_i32_43, %c0_i32_42 : i32
    %c0_i32_44 = arith.constant 0 : i32
    %91 = arith.addi %90, %c0_i32_44 : i32
    %92 = arith.index_cast %91 : i32 to index
    %c0_45 = arith.constant 0 : index
    %c0_46 = arith.constant 0 : index
    %93 = vector.load %arg18[%92, %c0_45, %c0_46] : memref<4x4x16xf32, #tpu.memory_space<vmem>>, vector<1x1x16xf32>
    %94 = vector.shape_cast %93 : vector<1x1x16xf32> to vector<1x16xf32>
    %c0_47 = arith.constant 0 : index
    %c0_48 = arith.constant 0 : index
    %c0_49 = arith.constant 0 : index
    %95 = vector.load %arg6[%c0_47, %c0_48, %c0_49] : memref<16x16x32xf32, #tpu.memory_space<vmem>>, vector<1x16x32xf32>
    %96 = vector.shape_cast %95 : vector<1x16x32xf32> to vector<16x32xf32>
    %cst_50 = arith.constant dense<0.000000e+00> : vector<1x32xf32>
    %97 = tpu.matmul %94, %96, %cst_50 {dimension_numbers = #tpu.dot_dimension_numbers<[1], [0], [0], [1], [0, 0, 1, 1], [], []>} : vector<1x16xf32>, vector<16x32xf32>, vector<1x32xf32> -> vector<1x32xf32>
    %98 = arith.addf %89, %97 : vector<1x32xf32>
    %99 = arith.index_cast %91 : i32 to index
    %c1_51 = arith.constant 1 : index
    %c0_52 = arith.constant 0 : index
    %100 = vector.load %arg18[%99, %c1_51, %c0_52] : memref<4x4x16xf32, #tpu.memory_space<vmem>>, vector<1x1x16xf32>
    %101 = vector.shape_cast %100 : vector<1x1x16xf32> to vector<1x16xf32>
    %c1_53 = arith.constant 1 : index
    %c0_54 = arith.constant 0 : index
    %c0_55 = arith.constant 0 : index
    %102 = vector.load %arg6[%c1_53, %c0_54, %c0_55] : memref<16x16x32xf32, #tpu.memory_space<vmem>>, vector<1x16x32xf32>
    %103 = vector.shape_cast %102 : vector<1x16x32xf32> to vector<16x32xf32>
    %cst_56 = arith.constant dense<0.000000e+00> : vector<1x32xf32>
    %104 = tpu.matmul %101, %103, %cst_56 {dimension_numbers = #tpu.dot_dimension_numbers<[1], [0], [0], [1], [0, 0, 1, 1], [], []>} : vector<1x16xf32>, vector<16x32xf32>, vector<1x32xf32> -> vector<1x32xf32>
    %105 = arith.addf %98, %104 : vector<1x32xf32>
    %106 = arith.index_cast %91 : i32 to index
    %c2 = arith.constant 2 : index
    %c0_57 = arith.constant 0 : index
    %107 = vector.load %arg18[%106, %c2, %c0_57] : memref<4x4x16xf32, #tpu.memory_space<vmem>>, vector<1x1x16xf32>
    %108 = vector.shape_cast %107 : vector<1x1x16xf32> to vector<1x16xf32>
    %c2_58 = arith.constant 2 : index
    %c0_59 = arith.constant 0 : index
    %c0_60 = arith.constant 0 : index
    %109 = vector.load %arg6[%c2_58, %c0_59, %c0_60] : memref<16x16x32xf32, #tpu.memory_space<vmem>>, vector<1x16x32xf32>
    %110 = vector.shape_cast %109 : vector<1x16x32xf32> to vector<16x32xf32>
    %cst_61 = arith.constant dense<0.000000e+00> : vector<1x32xf32>
    %111 = tpu.matmul %108, %110, %cst_61 {dimension_numbers = #tpu.dot_dimension_numbers<[1], [0], [0], [1], [0, 0, 1, 1], [], []>} : vector<1x16xf32>, vector<16x32xf32>, vector<1x32xf32> -> vector<1x32xf32>
    %112 = arith.addf %105, %111 : vector<1x32xf32>
    %113 = arith.index_cast %91 : i32 to index
    %c3 = arith.constant 3 : index
    %c0_62 = arith.constant 0 : index
    %114 = vector.load %arg18[%113, %c3, %c0_62] : memref<4x4x16xf32, #tpu.memory_space<vmem>>, vector<1x1x16xf32>
    %115 = vector.shape_cast %114 : vector<1x1x16xf32> to vector<1x16xf32>
    %c3_63 = arith.constant 3 : index
    %c0_64 = arith.constant 0 : index
    %c0_65 = arith.constant 0 : index
    %116 = vector.load %arg6[%c3_63, %c0_64, %c0_65] : memref<16x16x32xf32, #tpu.memory_space<vmem>>, vector<1x16x32xf32>
    %117 = vector.shape_cast %116 : vector<1x16x32xf32> to vector<16x32xf32>
    %cst_66 = arith.constant dense<0.000000e+00> : vector<1x32xf32>
    %118 = tpu.matmul %115, %117, %cst_66 {dimension_numbers = #tpu.dot_dimension_numbers<[1], [0], [0], [1], [0, 0, 1, 1], [], []>} : vector<1x16xf32>, vector<16x32xf32>, vector<1x32xf32> -> vector<1x32xf32>
    %119 = arith.addf %112, %118 : vector<1x32xf32>
    %c1_i32_67 = arith.constant 1 : i32
    %120 = arith.muli %c1_i32_67, %c0_i32_42 : i32
    %c1_i32_68 = arith.constant 1 : i32
    %121 = arith.addi %120, %c1_i32_68 : i32
    %122 = arith.index_cast %121 : i32 to index
    %c0_69 = arith.constant 0 : index
    %c0_70 = arith.constant 0 : index
    %123 = vector.load %arg18[%122, %c0_69, %c0_70] : memref<4x4x16xf32, #tpu.memory_space<vmem>>, vector<1x1x16xf32>
    %124 = vector.shape_cast %123 : vector<1x1x16xf32> to vector<1x16xf32>
    %c4 = arith.constant 4 : index
    %c0_71 = arith.constant 0 : index
    %c0_72 = arith.constant 0 : index
    %125 = vector.load %arg6[%c4, %c0_71, %c0_72] : memref<16x16x32xf32, #tpu.memory_space<vmem>>, vector<1x16x32xf32>
    %126 = vector.shape_cast %125 : vector<1x16x32xf32> to vector<16x32xf32>
    %cst_73 = arith.constant dense<0.000000e+00> : vector<1x32xf32>
    %127 = tpu.matmul %124, %126, %cst_73 {dimension_numbers = #tpu.dot_dimension_numbers<[1], [0], [0], [1], [0, 0, 1, 1], [], []>} : vector<1x16xf32>, vector<16x32xf32>, vector<1x32xf32> -> vector<1x32xf32>
    %128 = arith.addf %119, %127 : vector<1x32xf32>
    %129 = arith.index_cast %121 : i32 to index
    %c1_74 = arith.constant 1 : index
    %c0_75 = arith.constant 0 : index
    %130 = vector.load %arg18[%129, %c1_74, %c0_75] : memref<4x4x16xf32, #tpu.memory_space<vmem>>, vector<1x1x16xf32>
    %131 = vector.shape_cast %130 : vector<1x1x16xf32> to vector<1x16xf32>
    %c5 = arith.constant 5 : index
    %c0_76 = arith.constant 0 : index
    %c0_77 = arith.constant 0 : index
    %132 = vector.load %arg6[%c5, %c0_76, %c0_77] : memref<16x16x32xf32, #tpu.memory_space<vmem>>, vector<1x16x32xf32>
    %133 = vector.shape_cast %132 : vector<1x16x32xf32> to vector<16x32xf32>
    %cst_78 = arith.constant dense<0.000000e+00> : vector<1x32xf32>
    %134 = tpu.matmul %131, %133, %cst_78 {dimension_numbers = #tpu.dot_dimension_numbers<[1], [0], [0], [1], [0, 0, 1, 1], [], []>} : vector<1x16xf32>, vector<16x32xf32>, vector<1x32xf32> -> vector<1x32xf32>
    %135 = arith.addf %128, %134 : vector<1x32xf32>
    %136 = arith.index_cast %121 : i32 to index
    %c2_79 = arith.constant 2 : index
    %c0_80 = arith.constant 0 : index
    %137 = vector.load %arg18[%136, %c2_79, %c0_80] : memref<4x4x16xf32, #tpu.memory_space<vmem>>, vector<1x1x16xf32>
    %138 = vector.shape_cast %137 : vector<1x1x16xf32> to vector<1x16xf32>
    %c6 = arith.constant 6 : index
    %c0_81 = arith.constant 0 : index
    %c0_82 = arith.constant 0 : index
    %139 = vector.load %arg6[%c6, %c0_81, %c0_82] : memref<16x16x32xf32, #tpu.memory_space<vmem>>, vector<1x16x32xf32>
    %140 = vector.shape_cast %139 : vector<1x16x32xf32> to vector<16x32xf32>
    %cst_83 = arith.constant dense<0.000000e+00> : vector<1x32xf32>
    %141 = tpu.matmul %138, %140, %cst_83 {dimension_numbers = #tpu.dot_dimension_numbers<[1], [0], [0], [1], [0, 0, 1, 1], [], []>} : vector<1x16xf32>, vector<16x32xf32>, vector<1x32xf32> -> vector<1x32xf32>
    %142 = arith.addf %135, %141 : vector<1x32xf32>
    %143 = arith.index_cast %121 : i32 to index
    %c3_84 = arith.constant 3 : index
    %c0_85 = arith.constant 0 : index
    %144 = vector.load %arg18[%143, %c3_84, %c0_85] : memref<4x4x16xf32, #tpu.memory_space<vmem>>, vector<1x1x16xf32>
    %145 = vector.shape_cast %144 : vector<1x1x16xf32> to vector<1x16xf32>
    %c7 = arith.constant 7 : index
    %c0_86 = arith.constant 0 : index
    %c0_87 = arith.constant 0 : index
    %146 = vector.load %arg6[%c7, %c0_86, %c0_87] : memref<16x16x32xf32, #tpu.memory_space<vmem>>, vector<1x16x32xf32>
    %147 = vector.shape_cast %146 : vector<1x16x32xf32> to vector<16x32xf32>
    %cst_88 = arith.constant dense<0.000000e+00> : vector<1x32xf32>
    %148 = tpu.matmul %145, %147, %cst_88 {dimension_numbers = #tpu.dot_dimension_numbers<[1], [0], [0], [1], [0, 0, 1, 1], [], []>} : vector<1x16xf32>, vector<16x32xf32>, vector<1x32xf32> -> vector<1x32xf32>
    %149 = arith.addf %142, %148 : vector<1x32xf32>
    %c1_i32_89 = arith.constant 1 : i32
    %150 = arith.muli %c1_i32_89, %c0_i32_42 : i32
    %c2_i32_90 = arith.constant 2 : i32
    %151 = arith.addi %150, %c2_i32_90 : i32
    %152 = arith.index_cast %151 : i32 to index
    %c0_91 = arith.constant 0 : index
    %c0_92 = arith.constant 0 : index
    %153 = vector.load %arg18[%152, %c0_91, %c0_92] : memref<4x4x16xf32, #tpu.memory_space<vmem>>, vector<1x1x16xf32>
    %154 = vector.shape_cast %153 : vector<1x1x16xf32> to vector<1x16xf32>
    %c8 = arith.constant 8 : index
    %c0_93 = arith.constant 0 : index
    %c0_94 = arith.constant 0 : index
    %155 = vector.load %arg6[%c8, %c0_93, %c0_94] : memref<16x16x32xf32, #tpu.memory_space<vmem>>, vector<1x16x32xf32>
    %156 = vector.shape_cast %155 : vector<1x16x32xf32> to vector<16x32xf32>
    %cst_95 = arith.constant dense<0.000000e+00> : vector<1x32xf32>
    %157 = tpu.matmul %154, %156, %cst_95 {dimension_numbers = #tpu.dot_dimension_numbers<[1], [0], [0], [1], [0, 0, 1, 1], [], []>} : vector<1x16xf32>, vector<16x32xf32>, vector<1x32xf32> -> vector<1x32xf32>
    %158 = arith.addf %149, %157 : vector<1x32xf32>
    %159 = arith.index_cast %151 : i32 to index
    %c1_96 = arith.constant 1 : index
    %c0_97 = arith.constant 0 : index
    %160 = vector.load %arg18[%159, %c1_96, %c0_97] : memref<4x4x16xf32, #tpu.memory_space<vmem>>, vector<1x1x16xf32>
    %161 = vector.shape_cast %160 : vector<1x1x16xf32> to vector<1x16xf32>
    %c9 = arith.constant 9 : index
    %c0_98 = arith.constant 0 : index
    %c0_99 = arith.constant 0 : index
    %162 = vector.load %arg6[%c9, %c0_98, %c0_99] : memref<16x16x32xf32, #tpu.memory_space<vmem>>, vector<1x16x32xf32>
    %163 = vector.shape_cast %162 : vector<1x16x32xf32> to vector<16x32xf32>
    %cst_100 = arith.constant dense<0.000000e+00> : vector<1x32xf32>
    %164 = tpu.matmul %161, %163, %cst_100 {dimension_numbers = #tpu.dot_dimension_numbers<[1], [0], [0], [1], [0, 0, 1, 1], [], []>} : vector<1x16xf32>, vector<16x32xf32>, vector<1x32xf32> -> vector<1x32xf32>
    %165 = arith.addf %158, %164 : vector<1x32xf32>
    %166 = arith.index_cast %151 : i32 to index
    %c2_101 = arith.constant 2 : index
    %c0_102 = arith.constant 0 : index
    %167 = vector.load %arg18[%166, %c2_101, %c0_102] : memref<4x4x16xf32, #tpu.memory_space<vmem>>, vector<1x1x16xf32>
    %168 = vector.shape_cast %167 : vector<1x1x16xf32> to vector<1x16xf32>
    %c10 = arith.constant 10 : index
    %c0_103 = arith.constant 0 : index
    %c0_104 = arith.constant 0 : index
    %169 = vector.load %arg6[%c10, %c0_103, %c0_104] : memref<16x16x32xf32, #tpu.memory_space<vmem>>, vector<1x16x32xf32>
    %170 = vector.shape_cast %169 : vector<1x16x32xf32> to vector<16x32xf32>
    %cst_105 = arith.constant dense<0.000000e+00> : vector<1x32xf32>
    %171 = tpu.matmul %168, %170, %cst_105 {dimension_numbers = #tpu.dot_dimension_numbers<[1], [0], [0], [1], [0, 0, 1, 1], [], []>} : vector<1x16xf32>, vector<16x32xf32>, vector<1x32xf32> -> vector<1x32xf32>
    %172 = arith.addf %165, %171 : vector<1x32xf32>
    %173 = arith.index_cast %151 : i32 to index
    %c3_106 = arith.constant 3 : index
    %c0_107 = arith.constant 0 : index
    %174 = vector.load %arg18[%173, %c3_106, %c0_107] : memref<4x4x16xf32, #tpu.memory_space<vmem>>, vector<1x1x16xf32>
    %175 = vector.shape_cast %174 : vector<1x1x16xf32> to vector<1x16xf32>
    %c11 = arith.constant 11 : index
    %c0_108 = arith.constant 0 : index
    %c0_109 = arith.constant 0 : index
    %176 = vector.load %arg6[%c11, %c0_108, %c0_109] : memref<16x16x32xf32, #tpu.memory_space<vmem>>, vector<1x16x32xf32>
    %177 = vector.shape_cast %176 : vector<1x16x32xf32> to vector<16x32xf32>
    %cst_110 = arith.constant dense<0.000000e+00> : vector<1x32xf32>
    %178 = tpu.matmul %175, %177, %cst_110 {dimension_numbers = #tpu.dot_dimension_numbers<[1], [0], [0], [1], [0, 0, 1, 1], [], []>} : vector<1x16xf32>, vector<16x32xf32>, vector<1x32xf32> -> vector<1x32xf32>
    %179 = arith.addf %172, %178 : vector<1x32xf32>
    %c1_i32_111 = arith.constant 1 : i32
    %180 = arith.muli %c1_i32_111, %c0_i32_42 : i32
    %c3_i32_112 = arith.constant 3 : i32
    %181 = arith.addi %180, %c3_i32_112 : i32
    %182 = arith.index_cast %181 : i32 to index
    %c0_113 = arith.constant 0 : index
    %c0_114 = arith.constant 0 : index
    %183 = vector.load %arg18[%182, %c0_113, %c0_114] : memref<4x4x16xf32, #tpu.memory_space<vmem>>, vector<1x1x16xf32>
    %184 = vector.shape_cast %183 : vector<1x1x16xf32> to vector<1x16xf32>
    %c12 = arith.constant 12 : index
    %c0_115 = arith.constant 0 : index
    %c0_116 = arith.constant 0 : index
    %185 = vector.load %arg6[%c12, %c0_115, %c0_116] : memref<16x16x32xf32, #tpu.memory_space<vmem>>, vector<1x16x32xf32>
    %186 = vector.shape_cast %185 : vector<1x16x32xf32> to vector<16x32xf32>
    %cst_117 = arith.constant dense<0.000000e+00> : vector<1x32xf32>
    %187 = tpu.matmul %184, %186, %cst_117 {dimension_numbers = #tpu.dot_dimension_numbers<[1], [0], [0], [1], [0, 0, 1, 1], [], []>} : vector<1x16xf32>, vector<16x32xf32>, vector<1x32xf32> -> vector<1x32xf32>
    %188 = arith.addf %179, %187 : vector<1x32xf32>
    %189 = arith.index_cast %181 : i32 to index
    %c1_118 = arith.constant 1 : index
    %c0_119 = arith.constant 0 : index
    %190 = vector.load %arg18[%189, %c1_118, %c0_119] : memref<4x4x16xf32, #tpu.memory_space<vmem>>, vector<1x1x16xf32>
    %191 = vector.shape_cast %190 : vector<1x1x16xf32> to vector<1x16xf32>
    %c13 = arith.constant 13 : index
    %c0_120 = arith.constant 0 : index
    %c0_121 = arith.constant 0 : index
    %192 = vector.load %arg6[%c13, %c0_120, %c0_121] : memref<16x16x32xf32, #tpu.memory_space<vmem>>, vector<1x16x32xf32>
    %193 = vector.shape_cast %192 : vector<1x16x32xf32> to vector<16x32xf32>
    %cst_122 = arith.constant dense<0.000000e+00> : vector<1x32xf32>
    %194 = tpu.matmul %191, %193, %cst_122 {dimension_numbers = #tpu.dot_dimension_numbers<[1], [0], [0], [1], [0, 0, 1, 1], [], []>} : vector<1x16xf32>, vector<16x32xf32>, vector<1x32xf32> -> vector<1x32xf32>
    %195 = arith.addf %188, %194 : vector<1x32xf32>
    %196 = arith.index_cast %181 : i32 to index
    %c2_123 = arith.constant 2 : index
    %c0_124 = arith.constant 0 : index
    %197 = vector.load %arg18[%196, %c2_123, %c0_124] : memref<4x4x16xf32, #tpu.memory_space<vmem>>, vector<1x1x16xf32>
    %198 = vector.shape_cast %197 : vector<1x1x16xf32> to vector<1x16xf32>
    %c14 = arith.constant 14 : index
    %c0_125 = arith.constant 0 : index
    %c0_126 = arith.constant 0 : index
    %199 = vector.load %arg6[%c14, %c0_125, %c0_126] : memref<16x16x32xf32, #tpu.memory_space<vmem>>, vector<1x16x32xf32>
    %200 = vector.shape_cast %199 : vector<1x16x32xf32> to vector<16x32xf32>
    %cst_127 = arith.constant dense<0.000000e+00> : vector<1x32xf32>
    %201 = tpu.matmul %198, %200, %cst_127 {dimension_numbers = #tpu.dot_dimension_numbers<[1], [0], [0], [1], [0, 0, 1, 1], [], []>} : vector<1x16xf32>, vector<16x32xf32>, vector<1x32xf32> -> vector<1x32xf32>
    %202 = arith.addf %195, %201 : vector<1x32xf32>
    %203 = arith.index_cast %181 : i32 to index
    %c3_128 = arith.constant 3 : index
    %c0_129 = arith.constant 0 : index
    %204 = vector.load %arg18[%203, %c3_128, %c0_129] : memref<4x4x16xf32, #tpu.memory_space<vmem>>, vector<1x1x16xf32>
    %205 = vector.shape_cast %204 : vector<1x1x16xf32> to vector<1x16xf32>
    %c15 = arith.constant 15 : index
    %c0_130 = arith.constant 0 : index
    %c0_131 = arith.constant 0 : index
    %206 = vector.load %arg6[%c15, %c0_130, %c0_131] : memref<16x16x32xf32, #tpu.memory_space<vmem>>, vector<1x16x32xf32>
    %207 = vector.shape_cast %206 : vector<1x16x32xf32> to vector<16x32xf32>
    %cst_132 = arith.constant dense<0.000000e+00> : vector<1x32xf32>
    %208 = tpu.matmul %205, %207, %cst_132 {dimension_numbers = #tpu.dot_dimension_numbers<[1], [0], [0], [1], [0, 0, 1, 1], [], []>} : vector<1x16xf32>, vector<16x32xf32>, vector<1x32xf32> -> vector<1x32xf32>
    %209 = arith.addf %202, %208 : vector<1x32xf32>
    %210 = arith.index_cast %c0_i32_42 : i32 to index
    %c0_133 = arith.constant 0 : index
    %c0_134 = arith.constant 0 : index
    %211 = vector.load %arg19[%210, %c0_133, %c0_134] : memref<1x1x32xf32, #tpu.memory_space<vmem>>, vector<1x1x32xf32>
    %212 = vector.shape_cast %211 : vector<1x1x32xf32> to vector<1x32xf32>
    %213 = vector.shape_cast %209 : vector<1x32xf32> to vector<1x1x32xf32>
    tpu.vector_store %arg19[%210, %c0_133, %c0_134], %213 {strides = array<i32>} : memref<1x1x32xf32, #tpu.memory_space<vmem>>, vector<1x1x32xf32>,
    %c1_i32_135 = arith.constant 1 : i32
    %cst_136 = arith.constant 0.000000e+00 : f32
    %214 = vector.broadcast %cst_136 : f32 to vector<7x7x32xf32>
    %c0_137 = arith.constant 0 : index
    %c0_138 = arith.constant 0 : index
    %c0_139 = arith.constant 0 : index
    %215 = vector.load %arg20[%c0_137, %c0_138, %c0_139] : memref<7x7x32xf32, #tpu.memory_space<vmem>>, vector<7x7x32xf32>
    tpu.vector_store %arg20[%c0_137, %c0_138, %c0_139], %214 {strides = array<i32>} : memref<7x7x32xf32, #tpu.memory_space<vmem>>, vector<7x7x32xf32>,
    %c0_140 = arith.constant 0 : index
    %c0_141 = arith.constant 0 : index
    %c0_142 = arith.constant 0 : index
    %216 = vector.load %arg19[%c0_140, %c0_141, %c0_142] : memref<1x1x32xf32, #tpu.memory_space<vmem>>, vector<1x1x32xf32>
    %c3_143 = arith.constant 3 : index
    %c3_144 = arith.constant 3 : index
    %c0_145 = arith.constant 0 : index
    %217 = vector.load %arg20[%c3_143, %c3_144, %c0_145] : memref<7x7x32xf32, #tpu.memory_space<vmem>>, vector<1x1x32xf32>
    tpu.vector_store %arg20[%c3_143, %c3_144, %c0_145], %216 {strides = array<i32>} : memref<7x7x32xf32, #tpu.memory_space<vmem>>, vector<1x1x32xf32>,
    %c0_146 = arith.constant 0 : index
    %c0_147 = arith.constant 0 : index
    %218 = vector.load %arg9[%c0_146, %c0_147] : memref<1x16xf32, #tpu.memory_space<vmem>>, vector<1x16xf32>
    %219 = vector.shape_cast %218 : vector<1x16xf32> to vector<1x16xf32>
    %220 = vector.broadcast %219 : vector<1x16xf32> to vector<4x16xf32>
    %c0_i32_148 = arith.constant 0 : i32
    %c4_i32_149 = arith.constant 4 : i32
    %221 = arith.addi %c0_i32_148, %c4_i32_149 : i32
    %c1_i32_150 = arith.constant 1 : i32
    scf.for %arg25 = %c0_i32_148 to %221 step %c1_i32_150  : i32 {
      %c1_i32_256 = arith.constant 1 : i32
      %320 = arith.muli %c1_i32_256, %arg25 : i32
      %c0_i32_257 = arith.constant 0 : i32
      %321 = arith.addi %320, %c0_i32_257 : i32
      %322 = arith.index_cast %321 : i32 to index
      %c0_258 = arith.constant 0 : index
      %c0_259 = arith.constant 0 : index
      %323 = vector.load %arg20[%322, %c0_258, %c0_259] : memref<7x7x32xf32, #tpu.memory_space<vmem>>, vector<1x4x32xf32>
      %324 = vector.shape_cast %323 : vector<1x4x32xf32> to vector<4x32xf32>
      %c0_260 = arith.constant 0 : index
      %c0_261 = arith.constant 0 : index
      %c0_262 = arith.constant 0 : index
      %325 = vector.load %arg8[%c0_260, %c0_261, %c0_262] : memref<16x32x16xf32, #tpu.memory_space<vmem>>, vector<1x32x16xf32>
      %326 = vector.shape_cast %325 : vector<1x32x16xf32> to vector<32x16xf32>
      %cst_263 = arith.constant dense<0.000000e+00> : vector<4x16xf32>
      %327 = tpu.matmul %324, %326, %cst_263 {dimension_numbers = #tpu.dot_dimension_numbers<[1], [0], [0], [1], [0, 0, 1, 1], [], []>} : vector<4x32xf32>, vector<32x16xf32>, vector<4x16xf32> -> vector<4x16xf32>
      %328 = arith.addf %220, %327 : vector<4x16xf32>
      %329 = arith.index_cast %321 : i32 to index
      %c1_264 = arith.constant 1 : index
      %c0_265 = arith.constant 0 : index
      %330 = vector.load %arg20[%329, %c1_264, %c0_265] : memref<7x7x32xf32, #tpu.memory_space<vmem>>, vector<1x4x32xf32>
      %331 = vector.shape_cast %330 : vector<1x4x32xf32> to vector<4x32xf32>
      %c1_266 = arith.constant 1 : index
      %c0_267 = arith.constant 0 : index
      %c0_268 = arith.constant 0 : index
      %332 = vector.load %arg8[%c1_266, %c0_267, %c0_268] : memref<16x32x16xf32, #tpu.memory_space<vmem>>, vector<1x32x16xf32>
      %333 = vector.shape_cast %332 : vector<1x32x16xf32> to vector<32x16xf32>
      %cst_269 = arith.constant dense<0.000000e+00> : vector<4x16xf32>
      %334 = tpu.matmul %331, %333, %cst_269 {dimension_numbers = #tpu.dot_dimension_numbers<[1], [0], [0], [1], [0, 0, 1, 1], [], []>} : vector<4x32xf32>, vector<32x16xf32>, vector<4x16xf32> -> vector<4x16xf32>
      %335 = arith.addf %328, %334 : vector<4x16xf32>
      %336 = arith.index_cast %321 : i32 to index
      %c2_270 = arith.constant 2 : index
      %c0_271 = arith.constant 0 : index
      %337 = vector.load %arg20[%336, %c2_270, %c0_271] : memref<7x7x32xf32, #tpu.memory_space<vmem>>, vector<1x4x32xf32>
      %338 = vector.shape_cast %337 : vector<1x4x32xf32> to vector<4x32xf32>
      %c2_272 = arith.constant 2 : index
      %c0_273 = arith.constant 0 : index
      %c0_274 = arith.constant 0 : index
      %339 = vector.load %arg8[%c2_272, %c0_273, %c0_274] : memref<16x32x16xf32, #tpu.memory_space<vmem>>, vector<1x32x16xf32>
      %340 = vector.shape_cast %339 : vector<1x32x16xf32> to vector<32x16xf32>
      %cst_275 = arith.constant dense<0.000000e+00> : vector<4x16xf32>
      %341 = tpu.matmul %338, %340, %cst_275 {dimension_numbers = #tpu.dot_dimension_numbers<[1], [0], [0], [1], [0, 0, 1, 1], [], []>} : vector<4x32xf32>, vector<32x16xf32>, vector<4x16xf32> -> vector<4x16xf32>
      %342 = arith.addf %335, %341 : vector<4x16xf32>
      %343 = arith.index_cast %321 : i32 to index
      %c3_276 = arith.constant 3 : index
      %c0_277 = arith.constant 0 : index
      %344 = vector.load %arg20[%343, %c3_276, %c0_277] : memref<7x7x32xf32, #tpu.memory_space<vmem>>, vector<1x4x32xf32>
      %345 = vector.shape_cast %344 : vector<1x4x32xf32> to vector<4x32xf32>
      %c3_278 = arith.constant 3 : index
      %c0_279 = arith.constant 0 : index
      %c0_280 = arith.constant 0 : index
      %346 = vector.load %arg8[%c3_278, %c0_279, %c0_280] : memref<16x32x16xf32, #tpu.memory_space<vmem>>, vector<1x32x16xf32>
      %347 = vector.shape_cast %346 : vector<1x32x16xf32> to vector<32x16xf32>
      %cst_281 = arith.constant dense<0.000000e+00> : vector<4x16xf32>
      %348 = tpu.matmul %345, %347, %cst_281 {dimension_numbers = #tpu.dot_dimension_numbers<[1], [0], [0], [1], [0, 0, 1, 1], [], []>} : vector<4x32xf32>, vector<32x16xf32>, vector<4x16xf32> -> vector<4x16xf32>
      %349 = arith.addf %342, %348 : vector<4x16xf32>
      %c1_i32_282 = arith.constant 1 : i32
      %350 = arith.muli %c1_i32_282, %arg25 : i32
      %c1_i32_283 = arith.constant 1 : i32
      %351 = arith.addi %350, %c1_i32_283 : i32
      %352 = arith.index_cast %351 : i32 to index
      %c0_284 = arith.constant 0 : index
      %c0_285 = arith.constant 0 : index
      %353 = vector.load %arg20[%352, %c0_284, %c0_285] : memref<7x7x32xf32, #tpu.memory_space<vmem>>, vector<1x4x32xf32>
      %354 = vector.shape_cast %353 : vector<1x4x32xf32> to vector<4x32xf32>
      %c4_286 = arith.constant 4 : index
      %c0_287 = arith.constant 0 : index
      %c0_288 = arith.constant 0 : index
      %355 = vector.load %arg8[%c4_286, %c0_287, %c0_288] : memref<16x32x16xf32, #tpu.memory_space<vmem>>, vector<1x32x16xf32>
      %356 = vector.shape_cast %355 : vector<1x32x16xf32> to vector<32x16xf32>
      %cst_289 = arith.constant dense<0.000000e+00> : vector<4x16xf32>
      %357 = tpu.matmul %354, %356, %cst_289 {dimension_numbers = #tpu.dot_dimension_numbers<[1], [0], [0], [1], [0, 0, 1, 1], [], []>} : vector<4x32xf32>, vector<32x16xf32>, vector<4x16xf32> -> vector<4x16xf32>
      %358 = arith.addf %349, %357 : vector<4x16xf32>
      %359 = arith.index_cast %351 : i32 to index
      %c1_290 = arith.constant 1 : index
      %c0_291 = arith.constant 0 : index
      %360 = vector.load %arg20[%359, %c1_290, %c0_291] : memref<7x7x32xf32, #tpu.memory_space<vmem>>, vector<1x4x32xf32>
      %361 = vector.shape_cast %360 : vector<1x4x32xf32> to vector<4x32xf32>
      %c5_292 = arith.constant 5 : index
      %c0_293 = arith.constant 0 : index
      %c0_294 = arith.constant 0 : index
      %362 = vector.load %arg8[%c5_292, %c0_293, %c0_294] : memref<16x32x16xf32, #tpu.memory_space<vmem>>, vector<1x32x16xf32>
      %363 = vector.shape_cast %362 : vector<1x32x16xf32> to vector<32x16xf32>
      %cst_295 = arith.constant dense<0.000000e+00> : vector<4x16xf32>
      %364 = tpu.matmul %361, %363, %cst_295 {dimension_numbers = #tpu.dot_dimension_numbers<[1], [0], [0], [1], [0, 0, 1, 1], [], []>} : vector<4x32xf32>, vector<32x16xf32>, vector<4x16xf32> -> vector<4x16xf32>
      %365 = arith.addf %358, %364 : vector<4x16xf32>
      %366 = arith.index_cast %351 : i32 to index
      %c2_296 = arith.constant 2 : index
      %c0_297 = arith.constant 0 : index
      %367 = vector.load %arg20[%366, %c2_296, %c0_297] : memref<7x7x32xf32, #tpu.memory_space<vmem>>, vector<1x4x32xf32>
      %368 = vector.shape_cast %367 : vector<1x4x32xf32> to vector<4x32xf32>
      %c6_298 = arith.constant 6 : index
      %c0_299 = arith.constant 0 : index
      %c0_300 = arith.constant 0 : index
      %369 = vector.load %arg8[%c6_298, %c0_299, %c0_300] : memref<16x32x16xf32, #tpu.memory_space<vmem>>, vector<1x32x16xf32>
      %370 = vector.shape_cast %369 : vector<1x32x16xf32> to vector<32x16xf32>
      %cst_301 = arith.constant dense<0.000000e+00> : vector<4x16xf32>
      %371 = tpu.matmul %368, %370, %cst_301 {dimension_numbers = #tpu.dot_dimension_numbers<[1], [0], [0], [1], [0, 0, 1, 1], [], []>} : vector<4x32xf32>, vector<32x16xf32>, vector<4x16xf32> -> vector<4x16xf32>
      %372 = arith.addf %365, %371 : vector<4x16xf32>
      %373 = arith.index_cast %351 : i32 to index
      %c3_302 = arith.constant 3 : index
      %c0_303 = arith.constant 0 : index
      %374 = vector.load %arg20[%373, %c3_302, %c0_303] : memref<7x7x32xf32, #tpu.memory_space<vmem>>, vector<1x4x32xf32>
      %375 = vector.shape_cast %374 : vector<1x4x32xf32> to vector<4x32xf32>
      %c7_304 = arith.constant 7 : index
      %c0_305 = arith.constant 0 : index
      %c0_306 = arith.constant 0 : index
      %376 = vector.load %arg8[%c7_304, %c0_305, %c0_306] : memref<16x32x16xf32, #tpu.memory_space<vmem>>, vector<1x32x16xf32>
      %377 = vector.shape_cast %376 : vector<1x32x16xf32> to vector<32x16xf32>
      %cst_307 = arith.constant dense<0.000000e+00> : vector<4x16xf32>
      %378 = tpu.matmul %375, %377, %cst_307 {dimension_numbers = #tpu.dot_dimension_numbers<[1], [0], [0], [1], [0, 0, 1, 1], [], []>} : vector<4x32xf32>, vector<32x16xf32>, vector<4x16xf32> -> vector<4x16xf32>
      %379 = arith.addf %372, %378 : vector<4x16xf32>
      %c1_i32_308 = arith.constant 1 : i32
      %380 = arith.muli %c1_i32_308, %arg25 : i32
      %c2_i32_309 = arith.constant 2 : i32
      %381 = arith.addi %380, %c2_i32_309 : i32
      %382 = arith.index_cast %381 : i32 to index
      %c0_310 = arith.constant 0 : index
      %c0_311 = arith.constant 0 : index
      %383 = vector.load %arg20[%382, %c0_310, %c0_311] : memref<7x7x32xf32, #tpu.memory_space<vmem>>, vector<1x4x32xf32>
      %384 = vector.shape_cast %383 : vector<1x4x32xf32> to vector<4x32xf32>
      %c8_312 = arith.constant 8 : index
      %c0_313 = arith.constant 0 : index
      %c0_314 = arith.constant 0 : index
      %385 = vector.load %arg8[%c8_312, %c0_313, %c0_314] : memref<16x32x16xf32, #tpu.memory_space<vmem>>, vector<1x32x16xf32>
      %386 = vector.shape_cast %385 : vector<1x32x16xf32> to vector<32x16xf32>
      %cst_315 = arith.constant dense<0.000000e+00> : vector<4x16xf32>
      %387 = tpu.matmul %384, %386, %cst_315 {dimension_numbers = #tpu.dot_dimension_numbers<[1], [0], [0], [1], [0, 0, 1, 1], [], []>} : vector<4x32xf32>, vector<32x16xf32>, vector<4x16xf32> -> vector<4x16xf32>
      %388 = arith.addf %379, %387 : vector<4x16xf32>
      %389 = arith.index_cast %381 : i32 to index
      %c1_316 = arith.constant 1 : index
      %c0_317 = arith.constant 0 : index
      %390 = vector.load %arg20[%389, %c1_316, %c0_317] : memref<7x7x32xf32, #tpu.memory_space<vmem>>, vector<1x4x32xf32>
      %391 = vector.shape_cast %390 : vector<1x4x32xf32> to vector<4x32xf32>
      %c9_318 = arith.constant 9 : index
      %c0_319 = arith.constant 0 : index
      %c0_320 = arith.constant 0 : index
      %392 = vector.load %arg8[%c9_318, %c0_319, %c0_320] : memref<16x32x16xf32, #tpu.memory_space<vmem>>, vector<1x32x16xf32>
      %393 = vector.shape_cast %392 : vector<1x32x16xf32> to vector<32x16xf32>
      %cst_321 = arith.constant dense<0.000000e+00> : vector<4x16xf32>
      %394 = tpu.matmul %391, %393, %cst_321 {dimension_numbers = #tpu.dot_dimension_numbers<[1], [0], [0], [1], [0, 0, 1, 1], [], []>} : vector<4x32xf32>, vector<32x16xf32>, vector<4x16xf32> -> vector<4x16xf32>
      %395 = arith.addf %388, %394 : vector<4x16xf32>
      %396 = arith.index_cast %381 : i32 to index
      %c2_322 = arith.constant 2 : index
      %c0_323 = arith.constant 0 : index
      %397 = vector.load %arg20[%396, %c2_322, %c0_323] : memref<7x7x32xf32, #tpu.memory_space<vmem>>, vector<1x4x32xf32>
      %398 = vector.shape_cast %397 : vector<1x4x32xf32> to vector<4x32xf32>
      %c10_324 = arith.constant 10 : index
      %c0_325 = arith.constant 0 : index
      %c0_326 = arith.constant 0 : index
      %399 = vector.load %arg8[%c10_324, %c0_325, %c0_326] : memref<16x32x16xf32, #tpu.memory_space<vmem>>, vector<1x32x16xf32>
      %400 = vector.shape_cast %399 : vector<1x32x16xf32> to vector<32x16xf32>
      %cst_327 = arith.constant dense<0.000000e+00> : vector<4x16xf32>
      %401 = tpu.matmul %398, %400, %cst_327 {dimension_numbers = #tpu.dot_dimension_numbers<[1], [0], [0], [1], [0, 0, 1, 1], [], []>} : vector<4x32xf32>, vector<32x16xf32>, vector<4x16xf32> -> vector<4x16xf32>
      %402 = arith.addf %395, %401 : vector<4x16xf32>
      %403 = arith.index_cast %381 : i32 to index
      %c3_328 = arith.constant 3 : index
      %c0_329 = arith.constant 0 : index
      %404 = vector.load %arg20[%403, %c3_328, %c0_329] : memref<7x7x32xf32, #tpu.memory_space<vmem>>, vector<1x4x32xf32>
      %405 = vector.shape_cast %404 : vector<1x4x32xf32> to vector<4x32xf32>
      %c11_330 = arith.constant 11 : index
      %c0_331 = arith.constant 0 : index
      %c0_332 = arith.constant 0 : index
      %406 = vector.load %arg8[%c11_330, %c0_331, %c0_332] : memref<16x32x16xf32, #tpu.memory_space<vmem>>, vector<1x32x16xf32>
      %407 = vector.shape_cast %406 : vector<1x32x16xf32> to vector<32x16xf32>
      %cst_333 = arith.constant dense<0.000000e+00> : vector<4x16xf32>
      %408 = tpu.matmul %405, %407, %cst_333 {dimension_numbers = #tpu.dot_dimension_numbers<[1], [0], [0], [1], [0, 0, 1, 1], [], []>} : vector<4x32xf32>, vector<32x16xf32>, vector<4x16xf32> -> vector<4x16xf32>
      %409 = arith.addf %402, %408 : vector<4x16xf32>
      %c1_i32_334 = arith.constant 1 : i32
      %410 = arith.muli %c1_i32_334, %arg25 : i32
      %c3_i32_335 = arith.constant 3 : i32
      %411 = arith.addi %410, %c3_i32_335 : i32
      %412 = arith.index_cast %411 : i32 to index
      %c0_336 = arith.constant 0 : index
      %c0_337 = arith.constant 0 : index
      %413 = vector.load %arg20[%412, %c0_336, %c0_337] : memref<7x7x32xf32, #tpu.memory_space<vmem>>, vector<1x4x32xf32>
      %414 = vector.shape_cast %413 : vector<1x4x32xf32> to vector<4x32xf32>
      %c12_338 = arith.constant 12 : index
      %c0_339 = arith.constant 0 : index
      %c0_340 = arith.constant 0 : index
      %415 = vector.load %arg8[%c12_338, %c0_339, %c0_340] : memref<16x32x16xf32, #tpu.memory_space<vmem>>, vector<1x32x16xf32>
      %416 = vector.shape_cast %415 : vector<1x32x16xf32> to vector<32x16xf32>
      %cst_341 = arith.constant dense<0.000000e+00> : vector<4x16xf32>
      %417 = tpu.matmul %414, %416, %cst_341 {dimension_numbers = #tpu.dot_dimension_numbers<[1], [0], [0], [1], [0, 0, 1, 1], [], []>} : vector<4x32xf32>, vector<32x16xf32>, vector<4x16xf32> -> vector<4x16xf32>
      %418 = arith.addf %409, %417 : vector<4x16xf32>
      %419 = arith.index_cast %411 : i32 to index
      %c1_342 = arith.constant 1 : index
      %c0_343 = arith.constant 0 : index
      %420 = vector.load %arg20[%419, %c1_342, %c0_343] : memref<7x7x32xf32, #tpu.memory_space<vmem>>, vector<1x4x32xf32>
      %421 = vector.shape_cast %420 : vector<1x4x32xf32> to vector<4x32xf32>
      %c13_344 = arith.constant 13 : index
      %c0_345 = arith.constant 0 : index
      %c0_346 = arith.constant 0 : index
      %422 = vector.load %arg8[%c13_344, %c0_345, %c0_346] : memref<16x32x16xf32, #tpu.memory_space<vmem>>, vector<1x32x16xf32>
      %423 = vector.shape_cast %422 : vector<1x32x16xf32> to vector<32x16xf32>
      %cst_347 = arith.constant dense<0.000000e+00> : vector<4x16xf32>
      %424 = tpu.matmul %421, %423, %cst_347 {dimension_numbers = #tpu.dot_dimension_numbers<[1], [0], [0], [1], [0, 0, 1, 1], [], []>} : vector<4x32xf32>, vector<32x16xf32>, vector<4x16xf32> -> vector<4x16xf32>
      %425 = arith.addf %418, %424 : vector<4x16xf32>
      %426 = arith.index_cast %411 : i32 to index
      %c2_348 = arith.constant 2 : index
      %c0_349 = arith.constant 0 : index
      %427 = vector.load %arg20[%426, %c2_348, %c0_349] : memref<7x7x32xf32, #tpu.memory_space<vmem>>, vector<1x4x32xf32>
      %428 = vector.shape_cast %427 : vector<1x4x32xf32> to vector<4x32xf32>
      %c14_350 = arith.constant 14 : index
      %c0_351 = arith.constant 0 : index
      %c0_352 = arith.constant 0 : index
      %429 = vector.load %arg8[%c14_350, %c0_351, %c0_352] : memref<16x32x16xf32, #tpu.memory_space<vmem>>, vector<1x32x16xf32>
      %430 = vector.shape_cast %429 : vector<1x32x16xf32> to vector<32x16xf32>
      %cst_353 = arith.constant dense<0.000000e+00> : vector<4x16xf32>
      %431 = tpu.matmul %428, %430, %cst_353 {dimension_numbers = #tpu.dot_dimension_numbers<[1], [0], [0], [1], [0, 0, 1, 1], [], []>} : vector<4x32xf32>, vector<32x16xf32>, vector<4x16xf32> -> vector<4x16xf32>
      %432 = arith.addf %425, %431 : vector<4x16xf32>
      %433 = arith.index_cast %411 : i32 to index
      %c3_354 = arith.constant 3 : index
      %c0_355 = arith.constant 0 : index
      %434 = vector.load %arg20[%433, %c3_354, %c0_355] : memref<7x7x32xf32, #tpu.memory_space<vmem>>, vector<1x4x32xf32>
      %435 = vector.shape_cast %434 : vector<1x4x32xf32> to vector<4x32xf32>
      %c15_356 = arith.constant 15 : index
      %c0_357 = arith.constant 0 : index
      %c0_358 = arith.constant 0 : index
      %436 = vector.load %arg8[%c15_356, %c0_357, %c0_358] : memref<16x32x16xf32, #tpu.memory_space<vmem>>, vector<1x32x16xf32>
      %437 = vector.shape_cast %436 : vector<1x32x16xf32> to vector<32x16xf32>
      %cst_359 = arith.constant dense<0.000000e+00> : vector<4x16xf32>
      %438 = tpu.matmul %435, %437, %cst_359 {dimension_numbers = #tpu.dot_dimension_numbers<[1], [0], [0], [1], [0, 0, 1, 1], [], []>} : vector<4x32xf32>, vector<32x16xf32>, vector<4x16xf32> -> vector<4x16xf32>
      %439 = arith.addf %432, %438 : vector<4x16xf32>
      %cst_360 = arith.constant 0.000000e+00 : f32
      %440 = vector.broadcast %cst_360 : f32 to vector<4x16xf32>
      %441 = arith.maximumf %439, %440 : vector<4x16xf32>
      %442 = arith.index_cast %arg25 : i32 to index
      %c0_361 = arith.constant 0 : index
      %c0_362 = arith.constant 0 : index
      %443 = vector.load %arg21[%442, %c0_361, %c0_362] : memref<4x4x16xf32, #tpu.memory_space<vmem>>, vector<1x4x16xf32>
      %444 = vector.shape_cast %443 : vector<1x4x16xf32> to vector<4x16xf32>
      %445 = vector.shape_cast %441 : vector<4x16xf32> to vector<1x4x16xf32>
      tpu.vector_store %arg21[%442, %c0_361, %c0_362], %445 {strides = array<i32>} : memref<4x4x16xf32, #tpu.memory_space<vmem>>, vector<1x4x16xf32>,
    }
    %c4_i32_151 = arith.constant 4 : i32
    %cst_152 = arith.constant 0.000000e+00 : f32
    %222 = vector.broadcast %cst_152 : f32 to vector<11x11x16xf32>
    %c0_153 = arith.constant 0 : index
    %c0_154 = arith.constant 0 : index
    %c0_155 = arith.constant 0 : index
    %223 = vector.load %arg22[%c0_153, %c0_154, %c0_155] : memref<11x11x16xf32, #tpu.memory_space<vmem>>, vector<11x11x16xf32>
    tpu.vector_store %arg22[%c0_153, %c0_154, %c0_155], %222 {strides = array<i32>} : memref<11x11x16xf32, #tpu.memory_space<vmem>>, vector<11x11x16xf32>,
    %224 = tpu.iota {dimensions = array<i32: 0>} : vector<7x4xi32>
    %225 = tpu.iota {dimensions = array<i32: 1>} : vector<7x4xi32>
    %c2_i32_156 = arith.constant 2 : i32
    %226 = vector.broadcast %c2_i32_156 : i32 to vector<7x4xi32>
    %227 = arith.muli %226, %225 : vector<7x4xi32>
    %228 = arith.cmpi eq, %224, %227 : vector<7x4xi32>
    %229 = arith.extui %228 : vector<7x4xi1> to vector<7x4xi32>
    %230 = arith.sitofp %229 : vector<7x4xi32> to vector<7x4xf32>
    %c0_157 = arith.constant 0 : index
    %c0_158 = arith.constant 0 : index
    %c0_159 = arith.constant 0 : index
    %231 = vector.load %arg21[%c0_157, %c0_158, %c0_159] : memref<4x4x16xf32, #tpu.memory_space<vmem>>, vector<1x4x16xf32>
    %232 = vector.shape_cast %231 : vector<1x4x16xf32> to vector<4x16xf32>
    %cst_160 = arith.constant dense<0.000000e+00> : vector<7x16xf32>
    %233 = tpu.matmul %230, %232, %cst_160 {dimension_numbers = #tpu.dot_dimension_numbers<[1], [0], [0], [1], [0, 0, 1, 1], [], []>} : vector<7x4xf32>, vector<4x16xf32>, vector<7x16xf32> -> vector<7x16xf32>
    %c2_161 = arith.constant 2 : index
    %c2_162 = arith.constant 2 : index
    %c0_163 = arith.constant 0 : index
    %234 = vector.load %arg22[%c2_161, %c2_162, %c0_163] : memref<11x11x16xf32, #tpu.memory_space<vmem>>, vector<1x7x16xf32>
    %235 = vector.shape_cast %234 : vector<1x7x16xf32> to vector<7x16xf32>
    %236 = vector.shape_cast %233 : vector<7x16xf32> to vector<1x7x16xf32>
    tpu.vector_store %arg22[%c2_161, %c2_162, %c0_163], %236 {strides = array<i32>} : memref<11x11x16xf32, #tpu.memory_space<vmem>>, vector<1x7x16xf32>,
    %c1_164 = arith.constant 1 : index
    %c0_165 = arith.constant 0 : index
    %c0_166 = arith.constant 0 : index
    %237 = vector.load %arg21[%c1_164, %c0_165, %c0_166] : memref<4x4x16xf32, #tpu.memory_space<vmem>>, vector<1x4x16xf32>
    %238 = vector.shape_cast %237 : vector<1x4x16xf32> to vector<4x16xf32>
    %cst_167 = arith.constant dense<0.000000e+00> : vector<7x16xf32>
    %239 = tpu.matmul %230, %238, %cst_167 {dimension_numbers = #tpu.dot_dimension_numbers<[1], [0], [0], [1], [0, 0, 1, 1], [], []>} : vector<7x4xf32>, vector<4x16xf32>, vector<7x16xf32> -> vector<7x16xf32>
    %c4_168 = arith.constant 4 : index
    %c2_169 = arith.constant 2 : index
    %c0_170 = arith.constant 0 : index
    %240 = vector.load %arg22[%c4_168, %c2_169, %c0_170] : memref<11x11x16xf32, #tpu.memory_space<vmem>>, vector<1x7x16xf32>
    %241 = vector.shape_cast %240 : vector<1x7x16xf32> to vector<7x16xf32>
    %242 = vector.shape_cast %239 : vector<7x16xf32> to vector<1x7x16xf32>
    tpu.vector_store %arg22[%c4_168, %c2_169, %c0_170], %242 {strides = array<i32>} : memref<11x11x16xf32, #tpu.memory_space<vmem>>, vector<1x7x16xf32>,
    %c2_171 = arith.constant 2 : index
    %c0_172 = arith.constant 0 : index
    %c0_173 = arith.constant 0 : index
    %243 = vector.load %arg21[%c2_171, %c0_172, %c0_173] : memref<4x4x16xf32, #tpu.memory_space<vmem>>, vector<1x4x16xf32>
    %244 = vector.shape_cast %243 : vector<1x4x16xf32> to vector<4x16xf32>
    %cst_174 = arith.constant dense<0.000000e+00> : vector<7x16xf32>
    %245 = tpu.matmul %230, %244, %cst_174 {dimension_numbers = #tpu.dot_dimension_numbers<[1], [0], [0], [1], [0, 0, 1, 1], [], []>} : vector<7x4xf32>, vector<4x16xf32>, vector<7x16xf32> -> vector<7x16xf32>
    %c6_175 = arith.constant 6 : index
    %c2_176 = arith.constant 2 : index
    %c0_177 = arith.constant 0 : index
    %246 = vector.load %arg22[%c6_175, %c2_176, %c0_177] : memref<11x11x16xf32, #tpu.memory_space<vmem>>, vector<1x7x16xf32>
    %247 = vector.shape_cast %246 : vector<1x7x16xf32> to vector<7x16xf32>
    %248 = vector.shape_cast %245 : vector<7x16xf32> to vector<1x7x16xf32>
    tpu.vector_store %arg22[%c6_175, %c2_176, %c0_177], %248 {strides = array<i32>} : memref<11x11x16xf32, #tpu.memory_space<vmem>>, vector<1x7x16xf32>,
    %c3_178 = arith.constant 3 : index
    %c0_179 = arith.constant 0 : index
    %c0_180 = arith.constant 0 : index
    %249 = vector.load %arg21[%c3_178, %c0_179, %c0_180] : memref<4x4x16xf32, #tpu.memory_space<vmem>>, vector<1x4x16xf32>
    %250 = vector.shape_cast %249 : vector<1x4x16xf32> to vector<4x16xf32>
    %cst_181 = arith.constant dense<0.000000e+00> : vector<7x16xf32>
    %251 = tpu.matmul %230, %250, %cst_181 {dimension_numbers = #tpu.dot_dimension_numbers<[1], [0], [0], [1], [0, 0, 1, 1], [], []>} : vector<7x4xf32>, vector<4x16xf32>, vector<7x16xf32> -> vector<7x16xf32>
    %c8_182 = arith.constant 8 : index
    %c2_183 = arith.constant 2 : index
    %c0_184 = arith.constant 0 : index
    %252 = vector.load %arg22[%c8_182, %c2_183, %c0_184] : memref<11x11x16xf32, #tpu.memory_space<vmem>>, vector<1x7x16xf32>
    %253 = vector.shape_cast %252 : vector<1x7x16xf32> to vector<7x16xf32>
    %254 = vector.shape_cast %251 : vector<7x16xf32> to vector<1x7x16xf32>
    tpu.vector_store %arg22[%c8_182, %c2_183, %c0_184], %254 {strides = array<i32>} : memref<11x11x16xf32, #tpu.memory_space<vmem>>, vector<1x7x16xf32>,
    %c0_185 = arith.constant 0 : index
    %c0_186 = arith.constant 0 : index
    %255 = vector.load %arg11[%c0_185, %c0_186] : memref<1x8xf32, #tpu.memory_space<vmem>>, vector<1x8xf32>
    %256 = vector.shape_cast %255 : vector<1x8xf32> to vector<1x8xf32>
    %257 = vector.broadcast %256 : vector<1x8xf32> to vector<8x8xf32>
    %c0_i32_187 = arith.constant 0 : i32
    %c8_i32_188 = arith.constant 8 : i32
    %258 = arith.addi %c0_i32_187, %c8_i32_188 : i32
    %c1_i32_189 = arith.constant 1 : i32
    scf.for %arg25 = %c0_i32_187 to %258 step %c1_i32_189  : i32 {
      %c1_i32_256 = arith.constant 1 : i32
      %320 = arith.muli %c1_i32_256, %arg25 : i32
      %c0_i32_257 = arith.constant 0 : i32
      %321 = arith.addi %320, %c0_i32_257 : i32
      %322 = arith.index_cast %321 : i32 to index
      %c0_258 = arith.constant 0 : index
      %c0_259 = arith.constant 0 : index
      %323 = vector.load %arg22[%322, %c0_258, %c0_259] : memref<11x11x16xf32, #tpu.memory_space<vmem>>, vector<1x8x16xf32>
      %324 = vector.shape_cast %323 : vector<1x8x16xf32> to vector<8x16xf32>
      %c0_260 = arith.constant 0 : index
      %c0_261 = arith.constant 0 : index
      %c0_262 = arith.constant 0 : index
      %325 = vector.load %arg10[%c0_260, %c0_261, %c0_262] : memref<16x16x8xf32, #tpu.memory_space<vmem>>, vector<1x16x8xf32>
      %326 = vector.shape_cast %325 : vector<1x16x8xf32> to vector<16x8xf32>
      %cst_263 = arith.constant dense<0.000000e+00> : vector<8x8xf32>
      %327 = tpu.matmul %324, %326, %cst_263 {dimension_numbers = #tpu.dot_dimension_numbers<[1], [0], [0], [1], [0, 0, 1, 1], [], []>} : vector<8x16xf32>, vector<16x8xf32>, vector<8x8xf32> -> vector<8x8xf32>
      %328 = arith.addf %257, %327 : vector<8x8xf32>
      %329 = arith.index_cast %321 : i32 to index
      %c1_264 = arith.constant 1 : index
      %c0_265 = arith.constant 0 : index
      %330 = vector.load %arg22[%329, %c1_264, %c0_265] : memref<11x11x16xf32, #tpu.memory_space<vmem>>, vector<1x8x16xf32>
      %331 = vector.shape_cast %330 : vector<1x8x16xf32> to vector<8x16xf32>
      %c1_266 = arith.constant 1 : index
      %c0_267 = arith.constant 0 : index
      %c0_268 = arith.constant 0 : index
      %332 = vector.load %arg10[%c1_266, %c0_267, %c0_268] : memref<16x16x8xf32, #tpu.memory_space<vmem>>, vector<1x16x8xf32>
      %333 = vector.shape_cast %332 : vector<1x16x8xf32> to vector<16x8xf32>
      %cst_269 = arith.constant dense<0.000000e+00> : vector<8x8xf32>
      %334 = tpu.matmul %331, %333, %cst_269 {dimension_numbers = #tpu.dot_dimension_numbers<[1], [0], [0], [1], [0, 0, 1, 1], [], []>} : vector<8x16xf32>, vector<16x8xf32>, vector<8x8xf32> -> vector<8x8xf32>
      %335 = arith.addf %328, %334 : vector<8x8xf32>
      %336 = arith.index_cast %321 : i32 to index
      %c2_270 = arith.constant 2 : index
      %c0_271 = arith.constant 0 : index
      %337 = vector.load %arg22[%336, %c2_270, %c0_271] : memref<11x11x16xf32, #tpu.memory_space<vmem>>, vector<1x8x16xf32>
      %338 = vector.shape_cast %337 : vector<1x8x16xf32> to vector<8x16xf32>
      %c2_272 = arith.constant 2 : index
      %c0_273 = arith.constant 0 : index
      %c0_274 = arith.constant 0 : index
      %339 = vector.load %arg10[%c2_272, %c0_273, %c0_274] : memref<16x16x8xf32, #tpu.memory_space<vmem>>, vector<1x16x8xf32>
      %340 = vector.shape_cast %339 : vector<1x16x8xf32> to vector<16x8xf32>
      %cst_275 = arith.constant dense<0.000000e+00> : vector<8x8xf32>
      %341 = tpu.matmul %338, %340, %cst_275 {dimension_numbers = #tpu.dot_dimension_numbers<[1], [0], [0], [1], [0, 0, 1, 1], [], []>} : vector<8x16xf32>, vector<16x8xf32>, vector<8x8xf32> -> vector<8x8xf32>
      %342 = arith.addf %335, %341 : vector<8x8xf32>
      %343 = arith.index_cast %321 : i32 to index
      %c3_276 = arith.constant 3 : index
      %c0_277 = arith.constant 0 : index
      %344 = vector.load %arg22[%343, %c3_276, %c0_277] : memref<11x11x16xf32, #tpu.memory_space<vmem>>, vector<1x8x16xf32>
      %345 = vector.shape_cast %344 : vector<1x8x16xf32> to vector<8x16xf32>
      %c3_278 = arith.constant 3 : index
      %c0_279 = arith.constant 0 : index
      %c0_280 = arith.constant 0 : index
      %346 = vector.load %arg10[%c3_278, %c0_279, %c0_280] : memref<16x16x8xf32, #tpu.memory_space<vmem>>, vector<1x16x8xf32>
      %347 = vector.shape_cast %346 : vector<1x16x8xf32> to vector<16x8xf32>
      %cst_281 = arith.constant dense<0.000000e+00> : vector<8x8xf32>
      %348 = tpu.matmul %345, %347, %cst_281 {dimension_numbers = #tpu.dot_dimension_numbers<[1], [0], [0], [1], [0, 0, 1, 1], [], []>} : vector<8x16xf32>, vector<16x8xf32>, vector<8x8xf32> -> vector<8x8xf32>
      %349 = arith.addf %342, %348 : vector<8x8xf32>
      %c1_i32_282 = arith.constant 1 : i32
      %350 = arith.muli %c1_i32_282, %arg25 : i32
      %c1_i32_283 = arith.constant 1 : i32
      %351 = arith.addi %350, %c1_i32_283 : i32
      %352 = arith.index_cast %351 : i32 to index
      %c0_284 = arith.constant 0 : index
      %c0_285 = arith.constant 0 : index
      %353 = vector.load %arg22[%352, %c0_284, %c0_285] : memref<11x11x16xf32, #tpu.memory_space<vmem>>, vector<1x8x16xf32>
      %354 = vector.shape_cast %353 : vector<1x8x16xf32> to vector<8x16xf32>
      %c4_286 = arith.constant 4 : index
      %c0_287 = arith.constant 0 : index
      %c0_288 = arith.constant 0 : index
      %355 = vector.load %arg10[%c4_286, %c0_287, %c0_288] : memref<16x16x8xf32, #tpu.memory_space<vmem>>, vector<1x16x8xf32>
      %356 = vector.shape_cast %355 : vector<1x16x8xf32> to vector<16x8xf32>
      %cst_289 = arith.constant dense<0.000000e+00> : vector<8x8xf32>
      %357 = tpu.matmul %354, %356, %cst_289 {dimension_numbers = #tpu.dot_dimension_numbers<[1], [0], [0], [1], [0, 0, 1, 1], [], []>} : vector<8x16xf32>, vector<16x8xf32>, vector<8x8xf32> -> vector<8x8xf32>
      %358 = arith.addf %349, %357 : vector<8x8xf32>
      %359 = arith.index_cast %351 : i32 to index
      %c1_290 = arith.constant 1 : index
      %c0_291 = arith.constant 0 : index
      %360 = vector.load %arg22[%359, %c1_290, %c0_291] : memref<11x11x16xf32, #tpu.memory_space<vmem>>, vector<1x8x16xf32>
      %361 = vector.shape_cast %360 : vector<1x8x16xf32> to vector<8x16xf32>
      %c5_292 = arith.constant 5 : index
      %c0_293 = arith.constant 0 : index
      %c0_294 = arith.constant 0 : index
      %362 = vector.load %arg10[%c5_292, %c0_293, %c0_294] : memref<16x16x8xf32, #tpu.memory_space<vmem>>, vector<1x16x8xf32>
      %363 = vector.shape_cast %362 : vector<1x16x8xf32> to vector<16x8xf32>
      %cst_295 = arith.constant dense<0.000000e+00> : vector<8x8xf32>
      %364 = tpu.matmul %361, %363, %cst_295 {dimension_numbers = #tpu.dot_dimension_numbers<[1], [0], [0], [1], [0, 0, 1, 1], [], []>} : vector<8x16xf32>, vector<16x8xf32>, vector<8x8xf32> -> vector<8x8xf32>
      %365 = arith.addf %358, %364 : vector<8x8xf32>
      %366 = arith.index_cast %351 : i32 to index
      %c2_296 = arith.constant 2 : index
      %c0_297 = arith.constant 0 : index
      %367 = vector.load %arg22[%366, %c2_296, %c0_297] : memref<11x11x16xf32, #tpu.memory_space<vmem>>, vector<1x8x16xf32>
      %368 = vector.shape_cast %367 : vector<1x8x16xf32> to vector<8x16xf32>
      %c6_298 = arith.constant 6 : index
      %c0_299 = arith.constant 0 : index
      %c0_300 = arith.constant 0 : index
      %369 = vector.load %arg10[%c6_298, %c0_299, %c0_300] : memref<16x16x8xf32, #tpu.memory_space<vmem>>, vector<1x16x8xf32>
      %370 = vector.shape_cast %369 : vector<1x16x8xf32> to vector<16x8xf32>
      %cst_301 = arith.constant dense<0.000000e+00> : vector<8x8xf32>
      %371 = tpu.matmul %368, %370, %cst_301 {dimension_numbers = #tpu.dot_dimension_numbers<[1], [0], [0], [1], [0, 0, 1, 1], [], []>} : vector<8x16xf32>, vector<16x8xf32>, vector<8x8xf32> -> vector<8x8xf32>
      %372 = arith.addf %365, %371 : vector<8x8xf32>
      %373 = arith.index_cast %351 : i32 to index
      %c3_302 = arith.constant 3 : index
      %c0_303 = arith.constant 0 : index
      %374 = vector.load %arg22[%373, %c3_302, %c0_303] : memref<11x11x16xf32, #tpu.memory_space<vmem>>, vector<1x8x16xf32>
      %375 = vector.shape_cast %374 : vector<1x8x16xf32> to vector<8x16xf32>
      %c7_304 = arith.constant 7 : index
      %c0_305 = arith.constant 0 : index
      %c0_306 = arith.constant 0 : index
      %376 = vector.load %arg10[%c7_304, %c0_305, %c0_306] : memref<16x16x8xf32, #tpu.memory_space<vmem>>, vector<1x16x8xf32>
      %377 = vector.shape_cast %376 : vector<1x16x8xf32> to vector<16x8xf32>
      %cst_307 = arith.constant dense<0.000000e+00> : vector<8x8xf32>
      %378 = tpu.matmul %375, %377, %cst_307 {dimension_numbers = #tpu.dot_dimension_numbers<[1], [0], [0], [1], [0, 0, 1, 1], [], []>} : vector<8x16xf32>, vector<16x8xf32>, vector<8x8xf32> -> vector<8x8xf32>
      %379 = arith.addf %372, %378 : vector<8x8xf32>
      %c1_i32_308 = arith.constant 1 : i32
      %380 = arith.muli %c1_i32_308, %arg25 : i32
      %c2_i32_309 = arith.constant 2 : i32
      %381 = arith.addi %380, %c2_i32_309 : i32
      %382 = arith.index_cast %381 : i32 to index
      %c0_310 = arith.constant 0 : index
      %c0_311 = arith.constant 0 : index
      %383 = vector.load %arg22[%382, %c0_310, %c0_311] : memref<11x11x16xf32, #tpu.memory_space<vmem>>, vector<1x8x16xf32>
      %384 = vector.shape_cast %383 : vector<1x8x16xf32> to vector<8x16xf32>
      %c8_312 = arith.constant 8 : index
      %c0_313 = arith.constant 0 : index
      %c0_314 = arith.constant 0 : index
      %385 = vector.load %arg10[%c8_312, %c0_313, %c0_314] : memref<16x16x8xf32, #tpu.memory_space<vmem>>, vector<1x16x8xf32>
      %386 = vector.shape_cast %385 : vector<1x16x8xf32> to vector<16x8xf32>
      %cst_315 = arith.constant dense<0.000000e+00> : vector<8x8xf32>
      %387 = tpu.matmul %384, %386, %cst_315 {dimension_numbers = #tpu.dot_dimension_numbers<[1], [0], [0], [1], [0, 0, 1, 1], [], []>} : vector<8x16xf32>, vector<16x8xf32>, vector<8x8xf32> -> vector<8x8xf32>
      %388 = arith.addf %379, %387 : vector<8x8xf32>
      %389 = arith.index_cast %381 : i32 to index
      %c1_316 = arith.constant 1 : index
      %c0_317 = arith.constant 0 : index
      %390 = vector.load %arg22[%389, %c1_316, %c0_317] : memref<11x11x16xf32, #tpu.memory_space<vmem>>, vector<1x8x16xf32>
      %391 = vector.shape_cast %390 : vector<1x8x16xf32> to vector<8x16xf32>
      %c9_318 = arith.constant 9 : index
      %c0_319 = arith.constant 0 : index
      %c0_320 = arith.constant 0 : index
      %392 = vector.load %arg10[%c9_318, %c0_319, %c0_320] : memref<16x16x8xf32, #tpu.memory_space<vmem>>, vector<1x16x8xf32>
      %393 = vector.shape_cast %392 : vector<1x16x8xf32> to vector<16x8xf32>
      %cst_321 = arith.constant dense<0.000000e+00> : vector<8x8xf32>
      %394 = tpu.matmul %391, %393, %cst_321 {dimension_numbers = #tpu.dot_dimension_numbers<[1], [0], [0], [1], [0, 0, 1, 1], [], []>} : vector<8x16xf32>, vector<16x8xf32>, vector<8x8xf32> -> vector<8x8xf32>
      %395 = arith.addf %388, %394 : vector<8x8xf32>
      %396 = arith.index_cast %381 : i32 to index
      %c2_322 = arith.constant 2 : index
      %c0_323 = arith.constant 0 : index
      %397 = vector.load %arg22[%396, %c2_322, %c0_323] : memref<11x11x16xf32, #tpu.memory_space<vmem>>, vector<1x8x16xf32>
      %398 = vector.shape_cast %397 : vector<1x8x16xf32> to vector<8x16xf32>
      %c10_324 = arith.constant 10 : index
      %c0_325 = arith.constant 0 : index
      %c0_326 = arith.constant 0 : index
      %399 = vector.load %arg10[%c10_324, %c0_325, %c0_326] : memref<16x16x8xf32, #tpu.memory_space<vmem>>, vector<1x16x8xf32>
      %400 = vector.shape_cast %399 : vector<1x16x8xf32> to vector<16x8xf32>
      %cst_327 = arith.constant dense<0.000000e+00> : vector<8x8xf32>
      %401 = tpu.matmul %398, %400, %cst_327 {dimension_numbers = #tpu.dot_dimension_numbers<[1], [0], [0], [1], [0, 0, 1, 1], [], []>} : vector<8x16xf32>, vector<16x8xf32>, vector<8x8xf32> -> vector<8x8xf32>
      %402 = arith.addf %395, %401 : vector<8x8xf32>
      %403 = arith.index_cast %381 : i32 to index
      %c3_328 = arith.constant 3 : index
      %c0_329 = arith.constant 0 : index
      %404 = vector.load %arg22[%403, %c3_328, %c0_329] : memref<11x11x16xf32, #tpu.memory_space<vmem>>, vector<1x8x16xf32>
      %405 = vector.shape_cast %404 : vector<1x8x16xf32> to vector<8x16xf32>
      %c11_330 = arith.constant 11 : index
      %c0_331 = arith.constant 0 : index
      %c0_332 = arith.constant 0 : index
      %406 = vector.load %arg10[%c11_330, %c0_331, %c0_332] : memref<16x16x8xf32, #tpu.memory_space<vmem>>, vector<1x16x8xf32>
      %407 = vector.shape_cast %406 : vector<1x16x8xf32> to vector<16x8xf32>
      %cst_333 = arith.constant dense<0.000000e+00> : vector<8x8xf32>
      %408 = tpu.matmul %405, %407, %cst_333 {dimension_numbers = #tpu.dot_dimension_numbers<[1], [0], [0], [1], [0, 0, 1, 1], [], []>} : vector<8x16xf32>, vector<16x8xf32>, vector<8x8xf32> -> vector<8x8xf32>
      %409 = arith.addf %402, %408 : vector<8x8xf32>
      %c1_i32_334 = arith.constant 1 : i32
      %410 = arith.muli %c1_i32_334, %arg25 : i32
      %c3_i32_335 = arith.constant 3 : i32
      %411 = arith.addi %410, %c3_i32_335 : i32
      %412 = arith.index_cast %411 : i32 to index
      %c0_336 = arith.constant 0 : index
      %c0_337 = arith.constant 0 : index
      %413 = vector.load %arg22[%412, %c0_336, %c0_337] : memref<11x11x16xf32, #tpu.memory_space<vmem>>, vector<1x8x16xf32>
      %414 = vector.shape_cast %413 : vector<1x8x16xf32> to vector<8x16xf32>
      %c12_338 = arith.constant 12 : index
      %c0_339 = arith.constant 0 : index
      %c0_340 = arith.constant 0 : index
      %415 = vector.load %arg10[%c12_338, %c0_339, %c0_340] : memref<16x16x8xf32, #tpu.memory_space<vmem>>, vector<1x16x8xf32>
      %416 = vector.shape_cast %415 : vector<1x16x8xf32> to vector<16x8xf32>
      %cst_341 = arith.constant dense<0.000000e+00> : vector<8x8xf32>
      %417 = tpu.matmul %414, %416, %cst_341 {dimension_numbers = #tpu.dot_dimension_numbers<[1], [0], [0], [1], [0, 0, 1, 1], [], []>} : vector<8x16xf32>, vector<16x8xf32>, vector<8x8xf32> -> vector<8x8xf32>
      %418 = arith.addf %409, %417 : vector<8x8xf32>
      %419 = arith.index_cast %411 : i32 to index
      %c1_342 = arith.constant 1 : index
      %c0_343 = arith.constant 0 : index
      %420 = vector.load %arg22[%419, %c1_342, %c0_343] : memref<11x11x16xf32, #tpu.memory_space<vmem>>, vector<1x8x16xf32>
      %421 = vector.shape_cast %420 : vector<1x8x16xf32> to vector<8x16xf32>
      %c13_344 = arith.constant 13 : index
      %c0_345 = arith.constant 0 : index
      %c0_346 = arith.constant 0 : index
      %422 = vector.load %arg10[%c13_344, %c0_345, %c0_346] : memref<16x16x8xf32, #tpu.memory_space<vmem>>, vector<1x16x8xf32>
      %423 = vector.shape_cast %422 : vector<1x16x8xf32> to vector<16x8xf32>
      %cst_347 = arith.constant dense<0.000000e+00> : vector<8x8xf32>
      %424 = tpu.matmul %421, %423, %cst_347 {dimension_numbers = #tpu.dot_dimension_numbers<[1], [0], [0], [1], [0, 0, 1, 1], [], []>} : vector<8x16xf32>, vector<16x8xf32>, vector<8x8xf32> -> vector<8x8xf32>
      %425 = arith.addf %418, %424 : vector<8x8xf32>
      %426 = arith.index_cast %411 : i32 to index
      %c2_348 = arith.constant 2 : index
      %c0_349 = arith.constant 0 : index
      %427 = vector.load %arg22[%426, %c2_348, %c0_349] : memref<11x11x16xf32, #tpu.memory_space<vmem>>, vector<1x8x16xf32>
      %428 = vector.shape_cast %427 : vector<1x8x16xf32> to vector<8x16xf32>
      %c14_350 = arith.constant 14 : index
      %c0_351 = arith.constant 0 : index
      %c0_352 = arith.constant 0 : index
      %429 = vector.load %arg10[%c14_350, %c0_351, %c0_352] : memref<16x16x8xf32, #tpu.memory_space<vmem>>, vector<1x16x8xf32>
      %430 = vector.shape_cast %429 : vector<1x16x8xf32> to vector<16x8xf32>
      %cst_353 = arith.constant dense<0.000000e+00> : vector<8x8xf32>
      %431 = tpu.matmul %428, %430, %cst_353 {dimension_numbers = #tpu.dot_dimension_numbers<[1], [0], [0], [1], [0, 0, 1, 1], [], []>} : vector<8x16xf32>, vector<16x8xf32>, vector<8x8xf32> -> vector<8x8xf32>
      %432 = arith.addf %425, %431 : vector<8x8xf32>
      %433 = arith.index_cast %411 : i32 to index
      %c3_354 = arith.constant 3 : index
      %c0_355 = arith.constant 0 : index
      %434 = vector.load %arg22[%433, %c3_354, %c0_355] : memref<11x11x16xf32, #tpu.memory_space<vmem>>, vector<1x8x16xf32>
      %435 = vector.shape_cast %434 : vector<1x8x16xf32> to vector<8x16xf32>
      %c15_356 = arith.constant 15 : index
      %c0_357 = arith.constant 0 : index
      %c0_358 = arith.constant 0 : index
      %436 = vector.load %arg10[%c15_356, %c0_357, %c0_358] : memref<16x16x8xf32, #tpu.memory_space<vmem>>, vector<1x16x8xf32>
      %437 = vector.shape_cast %436 : vector<1x16x8xf32> to vector<16x8xf32>
      %cst_359 = arith.constant dense<0.000000e+00> : vector<8x8xf32>
      %438 = tpu.matmul %435, %437, %cst_359 {dimension_numbers = #tpu.dot_dimension_numbers<[1], [0], [0], [1], [0, 0, 1, 1], [], []>} : vector<8x16xf32>, vector<16x8xf32>, vector<8x8xf32> -> vector<8x8xf32>
      %439 = arith.addf %432, %438 : vector<8x8xf32>
      %cst_360 = arith.constant 0.000000e+00 : f32
      %440 = vector.broadcast %cst_360 : f32 to vector<8x8xf32>
      %441 = arith.maximumf %439, %440 : vector<8x8xf32>
      %442 = arith.index_cast %arg25 : i32 to index
      %c0_361 = arith.constant 0 : index
      %c0_362 = arith.constant 0 : index
      %443 = vector.load %arg23[%442, %c0_361, %c0_362] : memref<8x8x8xf32, #tpu.memory_space<vmem>>, vector<1x8x8xf32>
      %444 = vector.shape_cast %443 : vector<1x8x8xf32> to vector<8x8xf32>
      %445 = vector.shape_cast %441 : vector<8x8xf32> to vector<1x8x8xf32>
      tpu.vector_store %arg23[%442, %c0_361, %c0_362], %445 {strides = array<i32>} : memref<8x8x8xf32, #tpu.memory_space<vmem>>, vector<1x8x8xf32>,
    }
    %c8_i32_190 = arith.constant 8 : i32
    %cst_191 = arith.constant 0.000000e+00 : f32
    %259 = vector.broadcast %cst_191 : f32 to vector<19x19x8xf32>
    %c0_192 = arith.constant 0 : index
    %c0_193 = arith.constant 0 : index
    %c0_194 = arith.constant 0 : index
    %260 = vector.load %arg24[%c0_192, %c0_193, %c0_194] : memref<19x19x8xf32, #tpu.memory_space<vmem>>, vector<19x19x8xf32>
    tpu.vector_store %arg24[%c0_192, %c0_193, %c0_194], %259 {strides = array<i32>} : memref<19x19x8xf32, #tpu.memory_space<vmem>>, vector<19x19x8xf32>,
    %261 = tpu.iota {dimensions = array<i32: 0>} : vector<15x8xi32>
    %262 = tpu.iota {dimensions = array<i32: 1>} : vector<15x8xi32>
    %c2_i32_195 = arith.constant 2 : i32
    %263 = vector.broadcast %c2_i32_195 : i32 to vector<15x8xi32>
    %264 = arith.muli %263, %262 : vector<15x8xi32>
    %265 = arith.cmpi eq, %261, %264 : vector<15x8xi32>
    %266 = arith.extui %265 : vector<15x8xi1> to vector<15x8xi32>
    %267 = arith.sitofp %266 : vector<15x8xi32> to vector<15x8xf32>
    %c0_196 = arith.constant 0 : index
    %c0_197 = arith.constant 0 : index
    %c0_198 = arith.constant 0 : index
    %268 = vector.load %arg23[%c0_196, %c0_197, %c0_198] : memref<8x8x8xf32, #tpu.memory_space<vmem>>, vector<1x8x8xf32>
    %269 = vector.shape_cast %268 : vector<1x8x8xf32> to vector<8x8xf32>
    %cst_199 = arith.constant dense<0.000000e+00> : vector<15x8xf32>
    %270 = tpu.matmul %267, %269, %cst_199 {dimension_numbers = #tpu.dot_dimension_numbers<[1], [0], [0], [1], [0, 0, 1, 1], [], []>} : vector<15x8xf32>, vector<8x8xf32>, vector<15x8xf32> -> vector<15x8xf32>
    %c2_200 = arith.constant 2 : index
    %c2_201 = arith.constant 2 : index
    %c0_202 = arith.constant 0 : index
    %271 = vector.load %arg24[%c2_200, %c2_201, %c0_202] : memref<19x19x8xf32, #tpu.memory_space<vmem>>, vector<1x15x8xf32>
    %272 = vector.shape_cast %271 : vector<1x15x8xf32> to vector<15x8xf32>
    %273 = vector.shape_cast %270 : vector<15x8xf32> to vector<1x15x8xf32>
    tpu.vector_store %arg24[%c2_200, %c2_201, %c0_202], %273 {strides = array<i32>} : memref<19x19x8xf32, #tpu.memory_space<vmem>>, vector<1x15x8xf32>,
    %c1_203 = arith.constant 1 : index
    %c0_204 = arith.constant 0 : index
    %c0_205 = arith.constant 0 : index
    %274 = vector.load %arg23[%c1_203, %c0_204, %c0_205] : memref<8x8x8xf32, #tpu.memory_space<vmem>>, vector<1x8x8xf32>
    %275 = vector.shape_cast %274 : vector<1x8x8xf32> to vector<8x8xf32>
    %cst_206 = arith.constant dense<0.000000e+00> : vector<15x8xf32>
    %276 = tpu.matmul %267, %275, %cst_206 {dimension_numbers = #tpu.dot_dimension_numbers<[1], [0], [0], [1], [0, 0, 1, 1], [], []>} : vector<15x8xf32>, vector<8x8xf32>, vector<15x8xf32> -> vector<15x8xf32>
    %c4_207 = arith.constant 4 : index
    %c2_208 = arith.constant 2 : index
    %c0_209 = arith.constant 0 : index
    %277 = vector.load %arg24[%c4_207, %c2_208, %c0_209] : memref<19x19x8xf32, #tpu.memory_space<vmem>>, vector<1x15x8xf32>
    %278 = vector.shape_cast %277 : vector<1x15x8xf32> to vector<15x8xf32>
    %279 = vector.shape_cast %276 : vector<15x8xf32> to vector<1x15x8xf32>
    tpu.vector_store %arg24[%c4_207, %c2_208, %c0_209], %279 {strides = array<i32>} : memref<19x19x8xf32, #tpu.memory_space<vmem>>, vector<1x15x8xf32>,
    %c2_210 = arith.constant 2 : index
    %c0_211 = arith.constant 0 : index
    %c0_212 = arith.constant 0 : index
    %280 = vector.load %arg23[%c2_210, %c0_211, %c0_212] : memref<8x8x8xf32, #tpu.memory_space<vmem>>, vector<1x8x8xf32>
    %281 = vector.shape_cast %280 : vector<1x8x8xf32> to vector<8x8xf32>
    %cst_213 = arith.constant dense<0.000000e+00> : vector<15x8xf32>
    %282 = tpu.matmul %267, %281, %cst_213 {dimension_numbers = #tpu.dot_dimension_numbers<[1], [0], [0], [1], [0, 0, 1, 1], [], []>} : vector<15x8xf32>, vector<8x8xf32>, vector<15x8xf32> -> vector<15x8xf32>
    %c6_214 = arith.constant 6 : index
    %c2_215 = arith.constant 2 : index
    %c0_216 = arith.constant 0 : index
    %283 = vector.load %arg24[%c6_214, %c2_215, %c0_216] : memref<19x19x8xf32, #tpu.memory_space<vmem>>, vector<1x15x8xf32>
    %284 = vector.shape_cast %283 : vector<1x15x8xf32> to vector<15x8xf32>
    %285 = vector.shape_cast %282 : vector<15x8xf32> to vector<1x15x8xf32>
    tpu.vector_store %arg24[%c6_214, %c2_215, %c0_216], %285 {strides = array<i32>} : memref<19x19x8xf32, #tpu.memory_space<vmem>>, vector<1x15x8xf32>,
    %c3_217 = arith.constant 3 : index
    %c0_218 = arith.constant 0 : index
    %c0_219 = arith.constant 0 : index
    %286 = vector.load %arg23[%c3_217, %c0_218, %c0_219] : memref<8x8x8xf32, #tpu.memory_space<vmem>>, vector<1x8x8xf32>
    %287 = vector.shape_cast %286 : vector<1x8x8xf32> to vector<8x8xf32>
    %cst_220 = arith.constant dense<0.000000e+00> : vector<15x8xf32>
    %288 = tpu.matmul %267, %287, %cst_220 {dimension_numbers = #tpu.dot_dimension_numbers<[1], [0], [0], [1], [0, 0, 1, 1], [], []>} : vector<15x8xf32>, vector<8x8xf32>, vector<15x8xf32> -> vector<15x8xf32>
    %c8_221 = arith.constant 8 : index
    %c2_222 = arith.constant 2 : index
    %c0_223 = arith.constant 0 : index
    %289 = vector.load %arg24[%c8_221, %c2_222, %c0_223] : memref<19x19x8xf32, #tpu.memory_space<vmem>>, vector<1x15x8xf32>
    %290 = vector.shape_cast %289 : vector<1x15x8xf32> to vector<15x8xf32>
    %291 = vector.shape_cast %288 : vector<15x8xf32> to vector<1x15x8xf32>
    tpu.vector_store %arg24[%c8_221, %c2_222, %c0_223], %291 {strides = array<i32>} : memref<19x19x8xf32, #tpu.memory_space<vmem>>, vector<1x15x8xf32>,
    %c4_224 = arith.constant 4 : index
    %c0_225 = arith.constant 0 : index
    %c0_226 = arith.constant 0 : index
    %292 = vector.load %arg23[%c4_224, %c0_225, %c0_226] : memref<8x8x8xf32, #tpu.memory_space<vmem>>, vector<1x8x8xf32>
    %293 = vector.shape_cast %292 : vector<1x8x8xf32> to vector<8x8xf32>
    %cst_227 = arith.constant dense<0.000000e+00> : vector<15x8xf32>
    %294 = tpu.matmul %267, %293, %cst_227 {dimension_numbers = #tpu.dot_dimension_numbers<[1], [0], [0], [1], [0, 0, 1, 1], [], []>} : vector<15x8xf32>, vector<8x8xf32>, vector<15x8xf32> -> vector<15x8xf32>
    %c10_228 = arith.constant 10 : index
    %c2_229 = arith.constant 2 : index
    %c0_230 = arith.constant 0 : index
    %295 = vector.load %arg24[%c10_228, %c2_229, %c0_230] : memref<19x19x8xf32, #tpu.memory_space<vmem>>, vector<1x15x8xf32>
    %296 = vector.shape_cast %295 : vector<1x15x8xf32> to vector<15x8xf32>
    %297 = vector.shape_cast %294 : vector<15x8xf32> to vector<1x15x8xf32>
    tpu.vector_store %arg24[%c10_228, %c2_229, %c0_230], %297 {strides = array<i32>} : memref<19x19x8xf32, #tpu.memory_space<vmem>>, vector<1x15x8xf32>,
    %c5_231 = arith.constant 5 : index
    %c0_232 = arith.constant 0 : index
    %c0_233 = arith.constant 0 : index
    %298 = vector.load %arg23[%c5_231, %c0_232, %c0_233] : memref<8x8x8xf32, #tpu.memory_space<vmem>>, vector<1x8x8xf32>
    %299 = vector.shape_cast %298 : vector<1x8x8xf32> to vector<8x8xf32>
    %cst_234 = arith.constant dense<0.000000e+00> : vector<15x8xf32>
    %300 = tpu.matmul %267, %299, %cst_234 {dimension_numbers = #tpu.dot_dimension_numbers<[1], [0], [0], [1], [0, 0, 1, 1], [], []>} : vector<15x8xf32>, vector<8x8xf32>, vector<15x8xf32> -> vector<15x8xf32>
    %c12_235 = arith.constant 12 : index
    %c2_236 = arith.constant 2 : index
    %c0_237 = arith.constant 0 : index
    %301 = vector.load %arg24[%c12_235, %c2_236, %c0_237] : memref<19x19x8xf32, #tpu.memory_space<vmem>>, vector<1x15x8xf32>
    %302 = vector.shape_cast %301 : vector<1x15x8xf32> to vector<15x8xf32>
    %303 = vector.shape_cast %300 : vector<15x8xf32> to vector<1x15x8xf32>
    tpu.vector_store %arg24[%c12_235, %c2_236, %c0_237], %303 {strides = array<i32>} : memref<19x19x8xf32, #tpu.memory_space<vmem>>, vector<1x15x8xf32>,
    %c6_238 = arith.constant 6 : index
    %c0_239 = arith.constant 0 : index
    %c0_240 = arith.constant 0 : index
    %304 = vector.load %arg23[%c6_238, %c0_239, %c0_240] : memref<8x8x8xf32, #tpu.memory_space<vmem>>, vector<1x8x8xf32>
    %305 = vector.shape_cast %304 : vector<1x8x8xf32> to vector<8x8xf32>
    %cst_241 = arith.constant dense<0.000000e+00> : vector<15x8xf32>
    %306 = tpu.matmul %267, %305, %cst_241 {dimension_numbers = #tpu.dot_dimension_numbers<[1], [0], [0], [1], [0, 0, 1, 1], [], []>} : vector<15x8xf32>, vector<8x8xf32>, vector<15x8xf32> -> vector<15x8xf32>
    %c14_242 = arith.constant 14 : index
    %c2_243 = arith.constant 2 : index
    %c0_244 = arith.constant 0 : index
    %307 = vector.load %arg24[%c14_242, %c2_243, %c0_244] : memref<19x19x8xf32, #tpu.memory_space<vmem>>, vector<1x15x8xf32>
    %308 = vector.shape_cast %307 : vector<1x15x8xf32> to vector<15x8xf32>
    %309 = vector.shape_cast %306 : vector<15x8xf32> to vector<1x15x8xf32>
    tpu.vector_store %arg24[%c14_242, %c2_243, %c0_244], %309 {strides = array<i32>} : memref<19x19x8xf32, #tpu.memory_space<vmem>>, vector<1x15x8xf32>,
    %c7_245 = arith.constant 7 : index
    %c0_246 = arith.constant 0 : index
    %c0_247 = arith.constant 0 : index
    %310 = vector.load %arg23[%c7_245, %c0_246, %c0_247] : memref<8x8x8xf32, #tpu.memory_space<vmem>>, vector<1x8x8xf32>
    %311 = vector.shape_cast %310 : vector<1x8x8xf32> to vector<8x8xf32>
    %cst_248 = arith.constant dense<0.000000e+00> : vector<15x8xf32>
    %312 = tpu.matmul %267, %311, %cst_248 {dimension_numbers = #tpu.dot_dimension_numbers<[1], [0], [0], [1], [0, 0, 1, 1], [], []>} : vector<15x8xf32>, vector<8x8xf32>, vector<15x8xf32> -> vector<15x8xf32>
    %c16 = arith.constant 16 : index
    %c2_249 = arith.constant 2 : index
    %c0_250 = arith.constant 0 : index
    %313 = vector.load %arg24[%c16, %c2_249, %c0_250] : memref<19x19x8xf32, #tpu.memory_space<vmem>>, vector<1x15x8xf32>
    %314 = vector.shape_cast %313 : vector<1x15x8xf32> to vector<15x8xf32>
    %315 = vector.shape_cast %312 : vector<15x8xf32> to vector<1x15x8xf32>
    tpu.vector_store %arg24[%c16, %c2_249, %c0_250], %315 {strides = array<i32>} : memref<19x19x8xf32, #tpu.memory_space<vmem>>, vector<1x15x8xf32>,
    %c0_251 = arith.constant 0 : index
    %c0_252 = arith.constant 0 : index
    %316 = vector.load %arg13[%c0_251, %c0_252] : memref<1x4xf32, #tpu.memory_space<vmem>>, vector<1x4xf32>
    %317 = vector.shape_cast %316 : vector<1x4xf32> to vector<1x4xf32>
    %318 = vector.broadcast %317 : vector<1x4xf32> to vector<16x4xf32>
    %c0_i32_253 = arith.constant 0 : i32
    %c16_i32 = arith.constant 16 : i32
    %319 = arith.addi %c0_i32_253, %c16_i32 : i32
    %c1_i32_254 = arith.constant 1 : i32
    scf.for %arg25 = %c0_i32_253 to %319 step %c1_i32_254  : i32 {
      %c1_i32_256 = arith.constant 1 : i32
      %320 = arith.muli %c1_i32_256, %arg25 : i32
      %c0_i32_257 = arith.constant 0 : i32
      %321 = arith.addi %320, %c0_i32_257 : i32
      %322 = arith.index_cast %321 : i32 to index
      %c0_258 = arith.constant 0 : index
      %c0_259 = arith.constant 0 : index
      %323 = vector.load %arg24[%322, %c0_258, %c0_259] : memref<19x19x8xf32, #tpu.memory_space<vmem>>, vector<1x16x8xf32>
      %324 = vector.shape_cast %323 : vector<1x16x8xf32> to vector<16x8xf32>
      %c0_260 = arith.constant 0 : index
      %c0_261 = arith.constant 0 : index
      %c0_262 = arith.constant 0 : index
      %325 = vector.load %arg12[%c0_260, %c0_261, %c0_262] : memref<16x8x4xf32, #tpu.memory_space<vmem>>, vector<1x8x4xf32>
      %326 = vector.shape_cast %325 : vector<1x8x4xf32> to vector<8x4xf32>
      %cst_263 = arith.constant dense<0.000000e+00> : vector<16x4xf32>
      %327 = tpu.matmul %324, %326, %cst_263 {dimension_numbers = #tpu.dot_dimension_numbers<[1], [0], [0], [1], [0, 0, 1, 1], [], []>} : vector<16x8xf32>, vector<8x4xf32>, vector<16x4xf32> -> vector<16x4xf32>
      %328 = arith.addf %318, %327 : vector<16x4xf32>
      %329 = arith.index_cast %321 : i32 to index
      %c1_264 = arith.constant 1 : index
      %c0_265 = arith.constant 0 : index
      %330 = vector.load %arg24[%329, %c1_264, %c0_265] : memref<19x19x8xf32, #tpu.memory_space<vmem>>, vector<1x16x8xf32>
      %331 = vector.shape_cast %330 : vector<1x16x8xf32> to vector<16x8xf32>
      %c1_266 = arith.constant 1 : index
      %c0_267 = arith.constant 0 : index
      %c0_268 = arith.constant 0 : index
      %332 = vector.load %arg12[%c1_266, %c0_267, %c0_268] : memref<16x8x4xf32, #tpu.memory_space<vmem>>, vector<1x8x4xf32>
      %333 = vector.shape_cast %332 : vector<1x8x4xf32> to vector<8x4xf32>
      %cst_269 = arith.constant dense<0.000000e+00> : vector<16x4xf32>
      %334 = tpu.matmul %331, %333, %cst_269 {dimension_numbers = #tpu.dot_dimension_numbers<[1], [0], [0], [1], [0, 0, 1, 1], [], []>} : vector<16x8xf32>, vector<8x4xf32>, vector<16x4xf32> -> vector<16x4xf32>
      %335 = arith.addf %328, %334 : vector<16x4xf32>
      %336 = arith.index_cast %321 : i32 to index
      %c2_270 = arith.constant 2 : index
      %c0_271 = arith.constant 0 : index
      %337 = vector.load %arg24[%336, %c2_270, %c0_271] : memref<19x19x8xf32, #tpu.memory_space<vmem>>, vector<1x16x8xf32>
      %338 = vector.shape_cast %337 : vector<1x16x8xf32> to vector<16x8xf32>
      %c2_272 = arith.constant 2 : index
      %c0_273 = arith.constant 0 : index
      %c0_274 = arith.constant 0 : index
      %339 = vector.load %arg12[%c2_272, %c0_273, %c0_274] : memref<16x8x4xf32, #tpu.memory_space<vmem>>, vector<1x8x4xf32>
      %340 = vector.shape_cast %339 : vector<1x8x4xf32> to vector<8x4xf32>
      %cst_275 = arith.constant dense<0.000000e+00> : vector<16x4xf32>
      %341 = tpu.matmul %338, %340, %cst_275 {dimension_numbers = #tpu.dot_dimension_numbers<[1], [0], [0], [1], [0, 0, 1, 1], [], []>} : vector<16x8xf32>, vector<8x4xf32>, vector<16x4xf32> -> vector<16x4xf32>
      %342 = arith.addf %335, %341 : vector<16x4xf32>
      %343 = arith.index_cast %321 : i32 to index
      %c3_276 = arith.constant 3 : index
      %c0_277 = arith.constant 0 : index
      %344 = vector.load %arg24[%343, %c3_276, %c0_277] : memref<19x19x8xf32, #tpu.memory_space<vmem>>, vector<1x16x8xf32>
      %345 = vector.shape_cast %344 : vector<1x16x8xf32> to vector<16x8xf32>
      %c3_278 = arith.constant 3 : index
      %c0_279 = arith.constant 0 : index
      %c0_280 = arith.constant 0 : index
      %346 = vector.load %arg12[%c3_278, %c0_279, %c0_280] : memref<16x8x4xf32, #tpu.memory_space<vmem>>, vector<1x8x4xf32>
      %347 = vector.shape_cast %346 : vector<1x8x4xf32> to vector<8x4xf32>
      %cst_281 = arith.constant dense<0.000000e+00> : vector<16x4xf32>
      %348 = tpu.matmul %345, %347, %cst_281 {dimension_numbers = #tpu.dot_dimension_numbers<[1], [0], [0], [1], [0, 0, 1, 1], [], []>} : vector<16x8xf32>, vector<8x4xf32>, vector<16x4xf32> -> vector<16x4xf32>
      %349 = arith.addf %342, %348 : vector<16x4xf32>
      %c1_i32_282 = arith.constant 1 : i32
      %350 = arith.muli %c1_i32_282, %arg25 : i32
      %c1_i32_283 = arith.constant 1 : i32
      %351 = arith.addi %350, %c1_i32_283 : i32
      %352 = arith.index_cast %351 : i32 to index
      %c0_284 = arith.constant 0 : index
      %c0_285 = arith.constant 0 : index
      %353 = vector.load %arg24[%352, %c0_284, %c0_285] : memref<19x19x8xf32, #tpu.memory_space<vmem>>, vector<1x16x8xf32>
      %354 = vector.shape_cast %353 : vector<1x16x8xf32> to vector<16x8xf32>
      %c4_286 = arith.constant 4 : index
      %c0_287 = arith.constant 0 : index
      %c0_288 = arith.constant 0 : index
      %355 = vector.load %arg12[%c4_286, %c0_287, %c0_288] : memref<16x8x4xf32, #tpu.memory_space<vmem>>, vector<1x8x4xf32>
      %356 = vector.shape_cast %355 : vector<1x8x4xf32> to vector<8x4xf32>
      %cst_289 = arith.constant dense<0.000000e+00> : vector<16x4xf32>
      %357 = tpu.matmul %354, %356, %cst_289 {dimension_numbers = #tpu.dot_dimension_numbers<[1], [0], [0], [1], [0, 0, 1, 1], [], []>} : vector<16x8xf32>, vector<8x4xf32>, vector<16x4xf32> -> vector<16x4xf32>
      %358 = arith.addf %349, %357 : vector<16x4xf32>
      %359 = arith.index_cast %351 : i32 to index
      %c1_290 = arith.constant 1 : index
      %c0_291 = arith.constant 0 : index
      %360 = vector.load %arg24[%359, %c1_290, %c0_291] : memref<19x19x8xf32, #tpu.memory_space<vmem>>, vector<1x16x8xf32>
      %361 = vector.shape_cast %360 : vector<1x16x8xf32> to vector<16x8xf32>
      %c5_292 = arith.constant 5 : index
      %c0_293 = arith.constant 0 : index
      %c0_294 = arith.constant 0 : index
      %362 = vector.load %arg12[%c5_292, %c0_293, %c0_294] : memref<16x8x4xf32, #tpu.memory_space<vmem>>, vector<1x8x4xf32>
      %363 = vector.shape_cast %362 : vector<1x8x4xf32> to vector<8x4xf32>
      %cst_295 = arith.constant dense<0.000000e+00> : vector<16x4xf32>
      %364 = tpu.matmul %361, %363, %cst_295 {dimension_numbers = #tpu.dot_dimension_numbers<[1], [0], [0], [1], [0, 0, 1, 1], [], []>} : vector<16x8xf32>, vector<8x4xf32>, vector<16x4xf32> -> vector<16x4xf32>
      %365 = arith.addf %358, %364 : vector<16x4xf32>
      %366 = arith.index_cast %351 : i32 to index
      %c2_296 = arith.constant 2 : index
      %c0_297 = arith.constant 0 : index
      %367 = vector.load %arg24[%366, %c2_296, %c0_297] : memref<19x19x8xf32, #tpu.memory_space<vmem>>, vector<1x16x8xf32>
      %368 = vector.shape_cast %367 : vector<1x16x8xf32> to vector<16x8xf32>
      %c6_298 = arith.constant 6 : index
      %c0_299 = arith.constant 0 : index
      %c0_300 = arith.constant 0 : index
      %369 = vector.load %arg12[%c6_298, %c0_299, %c0_300] : memref<16x8x4xf32, #tpu.memory_space<vmem>>, vector<1x8x4xf32>
      %370 = vector.shape_cast %369 : vector<1x8x4xf32> to vector<8x4xf32>
      %cst_301 = arith.constant dense<0.000000e+00> : vector<16x4xf32>
      %371 = tpu.matmul %368, %370, %cst_301 {dimension_numbers = #tpu.dot_dimension_numbers<[1], [0], [0], [1], [0, 0, 1, 1], [], []>} : vector<16x8xf32>, vector<8x4xf32>, vector<16x4xf32> -> vector<16x4xf32>
      %372 = arith.addf %365, %371 : vector<16x4xf32>
      %373 = arith.index_cast %351 : i32 to index
      %c3_302 = arith.constant 3 : index
      %c0_303 = arith.constant 0 : index
      %374 = vector.load %arg24[%373, %c3_302, %c0_303] : memref<19x19x8xf32, #tpu.memory_space<vmem>>, vector<1x16x8xf32>
      %375 = vector.shape_cast %374 : vector<1x16x8xf32> to vector<16x8xf32>
      %c7_304 = arith.constant 7 : index
      %c0_305 = arith.constant 0 : index
      %c0_306 = arith.constant 0 : index
      %376 = vector.load %arg12[%c7_304, %c0_305, %c0_306] : memref<16x8x4xf32, #tpu.memory_space<vmem>>, vector<1x8x4xf32>
      %377 = vector.shape_cast %376 : vector<1x8x4xf32> to vector<8x4xf32>
      %cst_307 = arith.constant dense<0.000000e+00> : vector<16x4xf32>
      %378 = tpu.matmul %375, %377, %cst_307 {dimension_numbers = #tpu.dot_dimension_numbers<[1], [0], [0], [1], [0, 0, 1, 1], [], []>} : vector<16x8xf32>, vector<8x4xf32>, vector<16x4xf32> -> vector<16x4xf32>
      %379 = arith.addf %372, %378 : vector<16x4xf32>
      %c1_i32_308 = arith.constant 1 : i32
      %380 = arith.muli %c1_i32_308, %arg25 : i32
      %c2_i32_309 = arith.constant 2 : i32
      %381 = arith.addi %380, %c2_i32_309 : i32
      %382 = arith.index_cast %381 : i32 to index
      %c0_310 = arith.constant 0 : index
      %c0_311 = arith.constant 0 : index
      %383 = vector.load %arg24[%382, %c0_310, %c0_311] : memref<19x19x8xf32, #tpu.memory_space<vmem>>, vector<1x16x8xf32>
      %384 = vector.shape_cast %383 : vector<1x16x8xf32> to vector<16x8xf32>
      %c8_312 = arith.constant 8 : index
      %c0_313 = arith.constant 0 : index
      %c0_314 = arith.constant 0 : index
      %385 = vector.load %arg12[%c8_312, %c0_313, %c0_314] : memref<16x8x4xf32, #tpu.memory_space<vmem>>, vector<1x8x4xf32>
      %386 = vector.shape_cast %385 : vector<1x8x4xf32> to vector<8x4xf32>
      %cst_315 = arith.constant dense<0.000000e+00> : vector<16x4xf32>
      %387 = tpu.matmul %384, %386, %cst_315 {dimension_numbers = #tpu.dot_dimension_numbers<[1], [0], [0], [1], [0, 0, 1, 1], [], []>} : vector<16x8xf32>, vector<8x4xf32>, vector<16x4xf32> -> vector<16x4xf32>
      %388 = arith.addf %379, %387 : vector<16x4xf32>
      %389 = arith.index_cast %381 : i32 to index
      %c1_316 = arith.constant 1 : index
      %c0_317 = arith.constant 0 : index
      %390 = vector.load %arg24[%389, %c1_316, %c0_317] : memref<19x19x8xf32, #tpu.memory_space<vmem>>, vector<1x16x8xf32>
      %391 = vector.shape_cast %390 : vector<1x16x8xf32> to vector<16x8xf32>
      %c9_318 = arith.constant 9 : index
      %c0_319 = arith.constant 0 : index
      %c0_320 = arith.constant 0 : index
      %392 = vector.load %arg12[%c9_318, %c0_319, %c0_320] : memref<16x8x4xf32, #tpu.memory_space<vmem>>, vector<1x8x4xf32>
      %393 = vector.shape_cast %392 : vector<1x8x4xf32> to vector<8x4xf32>
      %cst_321 = arith.constant dense<0.000000e+00> : vector<16x4xf32>
      %394 = tpu.matmul %391, %393, %cst_321 {dimension_numbers = #tpu.dot_dimension_numbers<[1], [0], [0], [1], [0, 0, 1, 1], [], []>} : vector<16x8xf32>, vector<8x4xf32>, vector<16x4xf32> -> vector<16x4xf32>
      %395 = arith.addf %388, %394 : vector<16x4xf32>
      %396 = arith.index_cast %381 : i32 to index
      %c2_322 = arith.constant 2 : index
      %c0_323 = arith.constant 0 : index
      %397 = vector.load %arg24[%396, %c2_322, %c0_323] : memref<19x19x8xf32, #tpu.memory_space<vmem>>, vector<1x16x8xf32>
      %398 = vector.shape_cast %397 : vector<1x16x8xf32> to vector<16x8xf32>
      %c10_324 = arith.constant 10 : index
      %c0_325 = arith.constant 0 : index
      %c0_326 = arith.constant 0 : index
      %399 = vector.load %arg12[%c10_324, %c0_325, %c0_326] : memref<16x8x4xf32, #tpu.memory_space<vmem>>, vector<1x8x4xf32>
      %400 = vector.shape_cast %399 : vector<1x8x4xf32> to vector<8x4xf32>
      %cst_327 = arith.constant dense<0.000000e+00> : vector<16x4xf32>
      %401 = tpu.matmul %398, %400, %cst_327 {dimension_numbers = #tpu.dot_dimension_numbers<[1], [0], [0], [1], [0, 0, 1, 1], [], []>} : vector<16x8xf32>, vector<8x4xf32>, vector<16x4xf32> -> vector<16x4xf32>
      %402 = arith.addf %395, %401 : vector<16x4xf32>
      %403 = arith.index_cast %381 : i32 to index
      %c3_328 = arith.constant 3 : index
      %c0_329 = arith.constant 0 : index
      %404 = vector.load %arg24[%403, %c3_328, %c0_329] : memref<19x19x8xf32, #tpu.memory_space<vmem>>, vector<1x16x8xf32>
      %405 = vector.shape_cast %404 : vector<1x16x8xf32> to vector<16x8xf32>
      %c11_330 = arith.constant 11 : index
      %c0_331 = arith.constant 0 : index
      %c0_332 = arith.constant 0 : index
      %406 = vector.load %arg12[%c11_330, %c0_331, %c0_332] : memref<16x8x4xf32, #tpu.memory_space<vmem>>, vector<1x8x4xf32>
      %407 = vector.shape_cast %406 : vector<1x8x4xf32> to vector<8x4xf32>
      %cst_333 = arith.constant dense<0.000000e+00> : vector<16x4xf32>
      %408 = tpu.matmul %405, %407, %cst_333 {dimension_numbers = #tpu.dot_dimension_numbers<[1], [0], [0], [1], [0, 0, 1, 1], [], []>} : vector<16x8xf32>, vector<8x4xf32>, vector<16x4xf32> -> vector<16x4xf32>
      %409 = arith.addf %402, %408 : vector<16x4xf32>
      %c1_i32_334 = arith.constant 1 : i32
      %410 = arith.muli %c1_i32_334, %arg25 : i32
      %c3_i32_335 = arith.constant 3 : i32
      %411 = arith.addi %410, %c3_i32_335 : i32
      %412 = arith.index_cast %411 : i32 to index
      %c0_336 = arith.constant 0 : index
      %c0_337 = arith.constant 0 : index
      %413 = vector.load %arg24[%412, %c0_336, %c0_337] : memref<19x19x8xf32, #tpu.memory_space<vmem>>, vector<1x16x8xf32>
      %414 = vector.shape_cast %413 : vector<1x16x8xf32> to vector<16x8xf32>
      %c12_338 = arith.constant 12 : index
      %c0_339 = arith.constant 0 : index
      %c0_340 = arith.constant 0 : index
      %415 = vector.load %arg12[%c12_338, %c0_339, %c0_340] : memref<16x8x4xf32, #tpu.memory_space<vmem>>, vector<1x8x4xf32>
      %416 = vector.shape_cast %415 : vector<1x8x4xf32> to vector<8x4xf32>
      %cst_341 = arith.constant dense<0.000000e+00> : vector<16x4xf32>
      %417 = tpu.matmul %414, %416, %cst_341 {dimension_numbers = #tpu.dot_dimension_numbers<[1], [0], [0], [1], [0, 0, 1, 1], [], []>} : vector<16x8xf32>, vector<8x4xf32>, vector<16x4xf32> -> vector<16x4xf32>
      %418 = arith.addf %409, %417 : vector<16x4xf32>
      %419 = arith.index_cast %411 : i32 to index
      %c1_342 = arith.constant 1 : index
      %c0_343 = arith.constant 0 : index
      %420 = vector.load %arg24[%419, %c1_342, %c0_343] : memref<19x19x8xf32, #tpu.memory_space<vmem>>, vector<1x16x8xf32>
      %421 = vector.shape_cast %420 : vector<1x16x8xf32> to vector<16x8xf32>
      %c13_344 = arith.constant 13 : index
      %c0_345 = arith.constant 0 : index
      %c0_346 = arith.constant 0 : index
      %422 = vector.load %arg12[%c13_344, %c0_345, %c0_346] : memref<16x8x4xf32, #tpu.memory_space<vmem>>, vector<1x8x4xf32>
      %423 = vector.shape_cast %422 : vector<1x8x4xf32> to vector<8x4xf32>
      %cst_347 = arith.constant dense<0.000000e+00> : vector<16x4xf32>
      %424 = tpu.matmul %421, %423, %cst_347 {dimension_numbers = #tpu.dot_dimension_numbers<[1], [0], [0], [1], [0, 0, 1, 1], [], []>} : vector<16x8xf32>, vector<8x4xf32>, vector<16x4xf32> -> vector<16x4xf32>
      %425 = arith.addf %418, %424 : vector<16x4xf32>
      %426 = arith.index_cast %411 : i32 to index
      %c2_348 = arith.constant 2 : index
      %c0_349 = arith.constant 0 : index
      %427 = vector.load %arg24[%426, %c2_348, %c0_349] : memref<19x19x8xf32, #tpu.memory_space<vmem>>, vector<1x16x8xf32>
      %428 = vector.shape_cast %427 : vector<1x16x8xf32> to vector<16x8xf32>
      %c14_350 = arith.constant 14 : index
      %c0_351 = arith.constant 0 : index
      %c0_352 = arith.constant 0 : index
      %429 = vector.load %arg12[%c14_350, %c0_351, %c0_352] : memref<16x8x4xf32, #tpu.memory_space<vmem>>, vector<1x8x4xf32>
      %430 = vector.shape_cast %429 : vector<1x8x4xf32> to vector<8x4xf32>
      %cst_353 = arith.constant dense<0.000000e+00> : vector<16x4xf32>
      %431 = tpu.matmul %428, %430, %cst_353 {dimension_numbers = #tpu.dot_dimension_numbers<[1], [0], [0], [1], [0, 0, 1, 1], [], []>} : vector<16x8xf32>, vector<8x4xf32>, vector<16x4xf32> -> vector<16x4xf32>
      %432 = arith.addf %425, %431 : vector<16x4xf32>
      %433 = arith.index_cast %411 : i32 to index
      %c3_354 = arith.constant 3 : index
      %c0_355 = arith.constant 0 : index
      %434 = vector.load %arg24[%433, %c3_354, %c0_355] : memref<19x19x8xf32, #tpu.memory_space<vmem>>, vector<1x16x8xf32>
      %435 = vector.shape_cast %434 : vector<1x16x8xf32> to vector<16x8xf32>
      %c15_356 = arith.constant 15 : index
      %c0_357 = arith.constant 0 : index
      %c0_358 = arith.constant 0 : index
      %436 = vector.load %arg12[%c15_356, %c0_357, %c0_358] : memref<16x8x4xf32, #tpu.memory_space<vmem>>, vector<1x8x4xf32>
      %437 = vector.shape_cast %436 : vector<1x8x4xf32> to vector<8x4xf32>
      %cst_359 = arith.constant dense<0.000000e+00> : vector<16x4xf32>
      %438 = tpu.matmul %435, %437, %cst_359 {dimension_numbers = #tpu.dot_dimension_numbers<[1], [0], [0], [1], [0, 0, 1, 1], [], []>} : vector<16x8xf32>, vector<8x4xf32>, vector<16x4xf32> -> vector<16x4xf32>
      %439 = arith.addf %432, %438 : vector<16x4xf32>
      %c0_360 = arith.constant 0 : index
      %440 = arith.index_cast %arg25 : i32 to index
      %c0_361 = arith.constant 0 : index
      %c0_362 = arith.constant 0 : index
      %441 = vector.load %arg14[%c0_360, %440, %c0_361, %c0_362] : memref<1x16x16x4xf32, #tpu.memory_space<vmem>>, vector<1x1x16x4xf32>
      %442 = vector.shape_cast %441 : vector<1x1x16x4xf32> to vector<16x4xf32>
      %443 = vector.shape_cast %439 : vector<16x4xf32> to vector<1x1x16x4xf32>
      tpu.vector_store %arg14[%c0_360, %440, %c0_361, %c0_362], %443 {strides = array<i32>} : memref<1x16x16x4xf32, #tpu.memory_space<vmem>>, vector<1x1x16x4xf32>,
    }
    %c16_i32_255 = arith.constant 16 : i32
    return
  }
  func.func @transform_0(%arg0: i32) -> (i32, i32, i32, i32) {
    %c0_i32 = arith.constant 0 : i32
    %c0_i32_0 = arith.constant 0 : i32
    %c0_i32_1 = arith.constant 0 : i32
    %c0_i32_2 = arith.constant 0 : i32
    return %arg0, %c0_i32, %c0_i32_0, %c0_i32_1 : i32, i32, i32, i32
  }
  func.func @transform_1(%arg0: i32) -> (i32, i32, i32) {
    %c0_i32 = arith.constant 0 : i32
    %c0_i32_0 = arith.constant 0 : i32
    %c0_i32_1 = arith.constant 0 : i32
    %c0_i32_2 = arith.constant 0 : i32
    return %c0_i32, %c0_i32_0, %c0_i32_1 : i32, i32, i32
  }
  func.func @transform_2(%arg0: i32) -> (i32, i32) {
    %c0_i32 = arith.constant 0 : i32
    %c0_i32_0 = arith.constant 0 : i32
    %c0_i32_1 = arith.constant 0 : i32
    return %c0_i32, %c0_i32_0 : i32, i32
  }
  func.func @transform_3(%arg0: i32) -> (i32, i32, i32) {
    %c0_i32 = arith.constant 0 : i32
    %c0_i32_0 = arith.constant 0 : i32
    %c0_i32_1 = arith.constant 0 : i32
    %c0_i32_2 = arith.constant 0 : i32
    return %c0_i32, %c0_i32_0, %c0_i32_1 : i32, i32, i32
  }
  func.func @transform_4(%arg0: i32) -> (i32, i32) {
    %c0_i32 = arith.constant 0 : i32
    %c0_i32_0 = arith.constant 0 : i32
    %c0_i32_1 = arith.constant 0 : i32
    return %c0_i32, %c0_i32_0 : i32, i32
  }
  func.func @transform_5(%arg0: i32) -> (i32, i32, i32) {
    %c0_i32 = arith.constant 0 : i32
    %c0_i32_0 = arith.constant 0 : i32
    %c0_i32_1 = arith.constant 0 : i32
    %c0_i32_2 = arith.constant 0 : i32
    return %c0_i32, %c0_i32_0, %c0_i32_1 : i32, i32, i32
  }
  func.func @transform_6(%arg0: i32) -> (i32, i32) {
    %c0_i32 = arith.constant 0 : i32
    %c0_i32_0 = arith.constant 0 : i32
    %c0_i32_1 = arith.constant 0 : i32
    return %c0_i32, %c0_i32_0 : i32, i32
  }
  func.func @transform_7(%arg0: i32) -> (i32, i32, i32) {
    %c0_i32 = arith.constant 0 : i32
    %c0_i32_0 = arith.constant 0 : i32
    %c0_i32_1 = arith.constant 0 : i32
    %c0_i32_2 = arith.constant 0 : i32
    return %c0_i32, %c0_i32_0, %c0_i32_1 : i32, i32, i32
  }
  func.func @transform_8(%arg0: i32) -> (i32, i32) {
    %c0_i32 = arith.constant 0 : i32
    %c0_i32_0 = arith.constant 0 : i32
    %c0_i32_1 = arith.constant 0 : i32
    return %c0_i32, %c0_i32_0 : i32, i32
  }
  func.func @transform_9(%arg0: i32) -> (i32, i32, i32) {
    %c0_i32 = arith.constant 0 : i32
    %c0_i32_0 = arith.constant 0 : i32
    %c0_i32_1 = arith.constant 0 : i32
    %c0_i32_2 = arith.constant 0 : i32
    return %c0_i32, %c0_i32_0, %c0_i32_1 : i32, i32, i32
  }
  func.func @transform_10(%arg0: i32) -> (i32, i32) {
    %c0_i32 = arith.constant 0 : i32
    %c0_i32_0 = arith.constant 0 : i32
    %c0_i32_1 = arith.constant 0 : i32
    return %c0_i32, %c0_i32_0 : i32, i32
  }
  func.func @transform_11(%arg0: i32) -> (i32, i32, i32) {
    %c0_i32 = arith.constant 0 : i32
    %c0_i32_0 = arith.constant 0 : i32
    %c0_i32_1 = arith.constant 0 : i32
    %c0_i32_2 = arith.constant 0 : i32
    return %c0_i32, %c0_i32_0, %c0_i32_1 : i32, i32, i32
  }
  func.func @transform_12(%arg0: i32) -> (i32, i32) {
    %c0_i32 = arith.constant 0 : i32
    %c0_i32_0 = arith.constant 0 : i32
    %c0_i32_1 = arith.constant 0 : i32
    return %c0_i32, %c0_i32_0 : i32, i32
  }
  func.func @transform_13(%arg0: i32) -> (i32, i32, i32, i32) {
    %c0_i32 = arith.constant 0 : i32
    %c0_i32_0 = arith.constant 0 : i32
    %c0_i32_1 = arith.constant 0 : i32
    %c0_i32_2 = arith.constant 0 : i32
    return %arg0, %c0_i32, %c0_i32_0, %c0_i32_1 : i32, i32, i32, i32
  }
}

</mosaic_0001>

<bundles_post_ra>
// kernel: forward.1
= control target key start
LH: loop header
LB: loop body
LE: loop exit
PB: predicated region body
PF: predicated region fallthrough
CT: control target
= control target key end

     0   :  { %s14511_s25 = smov 0   ;;  %s16364_s0 = inlined_call_operand.vmem [shape: f32[2,16,16,4], index: 0, kind: input, shape index: {}]   ;;  %s16365_s1 = inlined_call_operand.vmem [shape: f32[16,4,8], index: 1, kind: input, shape index: {}]   ;;  %s16366_s2 = inlined_call_operand.vmem [shape: f32[1,8], index: 2, kind: input, shape index: {}]   ;;  %s16367_s3 = inlined_call_operand.vmem [shape: f32[16,8,16], index: 3, kind: input, shape index: {}]   ;;  %s16368_s4 = inlined_call_operand.vmem [shape: f32[1,16], index: 4, kind: input, shape index: {}]   ;;  %s16369_s5 = inlined_call_operand.vmem [shape: f32[16,16,32], index: 5, kind: input, shape index: {}]   ;;  %s16370_s6 = inlined_call_operand.vmem [shape: f32[1,32], index: 6, kind: input, shape index: {}]   ;;  %s16371_s7 = inlined_call_operand.vmem [shape: f32[16,32,16], index: 7, kind: input, shape index: {}]   ;;  %s16372_s8 = inlined_call_operand.vmem [shape: f32[1,16], index: 8, kind: input, shape index: {}]   ;;  %s16373_s9 = inlined_call_operand.vmem [shape: f32[16,16,8], index: 9, kind: input, shape index: {}]   ;;  %s16374_s10 = inlined_call_operand.vmem [shape: f32[1,8], index: 10, kind: input, shape index: {}]   ;;  %s16375_s11 = inlined_call_operand.vmem [shape: f32[16,8,4], index: 11, kind: input, shape index: {}]   ;;  %s16376_s12 = inlined_call_operand.vmem [shape: f32[1,4], index: 12, kind: input, shape index: {}]   ;;  %s16377_s13 = inlined_call_operand.vmem [shape: f32[2,16,16,4], index: 13, kind: output, shape index: {}]  }
   0x1 LB: > { %s11937_s26 = sadd.s32 4294967295, %s14403_s25   ;;  %p11941_p0 = scmp.ge.s32.totalorder %s14403_s25, 1  ;;  %s14403_s25 = sphi %s14511_s25, %s23_s25  }
   0x2   : > { %p387_p1 = scmp.lt.s32.totalorder %s14403_s25, 3 }
   0x4   : > { %p388_p2 = pnand %p11941_p0, %p387_p1 }
   0x5   : > { %vm441_vm0 = vcmask (!%p388_p2), 31744   ;;  %v14522_v0 = vld [vmem:[%s16366_s2] ss:$0 sm:$0xff] (!%p388_p2)  ;;  %v569_v1 = vlaneseq (!%p388_p2)  ;;  %vm444_vm1 = vcmask (!%p388_p2), 25600   ;;  %p14526_p3 = scmp.lt.s32.totalorder (!%p388_p2), %s11937_s26, 1  ;;  %v14425_v2 = vmov (!%p388_p2), 0.0  }
   0x6   : > { %391 = sbr.rel (%p388_p2) target bundleno = 3613 (0xe1d), region = 72  ;;  %446 = vst.msk [vmem:[#allocation2 + $0x18] sm:$0xff] (!%p388_p2), %vm441_vm0, %v14425_v2  ;;  %442 = vst.msk [vmem:[#allocation2] sm:$0xff] (!%p388_p2), %vm441_vm0, %v14425_v2  ;;  %s14737_s20 = smov (!%p388_p2), 0  }
   0x7   : > { %443 = vst.msk [vmem:[#allocation2 + $0x8] sm:$0xff] (!%p388_p2), %vm441_vm0, %v14425_v2  ;;  %447 = vst.msk [vmem:[#allocation2 + $0x20] sm:$0xff] (!%p388_p2), %vm441_vm0, %v14425_v2  ;;  %v14638_v3 = vshrl.u32 (!%p388_p2), %v569_v1, 7  ;;  %v14640_v4 = vand.u32 (!%p388_p2), 127, %v569_v1 }
   0x8   : > { %449 = vst.msk [vmem:[#allocation2 + $0x30] sm:$0xff] (!%p388_p2), %vm441_vm0, %v14425_v2  ;;  %450 = vst.msk [vmem:[#allocation2 + $0x38] sm:$0xff] (!%p388_p2), %vm441_vm0, %v14425_v2 }
   0x9   : > { %452 = vst.msk [vmem:[#allocation2 + $0x48] sm:$0xff] (!%p388_p2), %vm441_vm0, %v14425_v2  ;;  %453 = vst.msk [vmem:[#allocation2 + $0x50] sm:$0xff] (!%p388_p2), %vm441_vm0, %v14425_v2  ;;  %v573_v5 = vmul.u32 (!%p388_p2), 2, %v14638_v3 }
   0xa   : > { %455 = vst.msk [vmem:[#allocation2 + $0x60] sm:$0xff] (!%p388_p2), %vm441_vm0, %v14425_v2  ;;  %456 = vst.msk [vmem:[#allocation2 + $0x68] sm:$0xff] (!%p388_p2), %vm441_vm0, %v14425_v2 }
   0xb   : > { %458 = vst.msk [vmem:[#allocation2 + $0x78] sm:$0xff] (!%p388_p2), %vm441_vm0, %v14425_v2  ;;  %459 = vst.msk [vmem:[#allocation2 + $0x80] sm:$0xff] (!%p388_p2), %vm441_vm0, %v14425_v2  ;;  %vm574_vm2 = vcmp.eq.s32.totalorder (!%p388_p2), %v14640_v4, %v573_v5  ;;  %v577_v6 = vadd.s32 (!%p388_p2), 1, %v573_v5  ;;  %v581_v7 = vadd.s32 (!%p388_p2), 2, %v573_v5  ;;  %v585_v8 = vadd.s32 (!%p388_p2), 3, %v573_v5 }
   0xc   : > { %461 = vst.msk [vmem:[#allocation2 + $0x90] sm:$0xff] (!%p388_p2), %vm441_vm0, %v14425_v2  ;;  %462 = vst.msk [vmem:[#allocation2 + $0x98] sm:$0xff] (!%p388_p2), %vm441_vm0, %v14425_v2  ;;  %v14662_v12 = vsel (!%p388_p2), %vm574_vm2, 1.0, %v14425_v2 }
   0xd   : > { %464 = vst.msk [vmem:[#allocation2 + $0xa8] sm:$0xff] %vm441_vm0, %v14425_v2  ;;  %465 = vst.msk [vmem:[#allocation2 + $0xb0] sm:$0xff] %vm441_vm0, %v14425_v2  ;;  %s16382_s26 = smov (!%p14526_p3, %s11937_s26), 1  ;;  %vm578_vm3 = vcmp.eq.s32.totalorder %v14640_v4, %v577_v6  ;;  %vm582_vm4 = vcmp.eq.s32.totalorder %v14640_v4, %v581_v7  ;;  %vm586_vm5 = vcmp.eq.s32.totalorder %v14640_v4, %v585_v8 }
   0xe   : > { %467 = vst.msk [vmem:[#allocation2 + $0xc0] sm:$0xff] %vm441_vm0, %v14425_v2  ;;  %468 = vst.msk [vmem:[#allocation2 + $0xc8] sm:$0xff] %vm441_vm0, %v14425_v2  ;;  %s12432_s30 = sshll.u32 %s16382_s26, 8  ;;  %v14680_v19 = vsel %vm578_vm3, 1.0, %v14425_v2  ;;  %v14683_v20 = vsel %vm582_vm4, 1.0, %v14425_v2  ;;  %v14686_v21 = vsel %vm586_vm5, 1.0, %v14425_v2 }
   0xf   : > { %470 = vst.msk [vmem:[#allocation2 + $0xd8] sm:$0xff] %vm441_vm0, %v14425_v2  ;;  %471 = vst.msk [vmem:[#allocation2 + $0xe0] sm:$0xff] %vm441_vm0, %v14425_v2  ;;  %s14650_s16 = scalar_lea.vmem %s16364_s0, %s12432_s30  ;;  %s14655_s19 = scalar_lea.vmem %s16377_s13, %s12432_s30 }
  0x10   : > { %473 = vst.msk [vmem:[#allocation2 + $0xf0] sm:$0xff] %vm441_vm0, %v14425_v2  ;;  %474 = vst.msk [vmem:[#allocation2 + $0xf8] sm:$0xff] %vm441_vm0, %v14425_v2  ;;  %v497_v9 = vld [vmem:[%s14650_s16] sm:$0xff]  ;;  %v498_v10 = vld [vmem:[%s14650_s16 + $0x8] sm:$0xff] }
  0x11   : > { %476 = vst.msk [vmem:[#allocation2 + $0x108] sm:$0xff] %vm441_vm0, %v14425_v2  ;;  %477 = vst.msk [vmem:[#allocation2 + $0x110] sm:$0xff] %vm441_vm0, %v14425_v2  ;;  %v499_v11 = vld [vmem:[%s14650_s16 + $0x10] sm:$0xff]  ;;  %v500_v13 = vld [vmem:[%s14650_s16 + $0x18] sm:$0xff] }
  0x12   : > { %479 = vst.msk [vmem:[#allocation2 + $0x120] sm:$0xff] %vm441_vm0, %v14425_v2  ;;  %480 = vst.msk [vmem:[#allocation2 + $0x128] sm:$0xff] %vm441_vm0, %v14425_v2  ;;  %v501_v14 = vld [vmem:[%s14650_s16 + $0x20] sm:$0xff]  ;;  %v502_v15 = vld [vmem:[%s14650_s16 + $0x28] sm:$0xff] }
  0x13   : > { %482 = vst.msk [vmem:[#allocation2 + $0x138] sm:$0xff] %vm441_vm0, %v14425_v2  ;;  %483 = vst.msk [vmem:[#allocation2 + $0x140] sm:$0xff] %vm441_vm0, %v14425_v2  ;;  %v503_v16 = vld [vmem:[%s14650_s16 + $0x30] sm:$0xff]  ;;  %v504_v17 = vld [vmem:[%s14650_s16 + $0x38] sm:$0xff] }
  0x14   : > { %485 = vst.msk [vmem:[#allocation2 + $0x150] sm:$0xff] %vm441_vm0, %v14425_v2  ;;  %486 = vst.msk [vmem:[#allocation2 + $0x158] sm:$0xff] %vm441_vm0, %v14425_v2  ;;  %v505_v18 = vld [vmem:[%s14650_s16 + $0x40] sm:$0xff]  ;;  %v506_v22 = vld [vmem:[%s14650_s16 + $0x48] sm:$0xff] }
  0x15   : > { %488 = vst.msk [vmem:[#allocation2 + $0x168] sm:$0xff] %vm441_vm0, %v14425_v2  ;;  %489 = vst.msk [vmem:[#allocation2 + $0x170] sm:$0xff] %vm441_vm0, %v14425_v2  ;;  %v507_v23 = vld [vmem:[%s14650_s16 + $0x50] sm:$0xff]  ;;  %v508_v24 = vld [vmem:[%s14650_s16 + $0x58] sm:$0xff] }
  0x16   : > { %491 = vst.msk [vmem:[#allocation2 + $0x180] sm:$0xff] %vm441_vm0, %v14425_v2  ;;  %492 = vst.msk [vmem:[#allocation2 + $0x188] sm:$0xff] %vm441_vm0, %v14425_v2  ;;  %v509_v25 = vld [vmem:[%s14650_s16 + $0x60] sm:$0xff]  ;;  %v510_v26 = vld [vmem:[%s14650_s16 + $0x68] sm:$0xff] }
  0x17   : > { %494 = vst.msk [vmem:[#allocation2 + $0x198] sm:$0xff] %vm441_vm0, %v14425_v2  ;;  %495 = vst.msk [vmem:[#allocation2 + $0x1a0] sm:$0xff] %vm441_vm0, %v14425_v2  ;;  %v511_v27 = vld [vmem:[%s14650_s16 + $0x70] sm:$0xff]  ;;  %v512_v28 = vld [vmem:[%s14650_s16 + $0x78] sm:$0xff] }
  0x18   : > { %448 = vst.msk [vmem:[#allocation2 + $0x28] sm:$0x3] %vm444_vm1, %v14425_v2  ;;  %445 = vst.msk [vmem:[#allocation2 + $0x10] sm:$0x3] %vm444_vm1, %v14425_v2  ;;  %v513_v29 = vld [vmem:[%s14650_s16 + $0x80] sm:$0xff]  ;;  %v514_v30 = vld [vmem:[%s14650_s16 + $0x88] sm:$0xff] }
  0x19   : > { %451 = vst.msk [vmem:[#allocation2 + $0x40] sm:$0x3] %vm444_vm1, %v14425_v2  ;;  %454 = vst.msk [vmem:[#allocation2 + $0x58] sm:$0x3] %vm444_vm1, %v14425_v2  ;;  %v515_v31 = vld [vmem:[%s14650_s16 + $0x90] sm:$0xff]  ;;  %v516_v32 = vld [vmem:[%s14650_s16 + $0x98] sm:$0xff] }
  0x1a   : > { %457 = vst.msk [vmem:[#allocation2 + $0x70] sm:$0x3] %vm444_vm1, %v14425_v2  ;;  %460 = vst.msk [vmem:[#allocation2 + $0x88] sm:$0x3] %vm444_vm1, %v14425_v2  ;;  %v517_v33 = vld [vmem:[%s14650_s16 + $0xa0] sm:$0xff]  ;;  %v518_v34 = vld [vmem:[%s14650_s16 + $0xa8] sm:$0xff] }
  0x1b   : > { %463 = vst.msk [vmem:[#allocation2 + $0xa0] sm:$0x3] %vm444_vm1, %v14425_v2  ;;  %466 = vst.msk [vmem:[#allocation2 + $0xb8] sm:$0x3] %vm444_vm1, %v14425_v2  ;;  %v519_v35 = vld [vmem:[%s14650_s16 + $0xb0] sm:$0xff]  ;;  %v520_v36 = vld [vmem:[%s14650_s16 + $0xb8] sm:$0xff] }
  0x1c   : > { %469 = vst.msk [vmem:[#allocation2 + $0xd0] sm:$0x3] %vm444_vm1, %v14425_v2  ;;  %472 = vst.msk [vmem:[#allocation2 + $0xe8] sm:$0x3] %vm444_vm1, %v14425_v2  ;;  %v521_v37 = vld [vmem:[%s14650_s16 + $0xc0] sm:$0xff]  ;;  %v522_v38 = vld [vmem:[%s14650_s16 + $0xc8] sm:$0xff] }
  0x1d   : > { %475 = vst.msk [vmem:[#allocation2 + $0x100] sm:$0x3] %vm444_vm1, %v14425_v2  ;;  %478 = vst.msk [vmem:[#allocation2 + $0x118] sm:$0x3] %vm444_vm1, %v14425_v2  ;;  %v523_v39 = vld [vmem:[%s14650_s16 + $0xd0] sm:$0xff]  ;;  %v524_v40 = vld [vmem:[%s14650_s16 + $0xd8] sm:$0xff] }
  0x1e   : > { %481 = vst.msk [vmem:[#allocation2 + $0x130] sm:$0x3] %vm444_vm1, %v14425_v2  ;;  %484 = vst.msk [vmem:[#allocation2 + $0x148] sm:$0x3] %vm444_vm1, %v14425_v2  ;;  %v525_v41 = vld [vmem:[%s14650_s16 + $0xe0] sm:$0xff]  ;;  %v526_v42 = vld [vmem:[%s14650_s16 + $0xe8] sm:$0xff] }
  0x1f   : > { %487 = vst.msk [vmem:[#allocation2 + $0x160] sm:$0x3] %vm444_vm1, %v14425_v2  ;;  %490 = vst.msk [vmem:[#allocation2 + $0x178] sm:$0x3] %vm444_vm1, %v14425_v2  ;;  %v527_v43 = vld [vmem:[%s14650_s16 + $0xf0] sm:$0xff]  ;;  %v528_v44 = vld [vmem:[%s14650_s16 + $0xf8] sm:$0xff] }
  0x20   : > { %493 = vst.msk [vmem:[#allocation2 + $0x190] sm:$0x3] %vm444_vm1, %v14425_v2  ;;  %496 = vst.msk [vmem:[#allocation2 + $0x1a8] sm:$0x3] %vm444_vm1, %v14425_v2 }
  0x21   : > { %530 = vst.msk [vmem:[#allocation2 + $0x19] sm:$0xff] %vm441_vm0, %v497_v9  ;;  %531 = vst.msk [vmem:[#allocation2 + $0x21] sm:$0xff] %vm441_vm0, %v498_v10 }
  0x22   : > { %532 = vst.msk [vmem:[#allocation2 + $0x31] sm:$0xff] %vm441_vm0, %v499_v11  ;;  %533 = vst.msk [vmem:[#allocation2 + $0x39] sm:$0xff] %vm441_vm0, %v500_v13 }
  0x23   : > { %534 = vst.msk [vmem:[#allocation2 + $0x49] sm:$0xff] %vm441_vm0, %v501_v14  ;;  %535 = vst.msk [vmem:[#allocation2 + $0x51] sm:$0xff] %vm441_vm0, %v502_v15 }
  0x24   : > { %536 = vst.msk [vmem:[#allocation2 + $0x61] sm:$0xff] %vm441_vm0, %v503_v16  ;;  %537 = vst.msk [vmem:[#allocation2 + $0x69] sm:$0xff] %vm441_vm0, %v504_v17 }
  0x25   : > { %538 = vst.msk [vmem:[#allocation2 + $0x79] sm:$0xff] %vm441_vm0, %v505_v18  ;;  %539 = vst.msk [vmem:[#allocation2 + $0x81] sm:$0xff] %vm441_vm0, %v506_v22 }
  0x26   : > { %540 = vst.msk [vmem:[#allocation2 + $0x91] sm:$0xff] %vm441_vm0, %v507_v23  ;;  %541 = vst.msk [vmem:[#allocation2 + $0x99] sm:$0xff] %vm441_vm0, %v508_v24 }
  0x27   : > { %542 = vst.msk [vmem:[#allocation2 + $0xa9] sm:$0xff] %vm441_vm0, %v509_v25  ;;  %543 = vst.msk [vmem:[#allocation2 + $0xb1] sm:$0xff] %vm441_vm0, %v510_v26 }
  0x28   : > { %544 = vst.msk [vmem:[#allocation2 + $0xc1] sm:$0xff] %vm441_vm0, %v511_v27  ;;  %545 = vst.msk [vmem:[#allocation2 + $0xc9] sm:$0xff] %vm441_vm0, %v512_v28 }
  0x29   : > { %546 = vst.msk [vmem:[#allocation2 + $0xd9] sm:$0xff] %vm441_vm0, %v513_v29  ;;  %547 = vst.msk [vmem:[#allocation2 + $0xe1] sm:$0xff] %vm441_vm0, %v514_v30 }
  0x2a   : > { %548 = vst.msk [vmem:[#allocation2 + $0xf1] sm:$0xff] %vm441_vm0, %v515_v31  ;;  %549 = vst.msk [vmem:[#allocation2 + $0xf9] sm:$0xff] %vm441_vm0, %v516_v32 }
  0x2b   : > { %550 = vst.msk [vmem:[#allocation2 + $0x109] sm:$0xff] %vm441_vm0, %v517_v33  ;;  %551 = vst.msk [vmem:[#allocation2 + $0x111] sm:$0xff] %vm441_vm0, %v518_v34 }
  0x2c   : > { %552 = vst.msk [vmem:[#allocation2 + $0x121] sm:$0xff] %vm441_vm0, %v519_v35  ;;  %553 = vst.msk [vmem:[#allocation2 + $0x129] sm:$0xff] %vm441_vm0, %v520_v36 }
  0x2d   : > { %554 = vst.msk [vmem:[#allocation2 + $0x139] sm:$0xff] %vm441_vm0, %v521_v37  ;;  %555 = vst.msk [vmem:[#allocation2 + $0x141] sm:$0xff] %vm441_vm0, %v522_v38 }
  0x2e   : > { %556 = vst.msk [vmem:[#allocation2 + $0x151] sm:$0xff] %vm441_vm0, %v523_v39  ;;  %557 = vst.msk [vmem:[#allocation2 + $0x159] sm:$0xff] %vm441_vm0, %v524_v40 }
  0x2f   : > { %558 = vst.msk [vmem:[#allocation2 + $0x169] sm:$0xff] %vm441_vm0, %v525_v41  ;;  %559 = vst.msk [vmem:[#allocation2 + $0x171] sm:$0xff] %vm441_vm0, %v526_v42 }
  0x30   : > { %560 = vst.msk [vmem:[#allocation2 + $0x181] sm:$0xff] %vm441_vm0, %v527_v43  ;;  %561 = vst.msk [vmem:[#allocation2 + $0x189] sm:$0xff] %vm441_vm0, %v528_v44 }
  0x31 LB: >> { %v679_v45 = vld [vmem:[%s16365_s1] sm:$0xf]  ;;  %v14426_v46 = vmov 0.0|0.0   ;;  %vm14427_vm6 = vmmov 0   ;;  %v14428_v47 = vmov 0.0   ;;  %vm683_vm7 = vcmask 1043456   ;;  %s14407_s20 = sphi %s14737_s20, %s594_s20  }
  0x32   : >> { %13826 = vmatprep.subr.bf16.mxu0 %v14426_v46  ;;  %12876 = vmatprep.mubr.msk.f32.mxu0 %vm14427_vm6, %v14428_v47  ;;  %s11952_s23 = smul.u32 48, %s14407_s20  ;;  %vm605_vm8 = vcmask 1041408   ;;  %vm601_vm9 = vcmask 146432   ;;  %v11959_v58 = vld [vmem:[%s16365_s1 + $0x4] sm:$0xf]  ;;  %s12047_s28 = sshll.u32 %s14407_s20, 3 }
  0x33   : >> { %12879 = vmatprep.subr.mxu1 %v14428_v47  ;;  %12881 = vmatprep.mubr.msk.f32.mxu1 %vm14427_vm6, %v14428_v47  ;;  %v11964_v11 = vld [vmem:[%s16365_s1 + $0x8] sm:$0xf]  ;;  %v11969_v15 = vld [vmem:[%s16365_s1 + $0xc] sm:$0xf]  ;;  %v11979_v16 = vld [vmem:[%s16365_s1 + $0x10] sm:$0xf] }
  0x34   : >> { %12880 = vmatpush3.msk.msra.mxu1 %vm683_vm7, %v679_v45  ;;  %s14754_s24 = scalar_lea.vmem [#allocation2], %s11952_s23  ;;  %v11984_v17 = vld [vmem:[%s16365_s1 + $0x14] sm:$0xf]  ;;  %v11989_v18 = vld [vmem:[%s16365_s1 + $0x18] sm:$0xf]  ;;  %vm3032_vm10 = vcmask 64512  }
  0x35   : >> { %13829 = vmatprep.subr.bf16.mxu1 %v14426_v46  ;;  %v11994_v36 = vld [vmem:[%s16365_s1 + $0x1c] sm:$0xf]  ;;  %v12004_v39 = vld [vmem:[%s16365_s1 + $0x20] sm:$0xf]  ;;  %v12009_v40 = vld [vmem:[%s16365_s1 + $0x24] sm:$0xf] }
  0x36   : >> { %v12014_v41 = vld [vmem:[%s16365_s1 + $0x28] sm:$0xf]  ;;  %v12019_v42 = vld [vmem:[%s16365_s1 + $0x2c] sm:$0xf]  ;;  %v12029_v43 = vld [vmem:[%s16365_s1 + $0x30] sm:$0xf] }
  0x37   : >> { %v598_v48 = vld [vmem:[%s14754_s24] sm:$0xff]  ;;  %v599_v49 = vld [vmem:[%s14754_s24 + $0x8] sm:$0xff]  ;;  %v600_v51 = vld [vmem:[%s14754_s24 + $0x10] sm:$0x3]  ;;  %s3031_s29 = scalar_lea.vmem [#allocation3], %s12047_s28  ;;  %s594_s20 = sadd.s32 1, %s14407_s20  }
  0x38   : >> { %v13827_v50 = vpack.c.bf16 %v599_v49, %v598_v48  ;;  %v11974_v52 = vld [vmem:[%s14754_s24 + $0x18] sm:$0xff]  ;;  %v11975_v53 = vld [vmem:[%s14754_s24 + $0x20] sm:$0xff]  ;;  %v14787_v55 = vld [vmem:[%s14754_s24 + $0x28] sm:$0x3]  ;;  %p591_p4 = scmp.ge.s32.totalorder %s594_s20, 8  }
  0x39   : >> { %v14782_v54 = vpack.c.bf16 %v11975_v53, %v11974_v52  ;;  %v11999_v7 = vld [vmem:[%s14754_s24 + $0x30] sm:$0xff]  ;;  %v12000_v8 = vld [vmem:[%s14754_s24 + $0x38] sm:$0xff]  ;;  %v12001_v10 = vld [vmem:[%s14754_s24 + $0x40] sm:$0x3]  ;;  %3038 = vst.msk [vmem:[#allocation4 + $0x10] sm:$0xff] (%p591_p4), %vm3032_vm10, %v14425_v2  ;;  %vm3036_vm11 = vcmask (%p591_p4), 58368  }
  0x3a   : >> { %13828 = vmatpush3.bf16.msra.mxu0 %v13827_v50  ;;  %v13851_v9 = vpack.c.bf16 %v12000_v8, %v11999_v7  ;;  %v12024_v32 = vld [vmem:[%s14754_s24 + $0x48] sm:$0xff]  ;;  %v12025_v33 = vld [vmem:[%s14754_s24 + $0x50] sm:$0xff]  ;;  %v12026_v35 = vld [vmem:[%s14754_s24 + $0x58] sm:$0x3]  ;;  %3040 = vst.msk [vmem:[#allocation4 + $0x20] sm:$0xff] (%p591_p4), %vm3032_vm10, %v14425_v2  ;;  %s15068_s20 = smov (%p591_p4), 0  }
  0x3b   : >> { %12874 = vmatprep.subr.mxu0 %v14428_v47  ;;  %v13863_v34 = vpack.c.bf16 %v12025_v33, %v12024_v32  ;;  %3042 = vst.msk [vmem:[#allocation4 + $0x30] sm:$0xff] (%p591_p4), %vm3032_vm10, %v14425_v2  ;;  %3044 = vst.msk [vmem:[#allocation4 + $0x40] sm:$0xff] (%p591_p4), %vm3032_vm10, %v14425_v2 }
  0x3c   : > { %3046 = vst.msk [vmem:[#allocation4 + $0x50] sm:$0xff] (%p591_p4), %vm3032_vm10, %v14425_v2  ;;  %3048 = vst.msk [vmem:[#allocation4 + $0x60] sm:$0xff] (%p591_p4), %vm3032_vm10, %v14425_v2 }
  0x3d   : > { %3050 = vst.msk [vmem:[#allocation4 + $0x70] sm:$0xff] (%p591_p4), %vm3032_vm10, %v14425_v2  ;;  %3052 = vst.msk [vmem:[#allocation4 + $0x80] sm:$0xff] (%p591_p4), %vm3032_vm10, %v14425_v2 }
  0x3e   : >> { %12875 = vmatpush3.msk.msra.mxu0 %vm605_vm8, %v600_v51  ;;  %3035 = vst.msk [vmem:[#allocation4] sm:$0xff] (%p591_p4), %vm3032_vm10, %v14425_v2  ;;  %3054 = vst.msk [vmem:[#allocation4 + $0x90] sm:$0xff] (%p591_p4), %vm3032_vm10, %v14425_v2 }
  0x3f   : >> { %12877 = vmatmul.mubr.msk.f32.vlgmr.msra.gmra.mrb[0].mxu0 %vm601_vm9, %v14662_v12  ;;  %13832 = vmatprep.subr.bf16.mxu0 %v14426_v46  ;;  %3039 = vst.msk [vmem:[#allocation4 + $0x18] sm:$0x3] (%p591_p4), %vm3036_vm11, %v14425_v2  ;;  %3037 = vst.msk [vmem:[#allocation4 + $0x8] sm:$0x3] (%p591_p4), %vm3036_vm11, %v14425_v2 }
  0x40   : >> { %13834 = vmatpush3.bf16.msra.mxu0 %v13827_v50  ;;  %12904 = vmatprep.mubr.msk.f32.mxu0 %vm14427_vm6, %v14428_v47  ;;  %3041 = vst.msk [vmem:[#allocation4 + $0x28] sm:$0x3] (%p591_p4), %vm3036_vm11, %v14425_v2  ;;  %3043 = vst.msk [vmem:[#allocation4 + $0x38] sm:$0x3] (%p591_p4), %vm3036_vm11, %v14425_v2 }
  0x41   : >> { %12902 = vmatprep.subr.mxu0 %v14428_v47  ;;  %3045 = vst.msk [vmem:[#allocation4 + $0x48] sm:$0x3] (%p591_p4), %vm3036_vm11, %v14425_v2  ;;  %3047 = vst.msk [vmem:[#allocation4 + $0x58] sm:$0x3] (%p591_p4), %vm3036_vm11, %v14425_v2 }
  0x42   : > { %3049 = vst.msk [vmem:[#allocation4 + $0x68] sm:$0x3] (%p591_p4), %vm3036_vm11, %v14425_v2  ;;  %3051 = vst.msk [vmem:[#allocation4 + $0x78] sm:$0x3] (%p591_p4), %vm3036_vm11, %v14425_v2 }
  0x43   : > { %3053 = vst.msk [vmem:[#allocation4 + $0x88] sm:$0x3] (%p591_p4), %vm3036_vm11, %v14425_v2  ;;  %3055 = vst.msk [vmem:[#allocation4 + $0x98] sm:$0x3] (%p591_p4), %vm3036_vm11, %v14425_v2 }
  0x44   : >> { %12903 = vmatpush3.msk.msra.mxu0 %vm605_vm8, %v600_v51 }
  0x45   : >> { %12905 = vmatmul.mubr.msk.f32.vlgmr.msra.gmra.mrb[2].mxu0 %vm601_vm9, %v14683_v20  ;;  %13835 = vmatprep.subr.bf16.mxu0 %v14426_v46 }
  0x46   : >> { %13837 = vmatpush3.bf16.msra.mxu0 %v13827_v50  ;;  %12918 = vmatprep.mubr.msk.f32.mxu0 %vm14427_vm6, %v14428_v47 }
  0x47   : >> { %12916 = vmatprep.subr.mxu0 %v14428_v47 }
  0x4a   : >> { %12917 = vmatpush3.msk.msra.mxu0 %vm605_vm8, %v600_v51 }
  0x4b   : >> { %12919 = vmatmul.mubr.msk.f32.vlgmr.msra.gmra.mrb[4].mxu0 %vm601_vm9, %v14686_v21  ;;  %13838 = vmatprep.subr.bf16.mxu0 %v14426_v46 }
  0x4c   : >> { %12932 = vmatprep.mubr.msk.f32.mxu0 %vm14427_vm6, %v14428_v47  ;;  %13840 = vmatpush3.bf16.msra.mxu0 %v14782_v54 }
  0x4d   : >> { %12930 = vmatprep.subr.mxu0 %v14428_v47 }
  0x50   : >> { %12931 = vmatpush3.msk.msra.mxu0 %vm605_vm8, %v14787_v55 }
  0x51   : >> { %12933 = vmatmul.mubr.msk.f32.vlgmr.msra.gmra.mrb[6].mxu0 %vm601_vm9, %v14662_v12  ;;  %13841 = vmatprep.subr.bf16.mxu0 %v14426_v46 }
  0x52   : >> { %13843 = vmatpush3.bf16.msra.mxu0 %v14782_v54  ;;  %12946 = vmatprep.mubr.msk.f32.mxu0 %vm14427_vm6, %v14428_v47 }
  0x53   : >> { %12944 = vmatprep.subr.mxu0 %v14428_v47 }
  0x56   : >> { %12945 = vmatpush3.msk.msra.mxu0 %vm605_vm8, %v14787_v55 }
  0x57   : >> { %12947 = vmatmul.mubr.msk.f32.vlgmr.msra.gmra.mrb[8].mxu0 %vm601_vm9, %v14680_v19  ;;  %13847 = vmatprep.subr.bf16.mxu0 %v14426_v46 }
  0x58   : >> { %13849 = vmatpush3.bf16.msra.mxu0 %v14782_v54  ;;  %12974 = vmatprep.mubr.msk.f32.mxu0 %vm14427_vm6, %v14428_v47 }
  0x59   : >> { %12972 = vmatprep.subr.mxu0 %v14428_v47 }
  0x5c   : >> { %12973 = vmatpush3.msk.msra.mxu0 %vm605_vm8, %v14787_v55 }
  0x5d   : >> { %12975 = vmatmul.mubr.msk.f32.vlgmr.msra.gmra.mrb[10].mxu0 %vm601_vm9, %v14686_v21  ;;  %13850 = vmatprep.subr.bf16.mxu0 %v14426_v46 }
  0x5e   : >> { %12988 = vmatprep.mubr.msk.f32.mxu0 %vm14427_vm6, %v14428_v47  ;;  %13852 = vmatpush3.bf16.msra.mxu0 %v13851_v9 }
  0x5f   : >> { %12986 = vmatprep.subr.mxu0 %v14428_v47 }
  0x62   : >> { %12987 = vmatpush3.msk.msra.mxu0 %vm605_vm8, %v12001_v10 }
  0x63   : >> { %12989 = vmatmul.mubr.msk.f32.vlgmr.msra.gmra.mrb[12].mxu0 %vm601_vm9, %v14662_v12  ;;  %13853 = vmatprep.subr.bf16.mxu0 %v14426_v46 }
  0x64   : >> { %13855 = vmatpush3.bf16.msra.mxu0 %v13851_v9  ;;  %13002 = vmatprep.mubr.msk.f32.mxu0 %vm14427_vm6, %v14428_v47 }
  0x65   : >> { %13000 = vmatprep.subr.mxu0 %v14428_v47 }
  0x68   : >> { %13001 = vmatpush3.msk.msra.mxu0 %vm605_vm8, %v12001_v10 }
  0x69   : >> { %13003 = vmatmul.mubr.msk.f32.vlgmr.msra.gmra.mrb[14].mxu0 %vm601_vm9, %v14680_v19  ;;  %13856 = vmatprep.subr.bf16.mxu0 %v14426_v46 }
  0x6a   : >> { %13858 = vmatpush3.bf16.msra.mxu0 %v13851_v9  ;;  %13016 = vmatprep.mubr.msk.f32.mxu0 %vm14427_vm6, %v14428_v47 }
  0x6b   : >> { %13014 = vmatprep.subr.mxu0 %v14428_v47 }
  0x6e   : >> { %13015 = vmatpush3.msk.msra.mxu0 %vm605_vm8, %v12001_v10 }
  0x6f   : >> { %13017 = vmatmul.mubr.msk.f32.vlgmr.msra.gmra.mrb[16].mxu0 %vm601_vm9, %v14683_v20  ;;  %13859 = vmatprep.subr.bf16.mxu0 %v14426_v46 }
  0x70   : >> { %13861 = vmatpush3.bf16.msra.mxu0 %v13851_v9  ;;  %13030 = vmatprep.mubr.msk.f32.mxu0 %vm14427_vm6, %v14428_v47 }
  0x71   : >> { %13028 = vmatprep.subr.mxu0 %v14428_v47 }
  0x74   : >> { %13029 = vmatpush3.msk.msra.mxu0 %vm605_vm8, %v12001_v10 }
  0x75   : >> { %13031 = vmatmul.mubr.msk.f32.vlgmr.msra.gmra.mrb[18].mxu0 %vm601_vm9, %v14686_v21  ;;  %13865 = vmatprep.subr.bf16.mxu0 %v14426_v46 }
  0x76   : >> { %13058 = vmatprep.mubr.msk.f32.mxu0 %vm14427_vm6, %v14428_v47  ;;  %13867 = vmatpush3.bf16.msra.mxu0 %v13863_v34 }
  0x77   : >> { %13056 = vmatprep.subr.mxu0 %v14428_v47 }
  0x7a   : >> { %13057 = vmatpush3.msk.msra.mxu0 %vm605_vm8, %v12026_v35 }
  0x7b   : >> { %13059 = vmatmul.mubr.msk.f32.vlgmr.msra.gmra.mrb[20].mxu0 %vm601_vm9, %v14680_v19  ;;  %13868 = vmatprep.subr.bf16.mxu0 %v14426_v46 }
  0x7c   : >> { %13870 = vmatpush3.bf16.msra.mxu0 %v13863_v34  ;;  %13072 = vmatprep.mubr.msk.f32.mxu0 %vm14427_vm6, %v14428_v47 }
  0x7d   : >> { %13070 = vmatprep.subr.mxu0 %v14428_v47 }
  0x80   : >> { %13071 = vmatpush3.msk.msra.mxu0 %vm605_vm8, %v12026_v35 }
  0x81   : >> { %13073 = vmatmul.mubr.msk.f32.vlgmr.msra.gmra.mrb[22].mxu0 %vm601_vm9, %v14683_v20  ;;  %13871 = vmatprep.subr.bf16.mxu0 %v14426_v46 }
  0x82   : >> { %13873 = vmatpush3.bf16.msra.mxu0 %v13863_v34  ;;  %13086 = vmatprep.mubr.msk.f32.mxu0 %vm14427_vm6, %v14428_v47 }
  0x83   : >> { %13084 = vmatprep.subr.mxu0 %v14428_v47 }
  0x86   : >> { %13085 = vmatpush3.msk.msra.mxu0 %vm605_vm8, %v12026_v35 }
  0x87   : >> { %13087 = vmatmul.mubr.msk.f32.vlgmr.msra.gmra.mrb[24].mxu0 %vm601_vm9, %v14686_v21 }
 0x112   : >> { %v675_v56 = vpop.f32.mrb[0].mxu0 }
 0x113   : >> { %v12878_v57 = vpop.f32.mrb[1].mxu0  ;;  %12882 = vmatmul.mubr.msk.f32.vlgmr.msra.gmra.mrb[0].mxu1 %vm441_vm0, %v675_v56 }
 0x114   : >> { %13831 = vmatpush3.bf16.msra.mxu1 %v13827_v50  ;;  %12890 = vmatprep.mubr.msk.f32.mxu1 %vm14427_vm6, %v14428_v47 }
 0x115   : >> { %12888 = vmatprep.subr.mxu1 %v14428_v47 }
 0x118   : >> { %12889 = vmatpush3.msk.msra.mxu1 %vm605_vm8, %v600_v51  ;;  %v979_v59 = vpop.f32.mrb[2].mxu0  ;;  %v12034_v51 = vld [vmem:[%s16365_s1 + $0x34] sm:$0xf] }
 0x119   : >> { %12891 = vmatmul.mubr.msk.f32.vlgmr.msra.gmra.mrb[2].mxu1 %vm601_vm9, %v14680_v19  ;;  %12893 = vmatprep.subr.mxu1 %v14428_v47  ;;  %v12906_v60 = vpop.f32.mrb[3].mxu0 }
 0x11a   : >> { %12894 = vmatpush3.msk.msra.mxu1 %vm683_vm7, %v11959_v58  ;;  %12895 = vmatprep.mubr.msk.f32.mxu1 %vm14427_vm6, %v14428_v47 }
 0x11b   : >> { %12907 = vmatprep.subr.mxu1 %v14428_v47 }
 0x11e   : >> { %v1131_v61 = vpop.f32.mrb[4].mxu0 }
 0x11f   : >> { %v12920_v62 = vpop.f32.mrb[5].mxu0 }
 0x124   : >> { %v1289_v63 = vpop.f32.mrb[6].mxu0 }
 0x125   : >> { %v12934_v1 = vpop.f32.mrb[7].mxu0 }
 0x12a   : >> { %v1438_v5 = vpop.f32.mrb[8].mxu0 }
 0x12b   : >> { %v12948_v6 = vpop.f32.mrb[9].mxu0 }
 0x130   : >> { %v1736_v22 = vpop.f32.mrb[10].mxu0 }
 0x131   : >> { %v12976_v23 = vpop.f32.mrb[11].mxu0 }
 0x136   : >> { %v1894_v24 = vpop.f32.mrb[12].mxu0 }
 0x137   : >> { %v12990_v25 = vpop.f32.mrb[13].mxu0 }
 0x13c   : >> { %v2043_v26 = vpop.f32.mrb[14].mxu0 }
 0x13d   : >> { %v13004_v27 = vpop.f32.mrb[15].mxu0 }
 0x142   : >> { %v2192_v28 = vpop.f32.mrb[16].mxu0 }
 0x143   : >> { %v13018_v29 = vpop.f32.mrb[17].mxu0 }
 0x148   : >> { %v2341_v30 = vpop.f32.mrb[18].mxu0 }
 0x149   : >> { %v13032_v31 = vpop.f32.mrb[19].mxu0 }
 0x14e   : >> { %v2648_v44 = vpop.f32.mrb[20].mxu0 }
 0x14f   : >> { %v13060_v45 = vpop.f32.mrb[21].mxu0 }
 0x1ec   : >> { %v827_v13 = vpop.f32.mrb[2].mxu1 }
 0x1ed   : >> { %v12892_v14 = vpop.f32.mrb[3].mxu1  ;;  %12896 = vmatmul.mubr.msk.f32.vlgmr.msra.gmra.mrb[0].mxu1 %vm441_vm0, %v827_v13 }
 0x1ee   : >> { %12908 = vmatpush3.msk.msra.mxu1 %vm683_vm7, %v11964_v11  ;;  %12909 = vmatprep.mubr.msk.f32.mxu1 %vm14427_vm6, %v14428_v47 }
 0x1ef   : >> { %12921 = vmatprep.subr.mxu1 %v14428_v47 }
 0x1f5   : >> { %12910 = vmatmul.mubr.msk.f32.vlgmr.msra.gmra.mrb[0].mxu1 %vm441_vm0, %v979_v59 }
 0x1f6   : >> { %12922 = vmatpush3.msk.msra.mxu1 %vm683_vm7, %v11969_v15  ;;  %12923 = vmatprep.mubr.msk.f32.mxu1 %vm14427_vm6, %v14428_v47 }
 0x1f7   : >> { %12935 = vmatprep.subr.mxu1 %v14428_v47 }
 0x1fd   : >> { %12924 = vmatmul.mubr.msk.f32.vlgmr.msra.gmra.mrb[0].mxu1 %vm441_vm0, %v1131_v61 }
 0x1fe   : >> { %12936 = vmatpush3.msk.msra.mxu1 %vm683_vm7, %v11979_v16  ;;  %12937 = vmatprep.mubr.msk.f32.mxu1 %vm14427_vm6, %v14428_v47 }
 0x1ff   : >> { %12949 = vmatprep.subr.mxu1 %v14428_v47 }
 0x205   : >> { %12938 = vmatmul.mubr.msk.f32.vlgmr.msra.gmra.mrb[0].mxu1 %vm441_vm0, %v1289_v63 }
 0x206   : >> { %12950 = vmatpush3.msk.msra.mxu1 %vm683_vm7, %v11984_v17  ;;  %12951 = vmatprep.mubr.msk.f32.mxu1 %vm14427_vm6, %v14428_v47 }
 0x207   : >> { %13844 = vmatprep.subr.bf16.mxu1 %v14426_v46 }
 0x20d   : >> { %12952 = vmatmul.mubr.msk.f32.vlgmr.msra.gmra.mrb[0].mxu1 %vm441_vm0, %v1438_v5 }
 0x20e   : >> { %13846 = vmatpush3.bf16.msra.mxu1 %v14782_v54  ;;  %12960 = vmatprep.mubr.msk.f32.mxu1 %vm14427_vm6, %v14428_v47  ;;  %v12039_v54 = vld [vmem:[%s16365_s1 + $0x38] sm:$0xf] }
 0x20f   : >> { %12958 = vmatprep.subr.mxu1 %v14428_v47 }
 0x212   : >> { %12959 = vmatpush3.msk.msra.mxu1 %vm605_vm8, %v14787_v55  ;;  %v12044_v55 = vld [vmem:[%s16365_s1 + $0x3c] sm:$0xf] }
 0x213   : >> { %12961 = vmatmul.mubr.msk.f32.vlgmr.msra.gmra.mrb[4].mxu1 %vm601_vm9, %v14683_v20  ;;  %12963 = vmatprep.subr.mxu1 %v14428_v47 }
 0x214   : >> { %12964 = vmatpush3.msk.msra.mxu1 %vm683_vm7, %v11989_v18  ;;  %12965 = vmatprep.mubr.msk.f32.mxu1 %vm14427_vm6, %v14428_v47 }
 0x215   : >> { %12977 = vmatprep.subr.mxu1 %v14428_v47 }
 0x2e6   : >> { %v1587_v37 = vpop.f32.mrb[4].mxu1 }
 0x2e7   : >> { %v12962_v38 = vpop.f32.mrb[5].mxu1  ;;  %12966 = vmatmul.mubr.msk.f32.vlgmr.msra.gmra.mrb[0].mxu1 %vm441_vm0, %v1587_v37 }
 0x2e8   : >> { %12978 = vmatpush3.msk.msra.mxu1 %vm683_vm7, %v11994_v36  ;;  %12979 = vmatprep.mubr.msk.f32.mxu1 %vm14427_vm6, %v14428_v47 }
 0x2e9   : >> { %12991 = vmatprep.subr.mxu1 %v14428_v47 }
 0x2ef   : >> { %12980 = vmatmul.mubr.msk.f32.vlgmr.msra.gmra.mrb[0].mxu1 %vm441_vm0, %v1736_v22 }
 0x2f0   : >> { %12992 = vmatpush3.msk.msra.mxu1 %vm683_vm7, %v12004_v39  ;;  %12993 = vmatprep.mubr.msk.f32.mxu1 %vm14427_vm6, %v14428_v47 }
 0x2f1   : >> { %13005 = vmatprep.subr.mxu1 %v14428_v47 }
 0x2f7   : >> { %12994 = vmatmul.mubr.msk.f32.vlgmr.msra.gmra.mrb[0].mxu1 %vm441_vm0, %v1894_v24 }
 0x2f8   : >> { %13006 = vmatpush3.msk.msra.mxu1 %vm683_vm7, %v12009_v40  ;;  %13007 = vmatprep.mubr.msk.f32.mxu1 %vm14427_vm6, %v14428_v47 }
 0x2f9   : >> { %13019 = vmatprep.subr.mxu1 %v14428_v47 }
 0x2ff   : >> { %13008 = vmatmul.mubr.msk.f32.vlgmr.msra.gmra.mrb[0].mxu1 %vm441_vm0, %v2043_v26 }
 0x300   : >> { %13020 = vmatpush3.msk.msra.mxu1 %vm683_vm7, %v12014_v41  ;;  %13021 = vmatprep.mubr.msk.f32.mxu1 %vm14427_vm6, %v14428_v47 }
 0x301   : >> { %13033 = vmatprep.subr.mxu1 %v14428_v47 }
 0x307   : >> { %13022 = vmatmul.mubr.msk.f32.vlgmr.msra.gmra.mrb[0].mxu1 %vm441_vm0, %v2192_v28 }
 0x308   : >> { %13034 = vmatpush3.msk.msra.mxu1 %vm683_vm7, %v12019_v42  ;;  %13035 = vmatprep.mubr.msk.f32.mxu1 %vm14427_vm6, %v14428_v47 }
 0x309   : >> { %13862 = vmatprep.subr.bf16.mxu1 %v14426_v46  ;;  %v2797_v46 = vpop.f32.mrb[22].mxu0 }
 0x30a   : >> { %v13074_v48 = vpop.f32.mrb[23].mxu0 }
 0x30b   : >> { %v2946_v49 = vpop.f32.mrb[24].mxu0 }
 0x30c   : >> { %v13088_v50 = vpop.f32.mrb[25].mxu0 }
 0x30f   : >> { %13036 = vmatmul.mubr.msk.f32.vlgmr.msra.gmra.mrb[0].mxu1 %vm441_vm0, %v2341_v30 }
 0x310   : >> { %13864 = vmatpush3.bf16.msra.mxu1 %v13863_v34  ;;  %13044 = vmatprep.mubr.msk.f32.mxu1 %vm14427_vm6, %v14428_v47 }
 0x311   : >> { %13042 = vmatprep.subr.mxu1 %v14428_v47 }
 0x314   : >> { %13043 = vmatpush3.msk.msra.mxu1 %vm605_vm8, %v12026_v35 }
 0x315   : >> { %13045 = vmatmul.mubr.msk.f32.vlgmr.msra.gmra.mrb[6].mxu1 %vm601_vm9, %v14662_v12  ;;  %13047 = vmatprep.subr.mxu1 %v14428_v47 }
 0x316   : >> { %13048 = vmatpush3.msk.msra.mxu1 %vm683_vm7, %v12029_v43  ;;  %13049 = vmatprep.mubr.msk.f32.mxu1 %vm14427_vm6, %v14428_v47 }
 0x317   : >> { %13061 = vmatprep.subr.mxu1 %v14428_v47 }
 0x3e8   : >> { %v2499_v52 = vpop.f32.mrb[6].mxu1 }
 0x3e9   : >> { %v13046_v53 = vpop.f32.mrb[7].mxu1  ;;  %13050 = vmatmul.mubr.msk.f32.vlgmr.msra.gmra.mrb[0].mxu1 %vm441_vm0, %v2499_v52 }
 0x3ea   : >> { %13062 = vmatpush3.msk.msra.mxu1 %vm683_vm7, %v12034_v51  ;;  %13063 = vmatprep.mubr.msk.f32.mxu1 %vm14427_vm6, %v14428_v47 }
 0x3eb   : >> { %13075 = vmatprep.subr.mxu1 %v14428_v47 }
 0x3f1   : >> { %13064 = vmatmul.mubr.msk.f32.vlgmr.msra.gmra.mrb[0].mxu1 %vm441_vm0, %v2648_v44 }
 0x3f2   : >> { %13076 = vmatpush3.msk.msra.mxu1 %vm683_vm7, %v12039_v54  ;;  %13077 = vmatprep.mubr.msk.f32.mxu1 %vm14427_vm6, %v14428_v47 }
 0x3f3   : >> { %13089 = vmatprep.subr.mxu1 %v14428_v47 }
 0x3f9   : >> { %13078 = vmatmul.mubr.msk.f32.vlgmr.msra.gmra.mrb[0].mxu1 %vm441_vm0, %v2797_v46 }
 0x3fa   : >> { %13090 = vmatpush3.msk.msra.mxu1 %vm683_vm7, %v12044_v55  ;;  %13091 = vmatprep.mubr.msk.f32.mxu1 %vm14427_vm6, %v14428_v47  ;;  %v15022_v47 = vld [vmem:[%s16368_s4] ss:$0 sm:$0xff] (%p591_p4) }
 0x401   : >> { %13092 = vmatmul.mubr.msk.f32.vlgmr.msra.gmra.mrb[0].mxu1 %vm441_vm0, %v2946_v49 }
 0x4d3   : > { %593 = sbr.rel (!%p591_p4) target bundleno = 49 (0x31), region = 280 }
 0x4d4   : >> { %v3024_v56 = vpop.f32.mrb[0].mxu1 }
 0x4d5   : >> { %v14130_v57 = vadd.f32 %v14522_v0, %v3024_v56  ;;  %v13093_v58 = vpop.f32.mrb[1].mxu1 }
 0x4d7   : >> { %v3029_v59 = vmax.f32 %v14130_v57, 0.0 }
 0x4d9   : >> { %3033 = vst.msk [vmem:[%s3031_s29] sm:$0xff] %vm3032_vm10, %v3029_v59 }
 0x4e0   : > { %v3056_v0 = vld [vmem:[#allocation3] sm:$0xff]  ;;  %v3057_v60 = vld [vmem:[#allocation3 + $0x8] sm:$0xff]  ;;  %v3058_v61 = vld [vmem:[#allocation3 + $0x10] sm:$0xff] }
 0x4e1   : > { %v3059_v62 = vld [vmem:[#allocation3 + $0x18] sm:$0xff]  ;;  %v3060_v63 = vld [vmem:[#allocation3 + $0x20] sm:$0xff]  ;;  %3065 = vst.msk [vmem:[#allocation4 + $0x11] sm:$0xff] %vm3032_vm10, %v3056_v0  ;;  %3066 = vst.msk [vmem:[#allocation4 + $0x21] sm:$0xff] %vm3032_vm10, %v3057_v60 }
 0x4e2   : > { %3067 = vst.msk [vmem:[#allocation4 + $0x31] sm:$0xff] %vm3032_vm10, %v3058_v61  ;;  %3068 = vst.msk [vmem:[#allocation4 + $0x41] sm:$0xff] %vm3032_vm10, %v3059_v62  ;;  %v3061_v1 = vld [vmem:[#allocation3 + $0x28] sm:$0xff]  ;;  %v3062_v5 = vld [vmem:[#allocation3 + $0x30] sm:$0xff] }
 0x4e3   : > { %3069 = vst.msk [vmem:[#allocation4 + $0x51] sm:$0xff] %vm3032_vm10, %v3060_v63  ;;  %v3063_v6 = vld [vmem:[#allocation3 + $0x38] sm:$0xff]  ;;  %3070 = vst.msk [vmem:[#allocation4 + $0x61] sm:$0xff] %vm3032_vm10, %v3061_v1 }
 0x4e4   : > { %3071 = vst.msk [vmem:[#allocation4 + $0x71] sm:$0xff] %vm3032_vm10, %v3062_v5  ;;  %3072 = vst.msk [vmem:[#allocation4 + $0x81] sm:$0xff] %vm3032_vm10, %v3063_v6 }
 0x4e5 LB: >> { %v14429_v7 = vmov 0.0|0.0   ;;  %vm14430_vm12 = vmmov 0   ;;  %v14431_v8 = vmov 0.0   ;;  %s12434_s15 = sshll.u32 %s14411_s20, 5  ;;  %vm14432_vm13 = vmmov 1   ;;  %v3169_v14 = vld [vmem:[%s16367_s3] sm:$0xff]  ;;  %s14411_s20 = sphi %s15068_s20, %s3085_s20  }
 0x4e6   : >> { %13874 = vmatprep.subr.bf16.mxu0 %v14429_v7  ;;  %13098 = vmatprep.mubr.msk.f32.mxu0 %vm14430_vm12, %v14431_v8  ;;  %s15080_s16 = scalar_lea.vmem [#allocation4], %s12434_s15  ;;  %vm15085_vm14 = vmpackc.low %vm605_vm8, %vm14432_vm13  ;;  %vm3091_vm15 = vcmask 80896   ;;  %v12056_v15 = vld [vmem:[%s16367_s3 + $0x8] sm:$0xff]  ;;  %v12060_v18 = vld [vmem:[%s16367_s3 + $0x10] sm:$0xff]  ;;  %s12126_s23 = sshll.u32 %s14411_s20, 2  ;;  %vm5470_vm1 = vcmask 125952  }
 0x4e7   : >> { %13878 = vmatprep.subr.bf16.mxu1 %v14429_v7  ;;  %13110 = vmatprep.mubr.msk.f32.mxu1 %vm14430_vm12, %v14431_v8  ;;  %v12064_v35 = vld [vmem:[%s16367_s3 + $0x18] sm:$0xff]  ;;  %v12072_v40 = vld [vmem:[%s16367_s3 + $0x20] sm:$0xff]  ;;  %v12076_v45 = vld [vmem:[%s16367_s3 + $0x28] sm:$0xff]  ;;  %s5469_s24 = scalar_lea.vmem [#allocation5], %s12126_s23  ;;  %s3085_s20 = sadd.s32 1, %s14411_s20  }
 0x4e8   : >> { %v12080_v51 = vld [vmem:[%s16367_s3 + $0x30] sm:$0xff]  ;;  %v12084_v56 = vld [vmem:[%s16367_s3 + $0x38] sm:$0xff]  ;;  %v12092_v60 = vld [vmem:[%s16367_s3 + $0x40] sm:$0xff]  ;;  %p3082_p5 = scmp.ge.s32.totalorder %s3085_s20, 4  }
 0x4e9   : >> { %v12096_v5 = vld [vmem:[%s16367_s3 + $0x48] sm:$0xff]  ;;  %v12100_v11 = vld [vmem:[%s16367_s3 + $0x50] sm:$0xff]  ;;  %vm14434_vm2 = vmmov (%p3082_p5), 0   ;;  %vm5476_vm3 = vcmask (%p3082_p5), 130048   ;;  %vm6726_vm4 = vcmask (%p3082_p5), 260096   ;;  %vm6724_vm5 = vcmask (%p3082_p5), 253952  }
 0x4ea   : > { %6727 = vst.msk [vmem:[#allocation7] sm:$0x7f] (%p3082_p5), %vm6726_vm4, %v14425_v2  ;;  %6728 = vst.msk [vmem:[#allocation7 + $0x8] sm:$0x7f] (%p3082_p5), %vm6726_vm4, %v14425_v2 }
 0x4eb   : >> { %v3089_v9 = vld [vmem:[%s15080_s16] sm:$0xff]  ;;  %v3090_v10 = vld [vmem:[%s15080_s16 + $0x8] sm:$0x3]  ;;  %v12068_v24 = vld [vmem:[%s15080_s16 + $0x10] sm:$0xff]  ;;  %6729 = vst.msk [vmem:[#allocation7 + $0x10] sm:$0x7f] (%p3082_p5), %vm6726_vm4, %v14425_v2 }
 0x4ec   : >> { %v13875_v13 = vpack.c.bf16 %v3090_v10, %v3089_v9  ;;  %v12069_v25 = vld [vmem:[%s15080_s16 + $0x18] sm:$0x3]  ;;  %v12088_v27 = vld [vmem:[%s15080_s16 + $0x20] sm:$0xff]  ;;  %v12089_v28 = vld [vmem:[%s15080_s16 + $0x28] sm:$0x3] }
 0x4ed   : >> { %v13891_v26 = vpack.c.bf16 %v12069_v25, %v12068_v24  ;;  %v13907_v29 = vpack.c.bf16 %v12089_v28, %v12088_v27  ;;  %v12108_v30 = vld [vmem:[%s15080_s16 + $0x30] sm:$0xff]  ;;  %v12109_v31 = vld [vmem:[%s15080_s16 + $0x38] sm:$0x3]  ;;  %v12149_v27 = vld [vmem:[%s16369_s5 + $0x80] sm:$0xff] (%p3082_p5)  ;;  %v14433_v28 = vmov (%p3082_p5), 0.0|0.0   ;;  %s15497_s16 = smov (%p3082_p5), 0  }
 0x4ee   : >> { %13877 = vmatpush3.bf16.msk.msra.mxu0 %vm15085_vm14, %v13875_v13  ;;  %13881 = vmatpush3.bf16.msk.msra.mxu1 %vm15085_vm14, %v13875_v13  ;;  %v13923_v32 = vpack.c.bf16 %v12109_v31, %v12108_v30  ;;  %6730 = vst.msk [vmem:[#allocation7 + $0x18] sm:$0x7f] (%p3082_p5), %vm6726_vm4, %v14425_v2  ;;  %6731 = vst.msk [vmem:[#allocation7 + $0x20] sm:$0x7f] (%p3082_p5), %vm6726_vm4, %v14425_v2 }
 0x4ef   : >> { %13101 = vmatprep.subr.mxu0 %v14431_v8  ;;  %13113 = vmatprep.subr.mxu1 %v14431_v8  ;;  %6732 = vst.msk [vmem:[#allocation7 + $0x28] sm:$0x7f] (%p3082_p5), %vm6726_vm4, %v14425_v2  ;;  %6733 = vst.msk [vmem:[#allocation7 + $0x30] sm:$0x7f] (%p3082_p5), %vm6726_vm4, %v14425_v2 }
 0x4f1   : >> { %13099 = vmatmul.mubr.msk.f32.vlgmr.msra.gmra.mrb[0].mxu0 %vm3091_vm15, %v14662_v12  ;;  %13111 = vmatmul.mubr.msk.f32.vlgmr.msra.gmra.mrb[0].mxu1 %vm3091_vm15, %v14680_v19 }
 0x4f2   : >> { %13102 = vmatpush3.msra.mxu0 %v3169_v14  ;;  %13103 = vmatprep.mubr.msk.f32.mxu0 %vm14430_vm12, %v14431_v8  ;;  %v12112_v14 = vld [vmem:[%s16367_s3 + $0x60] sm:$0xff] }
 0x4f3   : >> { %13882 = vmatprep.subr.bf16.mxu0 %v14429_v7  ;;  %13115 = vmatprep.mubr.msk.f32.mxu1 %vm14430_vm12, %v14431_v8 }
 0x4f4   : >> { %13114 = vmatpush3.msra.mxu1 %v12056_v15  ;;  %v12116_v15 = vld [vmem:[%s16367_s3 + $0x68] sm:$0xff] }
 0x4f5   : >> { %13125 = vmatprep.subr.mxu1 %v14431_v8 }
 0x5c4   : >> { %v3165_v16 = vpop.f32.mrb[0].mxu0  ;;  %v3313_v17 = vpop.f32.mrb[0].mxu1 }
 0x5c5   : >> { %v13100_v22 = vpop.f32.mrb[1].mxu0  ;;  %13104 = vmatmul.mubr.msk.f32.vlgmr.msra.gmra.mrb[2].mxu0 %vm3032_vm10, %v3165_v16  ;;  %v13112_v23 = vpop.f32.mrb[1].mxu1  ;;  %13116 = vmatmul.mubr.msk.f32.vlgmr.msra.gmra.mrb[2].mxu1 %vm3032_vm10, %v3313_v17  ;;  %v12120_v16 = vld [vmem:[%s16367_s3 + $0x70] sm:$0xff]  ;;  %v12124_v17 = vld [vmem:[%s16367_s3 + $0x78] sm:$0xff] }
 0x5c6   : >> { %13885 = vmatpush3.bf16.msk.msra.mxu0 %vm15085_vm14, %v13875_v13  ;;  %13122 = vmatprep.mubr.msk.f32.mxu0 %vm14430_vm12, %v14431_v8 }
 0x5c7   : >> { %13886 = vmatprep.subr.bf16.mxu0 %v14429_v7  ;;  %13126 = vmatpush3.msra.mxu1 %v12060_v18 }
 0x5c8   : >> { %13127 = vmatprep.mubr.msk.f32.mxu1 %vm14430_vm12, %v14431_v8  ;;  %13137 = vmatprep.subr.mxu1 %v14431_v8 }
 0x5c9   : >> { %13123 = vmatmul.mubr.msk.f32.vlgmr.msra.gmra.mrb[4].mxu0 %vm3091_vm15, %v14683_v20 }
 0x5ca   : >> { %13889 = vmatpush3.bf16.msk.msra.mxu0 %vm15085_vm14, %v13875_v13  ;;  %13134 = vmatprep.mubr.msk.f32.mxu0 %vm14430_vm12, %v14431_v8  ;;  %v12104_v13 = vld [vmem:[%s16367_s3 + $0x58] sm:$0xff] }
 0x5cb   : >> { %13890 = vmatprep.subr.bf16.mxu0 %v14429_v7 }
 0x5cd   : >> { %13135 = vmatmul.mubr.msk.f32.vlgmr.msra.gmra.mrb[6].mxu0 %vm3091_vm15, %v14686_v21 }
 0x5ce   : >> { %13893 = vmatpush3.bf16.msk.msra.mxu0 %vm15085_vm14, %v13891_v26  ;;  %13146 = vmatprep.mubr.msk.f32.mxu0 %vm14430_vm12, %v14431_v8 }
 0x5cf   : >> { %13894 = vmatprep.subr.bf16.mxu0 %v14429_v7 }
 0x5d1   : >> { %13147 = vmatmul.mubr.msk.f32.vlgmr.msra.gmra.mrb[8].mxu0 %vm3091_vm15, %v14662_v12 }
 0x5d2   : >> { %13897 = vmatpush3.bf16.msk.msra.mxu0 %vm15085_vm14, %v13891_v26  ;;  %13158 = vmatprep.mubr.msk.f32.mxu0 %vm14430_vm12, %v14431_v8 }
 0x5d3   : >> { %13898 = vmatprep.subr.bf16.mxu0 %v14429_v7 }
 0x5d5   : >> { %13159 = vmatmul.mubr.msk.f32.vlgmr.msra.gmra.mrb[10].mxu0 %vm3091_vm15, %v14680_v19 }
 0x5d6   : >> { %13901 = vmatpush3.bf16.msk.msra.mxu0 %vm15085_vm14, %v13891_v26  ;;  %13170 = vmatprep.mubr.msk.f32.mxu0 %vm14430_vm12, %v14431_v8 }
 0x5d7   : >> { %13902 = vmatprep.subr.bf16.mxu0 %v14429_v7 }
 0x5d9   : >> { %13171 = vmatmul.mubr.msk.f32.vlgmr.msra.gmra.mrb[12].mxu0 %vm3091_vm15, %v14683_v20 }
 0x5da   : >> { %13905 = vmatpush3.bf16.msk.msra.mxu0 %vm15085_vm14, %v13891_v26  ;;  %13182 = vmatprep.mubr.msk.f32.mxu0 %vm14430_vm12, %v14431_v8  ;;  %v5475_v26 = vld [vmem:[%s16369_s5 + $0x8] sm:$0xff] (%p3082_p5) }
 0x5db   : >> { %13906 = vmatprep.subr.bf16.mxu0 %v14429_v7 }
 0x5dd   : >> { %13183 = vmatmul.mubr.msk.f32.vlgmr.msra.gmra.mrb[14].mxu0 %vm3091_vm15, %v14686_v21 }
 0x5de   : >> { %13909 = vmatpush3.bf16.msk.msra.mxu0 %vm15085_vm14, %v13907_v29  ;;  %13194 = vmatprep.mubr.msk.f32.mxu0 %vm14430_vm12, %v14431_v8 }
 0x5df   : >> { %13910 = vmatprep.subr.bf16.mxu0 %v14429_v7 }
 0x5e1   : >> { %13195 = vmatmul.mubr.msk.f32.vlgmr.msra.gmra.mrb[16].mxu0 %vm3091_vm15, %v14662_v12 }
 0x5e2   : >> { %13913 = vmatpush3.bf16.msk.msra.mxu0 %vm15085_vm14, %v13907_v29  ;;  %13206 = vmatprep.mubr.msk.f32.mxu0 %vm14430_vm12, %v14431_v8 }
 0x5e3   : >> { %13914 = vmatprep.subr.bf16.mxu0 %v14429_v7 }
 0x5e5   : >> { %13207 = vmatmul.mubr.msk.f32.vlgmr.msra.gmra.mrb[18].mxu0 %vm3091_vm15, %v14680_v19 }
 0x5e6   : >> { %13917 = vmatpush3.bf16.msk.msra.mxu0 %vm15085_vm14, %v13907_v29  ;;  %13218 = vmatprep.mubr.msk.f32.mxu0 %vm14430_vm12, %v14431_v8 }
 0x5e7   : >> { %13918 = vmatprep.subr.bf16.mxu0 %v14429_v7 }
 0x5e9   : >> { %13219 = vmatmul.mubr.msk.f32.vlgmr.msra.gmra.mrb[20].mxu0 %vm3091_vm15, %v14683_v20 }
 0x5ea   : >> { %13921 = vmatpush3.bf16.msk.msra.mxu0 %vm15085_vm14, %v13907_v29  ;;  %13230 = vmatprep.mubr.msk.f32.mxu0 %vm14430_vm12, %v14431_v8 }
 0x5eb   : >> { %13922 = vmatprep.subr.bf16.mxu0 %v14429_v7 }
 0x5ed   : >> { %13231 = vmatmul.mubr.msk.f32.vlgmr.msra.gmra.mrb[22].mxu0 %vm3091_vm15, %v14686_v21 }
 0x5ee   : >> { %13925 = vmatpush3.bf16.msk.msra.mxu0 %vm15085_vm14, %v13923_v32  ;;  %13242 = vmatprep.mubr.msk.f32.mxu0 %vm14430_vm12, %v14431_v8 }
 0x5ef   : >> { %13926 = vmatprep.subr.bf16.mxu0 %v14429_v7 }
 0x5f1   : >> { %13243 = vmatmul.mubr.msk.f32.vlgmr.msra.gmra.mrb[24].mxu0 %vm3091_vm15, %v14662_v12  ;;  %v12150_v12 = vld [vmem:[%s16369_s5 + $0x88] sm:$0xff] (%p3082_p5) }
 0x5f2   : >> { %13929 = vmatpush3.bf16.msk.msra.mxu0 %vm15085_vm14, %v13923_v32  ;;  %13254 = vmatprep.mubr.msk.f32.mxu0 %vm14430_vm12, %v14431_v8 }
 0x5f3   : >> { %13930 = vmatprep.subr.bf16.mxu0 %v14429_v7 }
 0x5f5   : >> { %13255 = vmatmul.mubr.msk.f32.vlgmr.msra.gmra.mrb[26].mxu0 %vm3091_vm15, %v14680_v19  ;;  %v13963_v19 = vpack.c.bf16 (%p3082_p5), %v12150_v12, %v12149_v27  ;;  %v5472_v12 = vld [vmem:[%s16370_s6] sm:$0x1] (%p3082_p5) }
 0x5f6   : >> { %13933 = vmatpush3.bf16.msk.msra.mxu0 %vm15085_vm14, %v13923_v32  ;;  %13266 = vmatprep.mubr.msk.f32.mxu0 %vm14430_vm12, %v14431_v8 }
 0x5f7   : >> { %13934 = vmatprep.subr.bf16.mxu0 %v14429_v7 }
 0x5f9   : >> { %13267 = vmatmul.mubr.msk.f32.vlgmr.msra.gmra.mrb[28].mxu0 %vm3091_vm15, %v14683_v20  ;;  %v12128_v20 = vld [vmem:[%s16369_s5 + $0x10] sm:$0xff] (%p3082_p5) }
 0x5fa   : >> { %13937 = vmatpush3.bf16.msk.msra.mxu0 %vm15085_vm14, %v13923_v32  ;;  %13278 = vmatprep.mubr.msk.f32.mxu0 %vm14430_vm12, %v14431_v8  ;;  %v12153_v32 = vld [vmem:[%s16369_s5 + $0x98] sm:$0xff] (%p3082_p5) }
 0x5fb   : > { %13962 = vmatprep.subr.bf16.mxu0 (%p3082_p5), %v14433_v28 }
 0x5fd   : >> { %13279 = vmatmul.mubr.msk.f32.vlgmr.msra.gmra.mrb[30].mxu0 %vm3091_vm15, %v14686_v21  ;;  %v12129_v21 = vld [vmem:[%s16369_s5 + $0x18] sm:$0xff] (%p3082_p5) }
 0x5fe   : > { %13346 = vmatprep.mubr.msk.f32.mxu0 (%p3082_p5), %vm14434_vm2, %v14425_v2  ;;  %v13942_v31 = vpack.c.bf16 (%p3082_p5), %v12129_v21, %v12128_v20  ;;  %13964 = vmatpush3.bf16.msra.mxu0 (%p3082_p5), %v13963_v19 }
 0x5ff   : > { %13965 = vmatprep.subr.bf16.mxu0 (%p3082_p5), %v14433_v28 }
 0x698   : >> { %v15222_v33 = vpop.f32.mrb[2].mxu0 }
 0x699   : >> { %v13105_v34 = vpop.f32.mrb[3].mxu0  ;;  %v3243_v18 = vadd.f32 %v15022_v47, %v15222_v33  ;;  %v12152_v47 = vld [vmem:[%s16369_s5 + $0x90] sm:$0xff] (%p3082_p5) }
 0x69a   : > { %v13966_v34 = vpack.c.bf16 (%p3082_p5), %v12153_v32, %v12152_v47 }
 0x69c   : >> { %v3462_v36 = vpop.f32.mrb[4].mxu0 }
 0x69d   : >> { %v13124_v37 = vpop.f32.mrb[5].mxu0  ;;  %13128 = vmatmul.mubr.msk.f32.vlgmr.msra.gmra.mrb[2].mxu1 %vm3032_vm10, %v3462_v36  ;;  %v12132_v36 = vld [vmem:[%s16369_s5 + $0x28] sm:$0xff] (%p3082_p5) }
 0x69e   : >> { %13138 = vmatpush3.msra.mxu1 %v12064_v35  ;;  %13139 = vmatprep.mubr.msk.f32.mxu1 %vm14430_vm12, %v14431_v8  ;;  %v12131_v35 = vld [vmem:[%s16369_s5 + $0x20] sm:$0xff] (%p3082_p5) }
 0x69f   : >> { %13149 = vmatprep.subr.mxu1 %v14431_v8  ;;  %v12155_v37 = vld [vmem:[%s16369_s5 + $0xa0] sm:$0xff] (%p3082_p5) }
 0x6a0   : >> { %v3611_v38 = vpop.f32.mrb[6].mxu0 }
 0x6a1   : >> { %v13136_v39 = vpop.f32.mrb[7].mxu0 }
 0x6a4   : >> { %v3765_v41 = vpop.f32.mrb[8].mxu0 }
 0x6a5   : >> { %13140 = vmatmul.mubr.msk.f32.vlgmr.msra.gmra.mrb[2].mxu1 %vm3032_vm10, %v3611_v38  ;;  %v13148_v42 = vpop.f32.mrb[9].mxu0  ;;  %v12156_v38 = vld [vmem:[%s16369_s5 + $0xa8] sm:$0xff] (%p3082_p5) }
 0x6a6   : >> { %13150 = vmatpush3.msra.mxu1 %v12072_v40  ;;  %13151 = vmatprep.mubr.msk.f32.mxu1 %vm14430_vm12, %v14431_v8  ;;  %v13945_v40 = vpack.c.bf16 (%p3082_p5), %v12132_v36, %v12131_v35  ;;  %v13969_v42 = vpack.c.bf16 (%p3082_p5), %v12156_v38, %v12155_v37 }
 0x6a7   : >> { %13161 = vmatprep.subr.mxu1 %v14431_v8 }
 0x6a8   : >> { %v3911_v43 = vpop.f32.mrb[10].mxu0 }
 0x6a9   : >> { %v13160_v44 = vpop.f32.mrb[11].mxu0 }
 0x6aa   : > { %v12135_v44 = vld [vmem:[%s16369_s5 + $0x38] sm:$0xff] (%p3082_p5) }
 0x6ac   : >> { %v4057_v46 = vpop.f32.mrb[12].mxu0 }
 0x6ad   : >> { %13152 = vmatmul.mubr.msk.f32.vlgmr.msra.gmra.mrb[2].mxu1 %vm3032_vm10, %v3765_v41  ;;  %v13172_v48 = vpop.f32.mrb[13].mxu0 }
 0x6ae   : >> { %13162 = vmatpush3.msra.mxu1 %v12076_v45  ;;  %13163 = vmatprep.mubr.msk.f32.mxu1 %vm14430_vm12, %v14431_v8  ;;  %v12158_v45 = vld [vmem:[%s16369_s5 + $0xb0] sm:$0xff] (%p3082_p5) }
 0x6af   : >> { %13173 = vmatprep.subr.mxu1 %v14431_v8 }
 0x6b0   : >> { %v4203_v49 = vpop.f32.mrb[14].mxu0 }
 0x6b1   : >> { %v13184_v50 = vpop.f32.mrb[15].mxu0 }
 0x6b4   : >> { %v4357_v52 = vpop.f32.mrb[16].mxu0 }
 0x6b5   : >> { %13164 = vmatmul.mubr.msk.f32.vlgmr.msra.gmra.mrb[2].mxu1 %vm3032_vm10, %v3911_v43  ;;  %v13196_v53 = vpop.f32.mrb[17].mxu0  ;;  %v12134_v43 = vld [vmem:[%s16369_s5 + $0x30] sm:$0xff] (%p3082_p5) }
 0x6b6   : >> { %13174 = vmatpush3.msra.mxu1 %v12080_v51  ;;  %13175 = vmatprep.mubr.msk.f32.mxu1 %vm14430_vm12, %v14431_v8  ;;  %v12138_v53 = vld [vmem:[%s16369_s5 + $0x48] sm:$0xff] (%p3082_p5) }
 0x6b7   : >> { %13185 = vmatprep.subr.mxu1 %v14431_v8 }
 0x6b8   : >> { %v4503_v54 = vpop.f32.mrb[18].mxu0 }
 0x6b9   : >> { %v13208_v55 = vpop.f32.mrb[19].mxu0 }
 0x6ba   : > { %v12162_v55 = vld [vmem:[%s16369_s5 + $0xc8] sm:$0xff] (%p3082_p5) }
 0x6bc   : >> { %v4649_v57 = vpop.f32.mrb[20].mxu0 }
 0x6bd   : >> { %13176 = vmatmul.mubr.msk.f32.vlgmr.msra.gmra.mrb[2].mxu1 %vm3032_vm10, %v4057_v46  ;;  %v13220_v58 = vpop.f32.mrb[21].mxu0  ;;  %v12159_v46 = vld [vmem:[%s16369_s5 + $0xb8] sm:$0xff] (%p3082_p5) }
 0x6be   : >> { %13186 = vmatpush3.msra.mxu1 %v12084_v56  ;;  %13187 = vmatprep.mubr.msk.f32.mxu1 %vm14430_vm12, %v14431_v8  ;;  %v13972_v51 = vpack.c.bf16 (%p3082_p5), %v12159_v46, %v12158_v45 }
 0x6bf   : >> { %13197 = vmatprep.subr.mxu1 %v14431_v8 }
 0x6c0   : >> { %v4795_v59 = vpop.f32.mrb[22].mxu0 }
 0x6c1   : >> { %v13232_v0 = vpop.f32.mrb[23].mxu0 }
 0x6c2   : > { %v12140_v0 = vld [vmem:[%s16369_s5 + $0x50] sm:$0xff] (%p3082_p5) }
 0x6c4   : >> { %v4949_v61 = vpop.f32.mrb[24].mxu0 }
 0x6c5   : >> { %13188 = vmatmul.mubr.msk.f32.vlgmr.msra.gmra.mrb[2].mxu1 %vm3032_vm10, %v4203_v49  ;;  %v13244_v62 = vpop.f32.mrb[25].mxu0  ;;  %v13948_v49 = vpack.c.bf16 (%p3082_p5), %v12135_v44, %v12134_v43 }
 0x6c6   : >> { %13198 = vmatpush3.msra.mxu1 %v12092_v60  ;;  %13199 = vmatprep.mubr.msk.f32.mxu1 %vm14430_vm12, %v14431_v8  ;;  %v12141_v60 = vld [vmem:[%s16369_s5 + $0x58] sm:$0xff] (%p3082_p5) }
 0x6c7   : >> { %13209 = vmatprep.subr.mxu1 %v14431_v8  ;;  %v12165_v62 = vld [vmem:[%s16369_s5 + $0xd8] sm:$0xff] (%p3082_p5) }
 0x6c8   : >> { %v5095_v63 = vpop.f32.mrb[26].mxu0 }
 0x6c9   : >> { %v13256_v1 = vpop.f32.mrb[27].mxu0 }
 0x6ca   : > { %v13954_v1 = vpack.c.bf16 (%p3082_p5), %v12141_v60, %v12140_v0 }
 0x6cc   : >> { %v5241_v6 = vpop.f32.mrb[28].mxu0 }
 0x6cd   : >> { %13200 = vmatmul.mubr.msk.f32.vlgmr.msra.gmra.mrb[2].mxu1 %vm3032_vm10, %v4357_v52  ;;  %v13268_v7 = vpop.f32.mrb[29].mxu0  ;;  %v12137_v52 = vld [vmem:[%s16369_s5 + $0x40] sm:$0xff] (%p3082_p5) }
 0x6ce   : >> { %13210 = vmatpush3.msra.mxu1 %v12096_v5  ;;  %13211 = vmatprep.mubr.msk.f32.mxu1 %vm14430_vm12, %v14431_v8  ;;  %v12143_v7 = vld [vmem:[%s16369_s5 + $0x60] sm:$0xff] (%p3082_p5) }
 0x6cf   : >> { %13221 = vmatprep.subr.mxu1 %v14431_v8 }
 0x6d0   : >> { %v5387_v9 = vpop.f32.mrb[30].mxu0 }
 0x6d1   : >> { %v13280_v10 = vpop.f32.mrb[31].mxu0 }
 0x6d2   : > { %v12167_v10 = vld [vmem:[%s16369_s5 + $0xe0] sm:$0xff] (%p3082_p5) }
 0x6d5   : >> { %13212 = vmatmul.mubr.msk.f32.vlgmr.msra.gmra.mrb[2].mxu1 %vm3032_vm10, %v4503_v54  ;;  %v12161_v54 = vld [vmem:[%s16369_s5 + $0xc0] sm:$0xff] (%p3082_p5) }
 0x6d6   : >> { %13222 = vmatpush3.msra.mxu1 %v12100_v11  ;;  %13223 = vmatprep.mubr.msk.f32.mxu1 %vm14430_vm12, %v14431_v8  ;;  %v12168_v11 = vld [vmem:[%s16369_s5 + $0xe8] sm:$0xff] (%p3082_p5) }
 0x6d7   : >> { %13233 = vmatprep.subr.mxu1 %v14431_v8 }
 0x6dd   : >> { %13224 = vmatmul.mubr.msk.f32.vlgmr.msra.gmra.mrb[2].mxu1 %vm3032_vm10, %v4649_v57  ;;  %v13951_v57 = vpack.c.bf16 (%p3082_p5), %v12138_v53, %v12137_v52 }
 0x6de   : >> { %13234 = vmatpush3.msra.mxu1 %v12104_v13  ;;  %13235 = vmatprep.mubr.msk.f32.mxu1 %vm14430_vm12, %v14431_v8 }
 0x6df   : >> { %13245 = vmatprep.subr.mxu1 %v14431_v8 }
 0x6e5   : >> { %13236 = vmatmul.mubr.msk.f32.vlgmr.msra.gmra.mrb[2].mxu1 %vm3032_vm10, %v4795_v59  ;;  %v13975_v59 = vpack.c.bf16 (%p3082_p5), %v12162_v55, %v12161_v54 }
 0x6e6   : >> { %13246 = vmatpush3.msra.mxu1 %v12112_v14  ;;  %13247 = vmatprep.mubr.msk.f32.mxu1 %vm14430_vm12, %v14431_v8 }
 0x6e7   : >> { %13257 = vmatprep.subr.mxu1 %v14431_v8 }
 0x6ed   : >> { %13248 = vmatmul.mubr.msk.f32.vlgmr.msra.gmra.mrb[2].mxu1 %vm3032_vm10, %v4949_v61  ;;  %v12164_v61 = vld [vmem:[%s16369_s5 + $0xd0] sm:$0xff] (%p3082_p5) }
 0x6ee   : >> { %13258 = vmatpush3.msra.mxu1 %v12116_v15  ;;  %13259 = vmatprep.mubr.msk.f32.mxu1 %vm14430_vm12, %v14431_v8 }
 0x6ef   : >> { %13269 = vmatprep.subr.mxu1 %v14431_v8 }
 0x6f5   : >> { %13260 = vmatmul.mubr.msk.f32.vlgmr.msra.gmra.mrb[2].mxu1 %vm3032_vm10, %v5095_v63 }
 0x6f6   : >> { %13270 = vmatpush3.msra.mxu1 %v12120_v16  ;;  %13271 = vmatprep.mubr.msk.f32.mxu1 %vm14430_vm12, %v14431_v8  ;;  %v13981_v16 = vpack.c.bf16 (%p3082_p5), %v12168_v11, %v12167_v10 }
 0x6f7   : >> { %13281 = vmatprep.subr.mxu1 %v14431_v8 }
 0x6fd   : >> { %13272 = vmatmul.mubr.msk.f32.vlgmr.msra.gmra.mrb[2].mxu1 %vm3032_vm10, %v5241_v6  ;;  %v13978_v6 = vpack.c.bf16 (%p3082_p5), %v12165_v62, %v12164_v61 }
 0x6fe   : >> { %13282 = vmatpush3.msra.mxu1 %v12124_v17  ;;  %13283 = vmatprep.mubr.msk.f32.mxu1 %vm14430_vm12, %v14431_v8  ;;  %v5474_v8 = vld [vmem:[%s16369_s5] sm:$0xff] (%p3082_p5)  ;;  %v12146_v17 = vld [vmem:[%s16369_s5 + $0x70] sm:$0xff] (%p3082_p5) }
 0x6ff   : > { %13938 = vmatprep.subr.bf16.mxu1 (%p3082_p5), %v14433_v28  ;;  %v13939_v29 = vpack.c.bf16 (%p3082_p5), %v5475_v26, %v5474_v8 }
 0x705   : >> { %13284 = vmatmul.mubr.msk.f32.vlgmr.msra.gmra.mrb[2].mxu1 %vm3032_vm10, %v5387_v9  ;;  %v12144_v9 = vld [vmem:[%s16369_s5 + $0x68] sm:$0xff] (%p3082_p5) }
 0x706   : > { %13290 = vmatprep.mubr.msk.f32.mxu1 (%p3082_p5), %vm14434_vm2, %v14425_v2  ;;  %13940 = vmatpush3.bf16.msra.mxu1 (%p3082_p5), %v13939_v29  ;;  %v13957_v14 = vpack.c.bf16 (%p3082_p5), %v12144_v9, %v12143_v7 }
 0x707   : > { %13941 = vmatprep.subr.bf16.mxu1 (%p3082_p5), %v14433_v28 }
 0x7d7   : > { %3084 = sbr.rel (!%p3082_p5) target bundleno = 1253 (0x4e5), region = 291 }
 0x7d8   : >> { %v5462_v22 = vpop.f32.mrb[2].mxu1 }
 0x7d9   : >> { %v14162_v23 = vadd.f32 %v5462_v22, %v3243_v18  ;;  %v13285_v24 = vpop.f32.mrb[3].mxu1  ;;  %v12147_v18 = vld [vmem:[%s16369_s5 + $0x78] sm:$0xff] (%p3082_p5)  ;;  %v12170_v22 = vld [vmem:[%s16369_s5 + $0xf0] sm:$0xff] (%p3082_p5) }
 0x7db   : >> { %v5467_v25 = vmax.f32 %v14162_v23, 0.0  ;;  %v12171_v23 = vld [vmem:[%s16369_s5 + $0xf8] sm:$0xff] (%p3082_p5) }
 0x7dc   : > { %v13984_v26 = vpack.c.bf16 (%p3082_p5), %v12171_v23, %v12170_v22 }
 0x7dd   : >> { %5471 = vst.msk [vmem:[%s5469_s24] sm:$0xf] %vm5470_vm1, %v5467_v25  ;;  %v13960_v25 = vpack.c.bf16 (%p3082_p5), %v12147_v18, %v12146_v17 }
 0x7e4   : > { %v5473_v30 = vld [vmem:[#allocation5] sm:$0x1]  ;;  %v6099_v33 = vld [vmem:[#allocation5 + $0x8] sm:$0x1]  ;;  %v5551_v39 = vld [vmem:[#allocation5 + $0x1] sm:$0x1] }
 0x7e5   : > { %13291 = vmatmul.mubr.msk.f32.vlgmr.msra.gmra.mrb[0].mxu1 %vm5476_vm3, %v5473_v30  ;;  %13347 = vmatmul.mubr.msk.f32.vlgmr.msra.gmra.mrb[0].mxu0 %vm5476_vm3, %v6099_v33  ;;  %v6177_v41 = vld [vmem:[#allocation5 + $0x9] sm:$0x1]  ;;  %v5629_v48 = vld [vmem:[#allocation5 + $0x2] sm:$0x1]  ;;  %v6255_v50 = vld [vmem:[#allocation5 + $0xa] sm:$0x1] }
 0x7e6   : > { %13943 = vmatpush3.bf16.msra.mxu1 %v13942_v31  ;;  %13967 = vmatpush3.bf16.msra.mxu0 %v13966_v34  ;;  %v5707_v56 = vld [vmem:[#allocation5 + $0x3] sm:$0x1]  ;;  %v6333_v58 = vld [vmem:[#allocation5 + $0xb] sm:$0x1]  ;;  %v5786_v63 = vld [vmem:[#allocation5 + $0x4] sm:$0x1] }
 0x7e7   : > { %13297 = vmatprep.mubr.msk.f32.mxu1 %vm14434_vm2, %v14425_v2  ;;  %13353 = vmatprep.mubr.msk.f32.mxu0 %vm14434_vm2, %v14425_v2  ;;  %v6412_v5 = vld [vmem:[#allocation5 + $0xc] sm:$0x1]  ;;  %v5864_v13 = vld [vmem:[#allocation5 + $0x5] sm:$0x1]  ;;  %v6490_v15 = vld [vmem:[#allocation5 + $0xd] sm:$0x1] }
 0x7e8   : > { %13944 = vmatprep.subr.bf16.mxu1 %v14433_v28  ;;  %13968 = vmatprep.subr.bf16.mxu0 %v14433_v28  ;;  %v5942_v24 = vld [vmem:[#allocation5 + $0x6] sm:$0x1]  ;;  %v6568_v8 = vld [vmem:[#allocation5 + $0xe] sm:$0x1]  ;;  %v6020_v27 = vld [vmem:[#allocation5 + $0x7] sm:$0x1] }
 0x7e9   : > { %v6646_v29 = vld [vmem:[#allocation5 + $0xf] sm:$0x1] }
 0x7ed   : > { %13298 = vmatmul.mubr.msk.f32.vlgmr.msra.gmra.mrb[0].mxu1 %vm5476_vm3, %v5551_v39  ;;  %13354 = vmatmul.mubr.msk.f32.vlgmr.msra.gmra.mrb[0].mxu0 %vm5476_vm3, %v6177_v41 }
 0x7ee   : > { %13946 = vmatpush3.bf16.msra.mxu1 %v13945_v40  ;;  %13970 = vmatpush3.bf16.msra.mxu0 %v13969_v42 }
 0x7ef   : > { %13304 = vmatprep.mubr.msk.f32.mxu1 %vm14434_vm2, %v14425_v2  ;;  %13360 = vmatprep.mubr.msk.f32.mxu0 %vm14434_vm2, %v14425_v2 }
 0x7f0   : > { %13947 = vmatprep.subr.bf16.mxu1 %v14433_v28  ;;  %13971 = vmatprep.subr.bf16.mxu0 %v14433_v28 }
 0x7f5   : > { %13305 = vmatmul.mubr.msk.f32.vlgmr.msra.gmra.mrb[0].mxu1 %vm5476_vm3, %v5629_v48  ;;  %13361 = vmatmul.mubr.msk.f32.vlgmr.msra.gmra.mrb[0].mxu0 %vm5476_vm3, %v6255_v50 }
 0x7f6   : > { %13949 = vmatpush3.bf16.msra.mxu1 %v13948_v49  ;;  %13973 = vmatpush3.bf16.msra.mxu0 %v13972_v51 }
 0x7f7   : > { %13311 = vmatprep.mubr.msk.f32.mxu1 %vm14434_vm2, %v14425_v2  ;;  %13367 = vmatprep.mubr.msk.f32.mxu0 %vm14434_vm2, %v14425_v2 }
 0x7f8   : > { %13950 = vmatprep.subr.bf16.mxu1 %v14433_v28  ;;  %13974 = vmatprep.subr.bf16.mxu0 %v14433_v28 }
 0x7fd   : > { %13312 = vmatmul.mubr.msk.f32.vlgmr.msra.gmra.mrb[0].mxu1 %vm5476_vm3, %v5707_v56  ;;  %13368 = vmatmul.mubr.msk.f32.vlgmr.msra.gmra.mrb[0].mxu0 %vm5476_vm3, %v6333_v58 }
 0x7fe   : > { %13952 = vmatpush3.bf16.msra.mxu1 %v13951_v57  ;;  %13976 = vmatpush3.bf16.msra.mxu0 %v13975_v59 }
 0x7ff   : > { %13318 = vmatprep.mubr.msk.f32.mxu1 %vm14434_vm2, %v14425_v2  ;;  %13374 = vmatprep.mubr.msk.f32.mxu0 %vm14434_vm2, %v14425_v2 }
 0x800   : > { %13953 = vmatprep.subr.bf16.mxu1 %v14433_v28  ;;  %13977 = vmatprep.subr.bf16.mxu0 %v14433_v28 }
 0x805   : > { %13319 = vmatmul.mubr.msk.f32.vlgmr.msra.gmra.mrb[0].mxu1 %vm5476_vm3, %v5786_v63  ;;  %13375 = vmatmul.mubr.msk.f32.vlgmr.msra.gmra.mrb[0].mxu0 %vm5476_vm3, %v6412_v5 }
 0x806   : > { %13955 = vmatpush3.bf16.msra.mxu1 %v13954_v1  ;;  %13979 = vmatpush3.bf16.msra.mxu0 %v13978_v6 }
 0x807   : > { %13325 = vmatprep.mubr.msk.f32.mxu1 %vm14434_vm2, %v14425_v2  ;;  %13381 = vmatprep.mubr.msk.f32.mxu0 %vm14434_vm2, %v14425_v2 }
 0x808   : > { %13956 = vmatprep.subr.bf16.mxu1 %v14433_v28  ;;  %13980 = vmatprep.subr.bf16.mxu0 %v14433_v28 }
 0x80d   : > { %13326 = vmatmul.mubr.msk.f32.vlgmr.msra.gmra.mrb[0].mxu1 %vm5476_vm3, %v5864_v13  ;;  %13382 = vmatmul.mubr.msk.f32.vlgmr.msra.gmra.mrb[0].mxu0 %vm5476_vm3, %v6490_v15 }
 0x80e   : > { %13958 = vmatpush3.bf16.msra.mxu1 %v13957_v14  ;;  %13982 = vmatpush3.bf16.msra.mxu0 %v13981_v16 }
 0x80f   : > { %13332 = vmatprep.mubr.msk.f32.mxu1 %vm14434_vm2, %v14425_v2  ;;  %13388 = vmatprep.mubr.msk.f32.mxu0 %vm14434_vm2, %v14425_v2 }
 0x810   : > { %13959 = vmatprep.subr.bf16.mxu1 %v14433_v28  ;;  %13983 = vmatprep.subr.bf16.mxu0 %v14433_v28  ;;  %v15492_v28 = vld [vmem:[%s16372_s8] ss:$0 sm:$0xff] }
 0x815   : > { %13333 = vmatmul.mubr.msk.f32.vlgmr.msra.gmra.mrb[0].mxu1 %vm5476_vm3, %v5942_v24  ;;  %13389 = vmatmul.mubr.msk.f32.vlgmr.msra.gmra.mrb[0].mxu0 %vm5476_vm3, %v6568_v8 }
 0x816   : > { %13961 = vmatpush3.bf16.msra.mxu1 %v13960_v25  ;;  %13985 = vmatpush3.bf16.msra.mxu0 %v13984_v26 }
 0x817   : > { %13339 = vmatprep.mubr.msk.f32.mxu1 %vm14434_vm2, %v14425_v2  ;;  %13395 = vmatprep.mubr.msk.f32.mxu0 %vm14434_vm2, %v14425_v2 }
 0x81d   : > { %13340 = vmatmul.mubr.msk.f32.vlgmr.msra.gmra.mrb[0].mxu1 %vm5476_vm3, %v6020_v27  ;;  %13396 = vmatmul.mubr.msk.f32.vlgmr.msra.gmra.mrb[0].mxu0 %vm5476_vm3, %v6646_v29 }
 0x8f0   : > { %v6093_v19 = vpop.f32.mrb[0].mxu1  ;;  %v6719_v21 = vpop.f32.mrb[0].mxu0 }
 0x8f1   : > { %v14191_v20 = vadd.f32 %v6093_v19, %v5472_v12  ;;  %v13341_v47 = vpop.f32.mrb[1].mxu1  ;;  %v13397_v30 = vpop.f32.mrb[1].mxu0 }
 0x8f3   : > { %v14192_v31 = vadd.f32 %v14191_v20, %v6719_v21 }
 0x8f5   : > { %6725 = vst.msk [vmem:[#allocation6] sm:$0x1] %vm6724_vm5, %v14192_v31 }
 0x8fc   : > { %v6734_v32 = vld [vmem:[#allocation6] sm:$0x1] }
 0x8fd   : > { %6736 = vst.msk [vmem:[#allocation7 + $0x1b] sm:$0x1] %vm6724_vm5, %v6734_v32 }
 0x8fe LB: >> { %v6753_v33 = vld [vmem:[%s16371_s7] sm:$0xff]  ;;  %v6754_v34 = vld [vmem:[%s16371_s7 + $0x8] sm:$0xff]  ;;  %v14435_v36 = vmov 0.0|0.0   ;;  %v6755_v39 = vld [vmem:[%s16371_s7 + $0x10] sm:$0xff]  ;;  %vm14436_vm6 = vmmov 0   ;;  %v14437_v44 = vmov 0.0   ;;  %s14415_s16 = sphi %s15497_s16, %s6749_s16  }
 0x8ff   : >> { %v12218_v35 = vld [vmem:[%s16371_s7 + $0x100] sm:$0xff]  ;;  %13986 = vmatprep.subr.bf16.mxu1 %v14435_v36  ;;  %14034 = vmatprep.subr.bf16.mxu0 %v14435_v36  ;;  %v13987_v37 = vpack.c.bf16 %v6754_v34, %v6753_v33  ;;  %v12219_v38 = vld [vmem:[%s16371_s7 + $0x108] sm:$0xff]  ;;  %v6756_v40 = vld [vmem:[%s16371_s7 + $0x18] sm:$0xff]  ;;  %s12174_s21 = sshll.u32 %s14415_s16, 3  ;;  %vm6757_vm8 = vcmask 261120   ;;  %s12266_s20 = sshll.u32 %s14415_s16, 2 }
 0x900   : >> { %v14035_v41 = vpack.c.bf16 %v12219_v38, %v12218_v35  ;;  %v12220_v42 = vld [vmem:[%s16371_s7 + $0x110] sm:$0xff]  ;;  %v12221_v43 = vld [vmem:[%s16371_s7 + $0x118] sm:$0xff]  ;;  %13406 = vmatprep.mubr.msk.f32.mxu1 %vm14436_vm6, %v14437_v44  ;;  %13494 = vmatprep.mubr.msk.f32.mxu0 %vm14436_vm6, %v14437_v44  ;;  %v13990_v45 = vpack.c.bf16 %v6756_v40, %v6755_v39  ;;  %v12176_v48 = vld [vmem:[%s16371_s7 + $0x20] sm:$0xff]  ;;  %s15547_s14 = scalar_lea.vmem [#allocation7], %s12174_s21  ;;  %s8043_s15 = scalar_lea.vmem [#allocation8], %s12266_s20 }
 0x901   : >> { %13988 = vmatpush3.bf16.msra.mxu1 %v13987_v37  ;;  %v14038_v46 = vpack.c.bf16 %v12221_v43, %v12220_v42  ;;  %v12177_v49 = vld [vmem:[%s16371_s7 + $0x28] sm:$0xff]  ;;  %v12224_v50 = vld [vmem:[%s16371_s7 + $0x120] sm:$0xff]  ;;  %v12178_v56 = vld [vmem:[%s16371_s7 + $0x30] sm:$0xff]  ;;  %s6749_s16 = sadd.s32 1, %s14415_s16  }
 0x902   : >> { %14036 = vmatpush3.bf16.msra.mxu0 %v14035_v41  ;;  %13989 = vmatprep.subr.bf16.mxu1 %v14435_v36  ;;  %v12225_v51 = vld [vmem:[%s16371_s7 + $0x128] sm:$0xff]  ;;  %v13993_v53 = vpack.c.bf16 %v12177_v49, %v12176_v48  ;;  %v12179_v57 = vld [vmem:[%s16371_s7 + $0x38] sm:$0xff]  ;;  %v12226_v58 = vld [vmem:[%s16371_s7 + $0x130] sm:$0xff]  ;;  %p6746_p6 = scmp.ge.s32.totalorder %s6749_s16, 4  }
 0x903   : >> { %14037 = vmatprep.subr.bf16.mxu0 %v14435_v36  ;;  %v14041_v55 = vpack.c.bf16 %v12225_v51, %v12224_v50  ;;  %v12227_v59 = vld [vmem:[%s16371_s7 + $0x138] sm:$0xff]  ;;  %v13996_v0 = vpack.c.bf16 %v12179_v57, %v12178_v56  ;;  %v12181_v61 = vld [vmem:[%s16371_s7 + $0x40] sm:$0xff]  ;;  %v12182_v62 = vld [vmem:[%s16371_s7 + $0x48] sm:$0xff]  ;;  %8046 = vst.msk [vmem:[#allocation9] sm:$0xff] (%p6746_p6), %vm5476_vm3, %v14425_v2  ;;  %vm8047_vm9 = vcmask (%p6746_p6), 124928   ;;  %vm8152_vm12 = vcmask (%p6746_p6), 129024  }
 0x904   : >> { %v6752_v52 = vld [vmem:[%s15547_s14] sm:$0xf]  ;;  %v12217_v54 = vld [vmem:[%s15547_s14 + $0x10] sm:$0xf]  ;;  %v14044_v60 = vpack.c.bf16 %v12227_v59, %v12226_v58  ;;  %v12231_v1 = vld [vmem:[%s16371_s7 + $0x148] sm:$0xff]  ;;  %v13999_v6 = vpack.c.bf16 %v12182_v62, %v12181_v61  ;;  %8049 = vst.msk [vmem:[#allocation9 + $0x10] sm:$0xff] (%p6746_p6), %vm5476_vm3, %v14425_v2 }
 0x905   : >> { %13991 = vmatpush3.bf16.msra.mxu1 %v13990_v45  ;;  %v12230_v63 = vld [vmem:[%s16371_s7 + $0x140] sm:$0xff]  ;;  %v12223_v7 = vld [vmem:[%s15547_s14 + $0x11] sm:$0xf]  ;;  %v12184_v11 = vld [vmem:[%s16371_s7 + $0x58] sm:$0xff]  ;;  %8053 = vst.msk [vmem:[#allocation9 + $0x30] sm:$0xff] (%p6746_p6), %vm5476_vm3, %v14425_v2  ;;  %s15879_s17 = smov (%p6746_p6), 0  }
 0x906   : >> { %14039 = vmatpush3.bf16.msra.mxu0 %v14038_v46  ;;  %13992 = vmatprep.subr.bf16.mxu1 %v14435_v36  ;;  %v6832_v5 = vld [vmem:[%s15547_s14 + $0x1] sm:$0xf]  ;;  %v14047_v9 = vpack.c.bf16 %v12231_v1, %v12230_v63  ;;  %v12183_v10 = vld [vmem:[%s16371_s7 + $0x50] sm:$0xff]  ;;  %v12233_v14 = vld [vmem:[%s16371_s7 + $0x158] sm:$0xff]  ;;  %8057 = vst.msk [vmem:[#allocation9 + $0x50] sm:$0xff] (%p6746_p6), %vm5476_vm3, %v14425_v2 }
 0x907   : >> { %14040 = vmatprep.subr.bf16.mxu0 %v14435_v36  ;;  %v12232_v13 = vld [vmem:[%s16371_s7 + $0x150] sm:$0xff]  ;;  %v14002_v15 = vpack.c.bf16 %v12184_v11, %v12183_v10  ;;  %v12186_v17 = vld [vmem:[%s16371_s7 + $0x60] sm:$0xff]  ;;  %v12187_v18 = vld [vmem:[%s16371_s7 + $0x68] sm:$0xff]  ;;  %8061 = vst.msk [vmem:[#allocation9 + $0x70] sm:$0xff] (%p6746_p6), %vm5476_vm3, %v14425_v2 }
 0x908   : >> { %13407 = vmatmul.mubr.msk.f32.vlgmr.msra.gmra.mrb[0].mxu1 %vm6757_vm8, %v6752_v52  ;;  %v14050_v16 = vpack.c.bf16 %v12233_v14, %v12232_v13  ;;  %v12236_v22 = vld [vmem:[%s16371_s7 + $0x160] sm:$0xff]  ;;  %v12237_v23 = vld [vmem:[%s16371_s7 + $0x168] sm:$0xff]  ;;  %v14005_v25 = vpack.c.bf16 %v12187_v18, %v12186_v17  ;;  %v12229_v8 = vld [vmem:[%s15547_s14 + $0x12] sm:$0xf]  ;;  %8065 = vst.msk [vmem:[#allocation9 + $0x90] sm:$0xff] (%p6746_p6), %vm5476_vm3, %v14425_v2 }
 0x909   : >> { %13495 = vmatmul.mubr.msk.f32.vlgmr.msra.gmra.mrb[0].mxu0 %vm6757_vm8, %v12217_v54  ;;  %13994 = vmatpush3.bf16.msra.mxu1 %v13993_v53  ;;  %v6912_v24 = vld [vmem:[%s15547_s14 + $0x2] sm:$0xf]  ;;  %v14053_v26 = vpack.c.bf16 %v12237_v23, %v12236_v22  ;;  %v12188_v27 = vld [vmem:[%s16371_s7 + $0x70] sm:$0xff]  ;;  %v12189_v29 = vld [vmem:[%s16371_s7 + $0x78] sm:$0xff]  ;;  %8067 = vst.msk [vmem:[#allocation9 + $0xa0] sm:$0xff] (%p6746_p6), %vm5476_vm3, %v14425_v2 }
 0x90a   : >> { %14042 = vmatpush3.bf16.msra.mxu0 %v14041_v55  ;;  %13995 = vmatprep.subr.bf16.mxu1 %v14435_v36  ;;  %v12238_v12 = vld [vmem:[%s16371_s7 + $0x170] sm:$0xff]  ;;  %v12239_v19 = vld [vmem:[%s16371_s7 + $0x178] sm:$0xff]  ;;  %v14008_v20 = vpack.c.bf16 %v12189_v29, %v12188_v27  ;;  %v12193_v47 = vld [vmem:[%s16371_s7 + $0x80] sm:$0xff]  ;;  %8051 = vst.msk [vmem:[#allocation9 + $0x20] sm:$0xff] (%p6746_p6), %vm5476_vm3, %v14425_v2 }
 0x90b   : >> { %14043 = vmatprep.subr.bf16.mxu0 %v14435_v36  ;;  %13417 = vmatprep.mubr.msk.f32.mxu1 %vm14436_vm6, %v14437_v44  ;;  %v14056_v21 = vpack.c.bf16 %v12239_v19, %v12238_v12  ;;  %v12194_v30 = vld [vmem:[%s16371_s7 + $0x88] sm:$0xff]  ;;  %v12243_v31 = vld [vmem:[%s16371_s7 + $0x180] sm:$0xff]  ;;  %v12235_v35 = vld [vmem:[%s15547_s14 + $0x13] sm:$0xf]  ;;  %8055 = vst.msk [vmem:[#allocation9 + $0x40] sm:$0xff] (%p6746_p6), %vm5476_vm3, %v14425_v2 }
 0x90c   : >> { %13505 = vmatprep.mubr.msk.f32.mxu0 %vm14436_vm6, %v14437_v44  ;;  %v12244_v32 = vld [vmem:[%s16371_s7 + $0x188] sm:$0xff]  ;;  %v6992_v33 = vld [vmem:[%s15547_s14 + $0x3] sm:$0xf]  ;;  %v14011_v34 = vpack.c.bf16 %v12194_v30, %v12193_v47  ;;  %v12195_v38 = vld [vmem:[%s16371_s7 + $0x90] sm:$0xff]  ;;  %8059 = vst.msk [vmem:[#allocation9 + $0x60] sm:$0xff] (%p6746_p6), %vm5476_vm3, %v14425_v2 }
 0x90d   : >> { %13997 = vmatpush3.bf16.msra.mxu1 %v13996_v0  ;;  %v14059_v37 = vpack.c.bf16 %v12244_v32, %v12243_v31  ;;  %v12196_v39 = vld [vmem:[%s16371_s7 + $0x98] sm:$0xff]  ;;  %v12245_v40 = vld [vmem:[%s16371_s7 + $0x190] sm:$0xff]  ;;  %v12199_v45 = vld [vmem:[%s16371_s7 + $0xa0] sm:$0xff]  ;;  %8063 = vst.msk [vmem:[#allocation9 + $0x80] sm:$0xff] (%p6746_p6), %vm5476_vm3, %v14425_v2 }
 0x90e   : >> { %14045 = vmatpush3.bf16.msra.mxu0 %v14044_v60  ;;  %13998 = vmatprep.subr.bf16.mxu1 %v14435_v36  ;;  %v12246_v41 = vld [vmem:[%s16371_s7 + $0x198] sm:$0xff]  ;;  %v14014_v42 = vpack.c.bf16 %v12196_v39, %v12195_v38  ;;  %v12200_v46 = vld [vmem:[%s16371_s7 + $0xa8] sm:$0xff]  ;;  %v12249_v48 = vld [vmem:[%s16371_s7 + $0x1a0] sm:$0xff]  ;;  %8048 = vst.msk [vmem:[#allocation9 + $0x8] sm:$0x7] (%p6746_p6), %vm8047_vm9, %v14425_v2 }
 0x90f   : >> { %14046 = vmatprep.subr.bf16.mxu0 %v14435_v36  ;;  %v14062_v43 = vpack.c.bf16 %v12246_v41, %v12245_v40  ;;  %v12250_v49 = vld [vmem:[%s16371_s7 + $0x1a8] sm:$0xff]  ;;  %v14017_v51 = vpack.c.bf16 %v12200_v46, %v12199_v45  ;;  %v12242_v52 = vld [vmem:[%s15547_s14 + $0x18] sm:$0xf]  ;;  %v12201_v54 = vld [vmem:[%s16371_s7 + $0xb0] sm:$0xff]  ;;  %8050 = vst.msk [vmem:[#allocation9 + $0x18] sm:$0x7] (%p6746_p6), %vm8047_vm9, %v14425_v2 }
 0x910   : >> { %13418 = vmatmul.mubr.msk.f32.vlgmr.msra.gmra.mrb[0].mxu1 %vm6757_vm8, %v6832_v5  ;;  %v12192_v50 = vld [vmem:[%s15547_s14 + $0x8] sm:$0xf]  ;;  %v14065_v53 = vpack.c.bf16 %v12250_v49, %v12249_v48  ;;  %v12202_v55 = vld [vmem:[%s16371_s7 + $0xb8] sm:$0xff]  ;;  %v12251_v56 = vld [vmem:[%s16371_s7 + $0x1b0] sm:$0xff]  ;;  %8052 = vst.msk [vmem:[#allocation9 + $0x28] sm:$0x7] (%p6746_p6), %vm8047_vm9, %v14425_v2 }
 0x911   : >> { %13506 = vmatmul.mubr.msk.f32.vlgmr.msra.gmra.mrb[0].mxu0 %vm6757_vm8, %v12223_v7  ;;  %14000 = vmatpush3.bf16.msra.mxu1 %v13999_v6  ;;  %v12252_v57 = vld [vmem:[%s16371_s7 + $0x1b8] sm:$0xff]  ;;  %v14020_v58 = vpack.c.bf16 %v12202_v55, %v12201_v54  ;;  %v12205_v0 = vld [vmem:[%s16371_s7 + $0xc0] sm:$0xff]  ;;  %v12206_v60 = vld [vmem:[%s16371_s7 + $0xc8] sm:$0xff]  ;;  %8054 = vst.msk [vmem:[#allocation9 + $0x38] sm:$0x7] (%p6746_p6), %vm8047_vm9, %v14425_v2 }
 0x912   : >> { %14048 = vmatpush3.bf16.msra.mxu0 %v14047_v9  ;;  %14001 = vmatprep.subr.bf16.mxu1 %v14435_v36  ;;  %v14068_v59 = vpack.c.bf16 %v12252_v57, %v12251_v56  ;;  %v12255_v61 = vld [vmem:[%s16371_s7 + $0x1c0] sm:$0xff]  ;;  %v12256_v62 = vld [vmem:[%s16371_s7 + $0x1c8] sm:$0xff]  ;;  %v14023_v1 = vpack.c.bf16 %v12206_v60, %v12205_v0  ;;  %v12248_v5 = vld [vmem:[%s15547_s14 + $0x19] sm:$0xf]  ;;  %8058 = vst.msk [vmem:[#allocation9 + $0x58] sm:$0x7] (%p6746_p6), %vm8047_vm9, %v14425_v2 }
 0x913   : >> { %14049 = vmatprep.subr.bf16.mxu0 %v14435_v36  ;;  %13428 = vmatprep.mubr.msk.f32.mxu1 %vm14436_vm6, %v14437_v44  ;;  %v12198_v63 = vld [vmem:[%s15547_s14 + $0x9] sm:$0xf]  ;;  %v14071_v6 = vpack.c.bf16 %v12256_v62, %v12255_v61  ;;  %v12207_v7 = vld [vmem:[%s16371_s7 + $0xd0] sm:$0xff]  ;;  %v12208_v9 = vld [vmem:[%s16371_s7 + $0xd8] sm:$0xff]  ;;  %8062 = vst.msk [vmem:[#allocation9 + $0x78] sm:$0x7] (%p6746_p6), %vm8047_vm9, %v14425_v2 }
 0x914   : >> { %13516 = vmatprep.mubr.msk.f32.mxu0 %vm14436_vm6, %v14437_v44  ;;  %v12257_v10 = vld [vmem:[%s16371_s7 + $0x1d0] sm:$0xff]  ;;  %v12258_v11 = vld [vmem:[%s16371_s7 + $0x1d8] sm:$0xff]  ;;  %v14026_v13 = vpack.c.bf16 %v12208_v9, %v12207_v7  ;;  %v12261_v17 = vld [vmem:[%s16371_s7 + $0x1e0] sm:$0xff]  ;;  %8066 = vst.msk [vmem:[#allocation9 + $0x98] sm:$0x7] (%p6746_p6), %vm8047_vm9, %v14425_v2 }
 0x915   : >> { %14003 = vmatpush3.bf16.msra.mxu1 %v14002_v15  ;;  %v14074_v14 = vpack.c.bf16 %v12258_v11, %v12257_v10  ;;  %v12211_v15 = vld [vmem:[%s16371_s7 + $0xe0] sm:$0xff]  ;;  %v12262_v18 = vld [vmem:[%s16371_s7 + $0x1e8] sm:$0xff]  ;;  %v12263_v27 = vld [vmem:[%s16371_s7 + $0x1f0] sm:$0xff]  ;;  %8068 = vst.msk [vmem:[#allocation9 + $0xa8] sm:$0x7] (%p6746_p6), %vm8047_vm9, %v14425_v2 }
 0x916   : >> { %14051 = vmatpush3.bf16.msra.mxu0 %v14050_v16  ;;  %14004 = vmatprep.subr.bf16.mxu1 %v14435_v36  ;;  %v12212_v16 = vld [vmem:[%s16371_s7 + $0xe8] sm:$0xff]  ;;  %v12264_v29 = vld [vmem:[%s16371_s7 + $0x1f8] sm:$0xff]  ;;  %8056 = vst.msk [vmem:[#allocation9 + $0x48] sm:$0x7] (%p6746_p6), %vm8047_vm9, %v14425_v2  ;;  %8060 = vst.msk [vmem:[#allocation9 + $0x68] sm:$0x7] (%p6746_p6), %vm8047_vm9, %v14425_v2 }
 0x917   : >> { %14052 = vmatprep.subr.bf16.mxu0 %v14435_v36  ;;  %v12204_v22 = vld [vmem:[%s15547_s14 + $0xa] sm:$0xf]  ;;  %v14029_v23 = vpack.c.bf16 %v12212_v16, %v12211_v15  ;;  %v14080_v19 = vpack.c.bf16 %v12264_v29, %v12263_v27  ;;  %8064 = vst.msk [vmem:[#allocation9 + $0x88] sm:$0x7] (%p6746_p6), %vm8047_vm9, %v14425_v2  ;;  %v15877_v40 = vld [vmem:[%s16374_s10] ss:$0 sm:$0xff] (%p6746_p6) }
 0x918   : >> { %13429 = vmatmul.mubr.msk.f32.vlgmr.msra.gmra.mrb[0].mxu1 %vm6757_vm8, %v6912_v24  ;;  %v12254_v24 = vld [vmem:[%s15547_s14 + $0x1a] sm:$0xf] }
 0x919   : >> { %13517 = vmatmul.mubr.msk.f32.vlgmr.msra.gmra.mrb[0].mxu0 %vm6757_vm8, %v12229_v8  ;;  %14006 = vmatpush3.bf16.msra.mxu1 %v14005_v25  ;;  %v14077_v25 = vpack.c.bf16 %v12262_v18, %v12261_v17  ;;  %v12213_v8 = vld [vmem:[%s16371_s7 + $0xf0] sm:$0xff] }
 0x91a   : >> { %14054 = vmatpush3.bf16.msra.mxu0 %v14053_v26  ;;  %14007 = vmatprep.subr.bf16.mxu1 %v14435_v36  ;;  %v12214_v26 = vld [vmem:[%s16371_s7 + $0xf8] sm:$0xff] }
 0x91b   : >> { %14055 = vmatprep.subr.bf16.mxu0 %v14435_v36  ;;  %13439 = vmatprep.mubr.msk.f32.mxu1 %vm14436_vm6, %v14437_v44  ;;  %v14032_v12 = vpack.c.bf16 %v12214_v26, %v12213_v8 }
 0x91c   : >> { %13527 = vmatprep.mubr.msk.f32.mxu0 %vm14436_vm6, %v14437_v44 }
 0x91d   : >> { %14009 = vmatpush3.bf16.msra.mxu1 %v14008_v20  ;;  %v12210_v20 = vld [vmem:[%s15547_s14 + $0xb] sm:$0xf] }
 0x91e   : >> { %14057 = vmatpush3.bf16.msra.mxu0 %v14056_v21  ;;  %14010 = vmatprep.subr.bf16.mxu1 %v14435_v36  ;;  %v12260_v21 = vld [vmem:[%s15547_s14 + $0x1b] sm:$0xf] }
 0x91f   : >> { %14058 = vmatprep.subr.bf16.mxu0 %v14435_v36 }
 0x920   : >> { %13440 = vmatmul.mubr.msk.f32.vlgmr.msra.gmra.mrb[0].mxu1 %vm6757_vm8, %v6992_v33 }
 0x921   : >> { %13528 = vmatmul.mubr.msk.f32.vlgmr.msra.gmra.mrb[0].mxu0 %vm6757_vm8, %v12235_v35  ;;  %14012 = vmatpush3.bf16.msra.mxu1 %v14011_v34  ;;  %v8069_v35 = vmul.u32 (%p6746_p6), 2, %v14640_v4 }
 0x922   : >> { %14060 = vmatpush3.bf16.msra.mxu0 %v14059_v37  ;;  %14013 = vmatprep.subr.bf16.mxu1 %v14435_v36 }
 0x923   : >> { %14061 = vmatprep.subr.bf16.mxu0 %v14435_v36  ;;  %13450 = vmatprep.mubr.msk.f32.mxu1 %vm14436_vm6, %v14437_v44  ;;  %vm8070_vm11 = vcmp.eq.s32.totalorder (%p6746_p6), %v14638_v3, %v8069_v35 }
 0x924   : >> { %13538 = vmatprep.mubr.msk.f32.mxu0 %vm14436_vm6, %v14437_v44  ;;  %v15858_v39 = vsel (%p6746_p6), %vm8070_vm11, 1.0, %v14425_v2 }
 0x925   : >> { %14015 = vmatpush3.bf16.msra.mxu1 %v14014_v42 }
 0x926   : >> { %14063 = vmatpush3.bf16.msra.mxu0 %v14062_v43  ;;  %14016 = vmatprep.subr.bf16.mxu1 %v14435_v36 }
 0x927   : >> { %14064 = vmatprep.subr.bf16.mxu0 %v14435_v36 }
 0x928   : >> { %13451 = vmatmul.mubr.msk.f32.vlgmr.msra.gmra.mrb[0].mxu1 %vm6757_vm8, %v12192_v50 }
 0x929   : >> { %13539 = vmatmul.mubr.msk.f32.vlgmr.msra.gmra.mrb[0].mxu0 %vm6757_vm8, %v12242_v52  ;;  %14018 = vmatpush3.bf16.msra.mxu1 %v14017_v51 }
 0x92a   : >> { %14066 = vmatpush3.bf16.msra.mxu0 %v14065_v53  ;;  %14019 = vmatprep.subr.bf16.mxu1 %v14435_v36 }
 0x92b   : >> { %14067 = vmatprep.subr.bf16.mxu0 %v14435_v36  ;;  %13461 = vmatprep.mubr.msk.f32.mxu1 %vm14436_vm6, %v14437_v44 }
 0x92c   : >> { %13549 = vmatprep.mubr.msk.f32.mxu0 %vm14436_vm6, %v14437_v44 }
 0x92d   : >> { %14021 = vmatpush3.bf16.msra.mxu1 %v14020_v58 }
 0x92e   : >> { %14069 = vmatpush3.bf16.msra.mxu0 %v14068_v59  ;;  %14022 = vmatprep.subr.bf16.mxu1 %v14435_v36 }
 0x92f   : >> { %14070 = vmatprep.subr.bf16.mxu0 %v14435_v36 }
 0x930   : >> { %13462 = vmatmul.mubr.msk.f32.vlgmr.msra.gmra.mrb[0].mxu1 %vm6757_vm8, %v12198_v63 }
 0x931   : >> { %13550 = vmatmul.mubr.msk.f32.vlgmr.msra.gmra.mrb[0].mxu0 %vm6757_vm8, %v12248_v5  ;;  %14024 = vmatpush3.bf16.msra.mxu1 %v14023_v1 }
 0x932   : >> { %14072 = vmatpush3.bf16.msra.mxu0 %v14071_v6  ;;  %14025 = vmatprep.subr.bf16.mxu1 %v14435_v36 }
 0x933   : >> { %14073 = vmatprep.subr.bf16.mxu0 %v14435_v36  ;;  %13472 = vmatprep.mubr.msk.f32.mxu1 %vm14436_vm6, %v14437_v44 }
 0x934   : >> { %13560 = vmatprep.mubr.msk.f32.mxu0 %vm14436_vm6, %v14437_v44 }
 0x935   : >> { %14027 = vmatpush3.bf16.msra.mxu1 %v14026_v13 }
 0x936   : >> { %14075 = vmatpush3.bf16.msra.mxu0 %v14074_v14  ;;  %14028 = vmatprep.subr.bf16.mxu1 %v14435_v36 }
 0x937   : >> { %14076 = vmatprep.subr.bf16.mxu0 %v14435_v36 }
 0x938   : >> { %13473 = vmatmul.mubr.msk.f32.vlgmr.msra.gmra.mrb[0].mxu1 %vm6757_vm8, %v12204_v22 }
 0x939   : >> { %13561 = vmatmul.mubr.msk.f32.vlgmr.msra.gmra.mrb[0].mxu0 %vm6757_vm8, %v12254_v24  ;;  %14030 = vmatpush3.bf16.msra.mxu1 %v14029_v23 }
 0x93a   : >> { %14078 = vmatpush3.bf16.msra.mxu0 %v14077_v25  ;;  %14031 = vmatprep.subr.bf16.mxu1 %v14435_v36 }
 0x93b   : >> { %14079 = vmatprep.subr.bf16.mxu0 %v14435_v36  ;;  %13483 = vmatprep.mubr.msk.f32.mxu1 %vm14436_vm6, %v14437_v44 }
 0x93c   : >> { %13571 = vmatprep.mubr.msk.f32.mxu0 %vm14436_vm6, %v14437_v44 }
 0x93d   : >> { %14033 = vmatpush3.bf16.msra.mxu1 %v14032_v12 }
 0x93e   : >> { %14081 = vmatpush3.bf16.msra.mxu0 %v14080_v19  ;;  %13579 = vmatprep.subr.mxu1 (%p6746_p6), %v14425_v2 }
 0x93f   : > { %13574 = vmatprep.subr.mxu0 (%p6746_p6), %v14425_v2 }
 0x940   : >> { %13484 = vmatmul.mubr.msk.f32.vlgmr.msra.gmra.mrb[0].mxu1 %vm6757_vm8, %v12210_v20 }
 0x941   : >> { %13572 = vmatmul.mubr.msk.f32.vlgmr.msra.gmra.mrb[0].mxu0 %vm6757_vm8, %v12260_v21  ;;  %13581 = vmatprep.mubr.msk.f32.mxu1 (%p6746_p6), %vm14434_vm2, %v14425_v2 }
 0x942   : > { %13576 = vmatprep.mubr.msk.f32.mxu0 (%p6746_p6), %vm14434_vm2, %v14425_v2 }
 0xa13   : >> { %v7390_v47 = vpop.f32.mrb[0].mxu1 }
 0xa14   : >> { %v14221_v30 = vadd.f32 %v15492_v28, %v7390_v47  ;;  %v8036_v31 = vpop.f32.mrb[0].mxu0  ;;  %v13485_v36 = vpop.f32.mrb[1].mxu1  ;;  %6748 = sbr.rel (!%p6746_p6) target bundleno = 2302 (0x8fe), region = 302 }
 0xa15   : >> { %v13573_v32 = vpop.f32.mrb[1].mxu0 }
 0xa16   : >> { %v14222_v33 = vadd.f32 %v14221_v30, %v8036_v31 }
 0xa18   : >> { %v8041_v34 = vmax.f32 %v14222_v33, 0.0 }
 0xa1a   : >> { %8045 = vst.msk [vmem:[%s8043_s15] sm:$0xf] %vm5470_vm1, %v8041_v34 }
 0xa21   : > { %v8073_v28 = vld [vmem:[#allocation8] sm:$0xf]  ;;  %v8155_v44 = vld [vmem:[#allocation8 + $0x4] sm:$0xf]  ;;  %v8232_v37 = vld [vmem:[#allocation8 + $0x8] sm:$0xf] }
 0xa22   : > { %13575 = vmatpush3.msk.msra.mxu0 %vm683_vm7, %v8073_v28  ;;  %13580 = vmatpush3.msk.msra.mxu1 %vm683_vm7, %v8155_v44  ;;  %v8309_v38 = vld [vmem:[#allocation8 + $0xc] sm:$0xf] }
 0xa23   : > { %13584 = vmatprep.subr.mxu0 %v14425_v2  ;;  %13589 = vmatprep.subr.mxu1 %v14425_v2 }
 0xa24   : > { %13577 = vmatmul.mubr.msk.f32.vlgmr.msra.gmra.mrb[0].mxu0 %vm441_vm0, %v15858_v39  ;;  %13582 = vmatmul.mubr.msk.f32.vlgmr.msra.gmra.mrb[0].mxu1 %vm441_vm0, %v15858_v39 }
 0xa25   : > { %13585 = vmatpush3.msk.msra.mxu0 %vm683_vm7, %v8232_v37  ;;  %13590 = vmatpush3.msk.msra.mxu1 %vm683_vm7, %v8309_v38 }
 0xa26   : > { %13586 = vmatprep.mubr.msk.f32.mxu0 %vm14434_vm2, %v14425_v2  ;;  %13591 = vmatprep.mubr.msk.f32.mxu1 %vm14434_vm2, %v14425_v2 }
 0xa28   : > { %13587 = vmatmul.mubr.msk.f32.vlgmr.msra.gmra.mrb[2].mxu0 %vm441_vm0, %v15858_v39  ;;  %13592 = vmatmul.mubr.msk.f32.vlgmr.msra.gmra.mrb[2].mxu1 %vm441_vm0, %v15858_v39 }
 0xaf7   : > { %v8147_v41 = vpop.f32.mrb[0].mxu0  ;;  %v8225_v42 = vpop.f32.mrb[0].mxu1 }
 0xaf8   : > { %8153 = vst.msk [vmem:[#allocation9 + $0x22] sm:$0x7f] %vm8152_vm12, %v8147_v41  ;;  %8230 = vst.msk [vmem:[#allocation9 + $0x42] sm:$0x7f] %vm8152_vm12, %v8225_v42  ;;  %v13578_v43 = vpop.f32.mrb[1].mxu0  ;;  %v13583_v45 = vpop.f32.mrb[1].mxu1 }
 0xafb   : > { %v8302_v46 = vpop.f32.mrb[2].mxu0  ;;  %v8379_v48 = vpop.f32.mrb[2].mxu1 }
 0xafc   : > { %8307 = vst.msk [vmem:[#allocation9 + $0x62] sm:$0x7f] %vm8152_vm12, %v8302_v46  ;;  %8384 = vst.msk [vmem:[#allocation9 + $0x82] sm:$0x7f] %vm8152_vm12, %v8379_v48  ;;  %v13588_v49 = vpop.f32.mrb[3].mxu0  ;;  %v13593_v50 = vpop.f32.mrb[3].mxu1 }
 0xafd LB: >> { %v8401_v51 = vld [vmem:[%s16373_s9] sm:$0xff]  ;;  %v8402_v52 = vld [vmem:[%s16373_s9 + $0x8] sm:$0xff]  ;;  %v14438_v54 = vmov 0.0|0.0   ;;  %v12279_v57 = vld [vmem:[%s16373_s9 + $0x10] sm:$0xff]  ;;  %vm14439_vm7 = vmmov 0   ;;  %v14440_v0 = vmov 0.0   ;;  %s14419_s17 = sphi %s15879_s17, %s8397_s17  }
 0xafe   : >> { %v12307_v53 = vld [vmem:[%s16373_s9 + $0x80] sm:$0xff]  ;;  %14082 = vmatprep.subr.bf16.mxu1 %v14438_v54  ;;  %14106 = vmatprep.subr.bf16.mxu0 %v14438_v54  ;;  %v14083_v55 = vpack.c.bf16 %v8402_v52, %v8401_v51  ;;  %v12308_v56 = vld [vmem:[%s16373_s9 + $0x88] sm:$0xff]  ;;  %v12280_v58 = vld [vmem:[%s16373_s9 + $0x18] sm:$0xff]  ;;  %s12277_s16 = sshll.u32 %s14419_s17, 4  ;;  %s12339_s14 = sshll.u32 %s14419_s17, 3 }
 0xaff   : >> { %v14107_v59 = vpack.c.bf16 %v12308_v56, %v12307_v53  ;;  %13598 = vmatprep.mubr.msk.f32.mxu1 %vm14439_vm7, %v14440_v0  ;;  %13654 = vmatprep.mubr.msk.f32.mxu0 %vm14439_vm7, %v14440_v0  ;;  %v12311_v60 = vld [vmem:[%s16373_s9 + $0x90] sm:$0xff]  ;;  %v12312_v61 = vld [vmem:[%s16373_s9 + $0x98] sm:$0xff]  ;;  %v14086_v62 = vpack.c.bf16 %v12280_v58, %v12279_v57  ;;  %s15915_s23 = scalar_lea.vmem [#allocation9], %s12277_s16  ;;  %v12282_v6 = vld [vmem:[%s16373_s9 + $0x20] sm:$0xff]  ;;  %s9658_s18 = scalar_lea.vmem [#allocation10], %s12339_s14 }
 0xb00   : >> { %14084 = vmatpush3.bf16.msra.mxu1 %v14083_v55  ;;  %v14110_v5 = vpack.c.bf16 %v12312_v61, %v12311_v60  ;;  %v12283_v7 = vld [vmem:[%s16373_s9 + $0x28] sm:$0xff]  ;;  %v12315_v9 = vld [vmem:[%s16373_s9 + $0xa0] sm:$0xff]  ;;  %v12285_v16 = vld [vmem:[%s16373_s9 + $0x30] sm:$0xff]  ;;  %s8397_s17 = sadd.s32 1, %s14419_s17  }
 0xb01   : >> { %14108 = vmatpush3.bf16.msra.mxu0 %v14107_v59  ;;  %14085 = vmatprep.subr.bf16.mxu1 %v14438_v54  ;;  %v12316_v10 = vld [vmem:[%s16373_s9 + $0xa8] sm:$0xff]  ;;  %v14089_v13 = vpack.c.bf16 %v12283_v7, %v12282_v6  ;;  %v12286_v17 = vld [vmem:[%s16373_s9 + $0x38] sm:$0xff]  ;;  %v12319_v18 = vld [vmem:[%s16373_s9 + $0xb0] sm:$0xff]  ;;  %p8394_p7 = scmp.ge.s32.totalorder %s8397_s17, 8  }
 0xb02   : >> { %14109 = vmatprep.subr.bf16.mxu0 %v14438_v54  ;;  %v14113_v15 = vpack.c.bf16 %v12316_v10, %v12315_v9  ;;  %v12320_v22 = vld [vmem:[%s16373_s9 + $0xb8] sm:$0xff]  ;;  %v14092_v24 = vpack.c.bf16 %v12286_v17, %v12285_v16  ;;  %v12290_v26 = vld [vmem:[%s16373_s9 + $0x40] sm:$0xff]  ;;  %v12291_v27 = vld [vmem:[%s16373_s9 + $0x48] sm:$0xff]  ;;  %9660 = vst.msk [vmem:[#allocation11] sm:$0xff] (%p8394_p7), %vm3032_vm10, %v14425_v2  ;;  %v9718_v7 = vadd.s32 (%p8394_p7), 8, %v14638_v3  ;;  %vm9662_vm13 = vcmask (%p8394_p7), 59392  }
 0xb03   : >> { %v8400_v63 = vld [vmem:[%s15915_s23] sm:$0xff]  ;;  %v14116_v8 = vpack.c.bf16 %v12320_v22, %v12319_v18  ;;  %v12325_v12 = vld [vmem:[%s16373_s9 + $0xc8] sm:$0xff]  ;;  %v14095_v20 = vpack.c.bf16 %v12291_v27, %v12290_v26  ;;  %v12294_v30 = vld [vmem:[%s16373_s9 + $0x50] sm:$0xff]  ;;  %9661 = vst.msk [vmem:[#allocation11 + $0x8] sm:$0xff] (%p8394_p7), %vm3032_vm10, %v14425_v2  ;;  %vm9805_vm15 = vcmask (%p8394_p7), 63488   ;;  %s16232_s21 = smov (%p8394_p7), 0  }
 0xb04   : >> { %v12306_v1 = vld [vmem:[%s15915_s23 + $0x20] sm:$0xff]  ;;  %13599 = vmatmul.mubr.msk.f32.vlgmr.msra.gmra.mrb[0].mxu1 %vm5476_vm3, %v8400_v63  ;;  %v12295_v31 = vld [vmem:[%s16373_s9 + $0x58] sm:$0xff]  ;;  %v12328_v36 = vld [vmem:[%s16373_s9 + $0xd0] sm:$0xff]  ;;  %9664 = vst.msk [vmem:[#allocation11 + $0x18] sm:$0xff] (%p8394_p7), %vm3032_vm10, %v14425_v2  ;;  %vm9719_vm14 = vcmp.eq.s32.totalorder (%p8394_p7), %v9718_v7, %v8069_v35 }
 0xb05   : >> { %13655 = vmatmul.mubr.msk.f32.vlgmr.msra.gmra.mrb[0].mxu0 %vm5476_vm3, %v12306_v1  ;;  %14087 = vmatpush3.bf16.msra.mxu1 %v14086_v62  ;;  %v8477_v11 = vld [vmem:[%s15915_s23 + $0x1] sm:$0xff]  ;;  %v12329_v32 = vld [vmem:[%s16373_s9 + $0xd8] sm:$0xff]  ;;  %v12289_v33 = vld [vmem:[%s15915_s23 + $0x10] sm:$0xff]  ;;  %v14098_v34 = vpack.c.bf16 %v12295_v31, %v12294_v30  ;;  %9665 = vst.msk [vmem:[#allocation11 + $0x20] sm:$0xff] (%p8394_p7), %vm3032_vm10, %v14425_v2  ;;  %v12340_v9 = vsel (%p8394_p7), %vm9719_vm14, 1.0, %v14425_v2 }
 0xb06   : >> { %14111 = vmatpush3.bf16.msra.mxu0 %v14110_v5  ;;  %13605 = vmatprep.mubr.msk.f32.mxu1 %vm14439_vm7, %v14440_v0  ;;  %v12310_v14 = vld [vmem:[%s15915_s23 + $0x21] sm:$0xff]  ;;  %v12323_v28 = vld [vmem:[%s15915_s23 + $0x30] sm:$0xff]  ;;  %v14122_v44 = vpack.c.bf16 %v12329_v32, %v12328_v36  ;;  %v12303_v50 = vld [vmem:[%s16373_s9 + $0x78] sm:$0xff]  ;;  %9670 = vst.msk [vmem:[#allocation11 + $0x48] sm:$0xff] (%p8394_p7), %vm3032_vm10, %v14425_v2 }
 0xb07   : >> { %13661 = vmatprep.mubr.msk.f32.mxu0 %vm14439_vm7, %v14440_v0  ;;  %14088 = vmatprep.subr.bf16.mxu1 %v14438_v54  ;;  %v8555_v23 = vld [vmem:[%s15915_s23 + $0x2] sm:$0xff]  ;;  %v12293_v43 = vld [vmem:[%s15915_s23 + $0x11] sm:$0xff]  ;;  %9671 = vst.msk [vmem:[#allocation11 + $0x50] sm:$0xff] (%p8394_p7), %vm3032_vm10, %v14425_v2  ;;  %9676 = vst.msk [vmem:[#allocation11 + $0x78] sm:$0xff] (%p8394_p7), %vm3032_vm10, %v14425_v2 }
 0xb08   : >> { %14112 = vmatprep.subr.bf16.mxu0 %v14438_v54  ;;  %v12314_v25 = vld [vmem:[%s15915_s23 + $0x22] sm:$0xff]  ;;  %v12327_v46 = vld [vmem:[%s15915_s23 + $0x31] sm:$0xff]  ;;  %9677 = vst.msk [vmem:[#allocation11 + $0x80] sm:$0xff] (%p8394_p7), %vm3032_vm10, %v14425_v2  ;;  %9682 = vst.msk [vmem:[#allocation11 + $0xa8] sm:$0xff] (%p8394_p7), %vm3032_vm10, %v14425_v2 }
 0xb09   : >> { %v12324_v29 = vld [vmem:[%s16373_s9 + $0xc0] sm:$0xff]  ;;  %v12299_v38 = vld [vmem:[%s16373_s9 + $0x68] sm:$0xff]  ;;  %v12302_v49 = vld [vmem:[%s16373_s9 + $0x70] sm:$0xff]  ;;  %9683 = vst.msk [vmem:[#allocation11 + $0xb0] sm:$0xff] (%p8394_p7), %vm3032_vm10, %v14425_v2 }
 0xb0a   : >> { %v8633_v19 = vld [vmem:[%s15915_s23 + $0x3] sm:$0xff]  ;;  %v14119_v47 = vpack.c.bf16 %v12325_v12, %v12324_v29  ;;  %v12336_v51 = vld [vmem:[%s16373_s9 + $0xf0] sm:$0xff]  ;;  %v12337_v52 = vld [vmem:[%s16373_s9 + $0xf8] sm:$0xff]  ;;  %v14104_v55 = vpack.c.bf16 %v12303_v50, %v12302_v49  ;;  %9688 = vst.msk [vmem:[#allocation11 + $0xd8] sm:$0xff] (%p8394_p7), %vm3032_vm10, %v14425_v2 }
 0xb0b   : >> { %v12318_v21 = vld [vmem:[%s15915_s23 + $0x23] sm:$0xff]  ;;  %v12297_v53 = vld [vmem:[%s15915_s23 + $0x12] sm:$0xff]  ;;  %v14128_v57 = vpack.c.bf16 %v12337_v52, %v12336_v51  ;;  %9689 = vst.msk [vmem:[#allocation11 + $0xe0] sm:$0xff] (%p8394_p7), %vm3032_vm10, %v14425_v2  ;;  %9694 = vst.msk [vmem:[#allocation11 + $0x108] sm:$0xff] (%p8394_p7), %vm3032_vm10, %v14425_v2 }
 0xb0c   : >> { %13606 = vmatmul.mubr.msk.f32.vlgmr.msra.gmra.mrb[0].mxu1 %vm5476_vm3, %v8477_v11  ;;  %v12298_v37 = vld [vmem:[%s16373_s9 + $0x60] sm:$0xff]  ;;  %v12333_v42 = vld [vmem:[%s16373_s9 + $0xe8] sm:$0xff]  ;;  %v12331_v56 = vld [vmem:[%s15915_s23 + $0x32] sm:$0xff]  ;;  %9695 = vst.msk [vmem:[#allocation11 + $0x110] sm:$0xff] (%p8394_p7), %vm3032_vm10, %v14425_v2 }
 0xb0d   : >> { %13662 = vmatmul.mubr.msk.f32.vlgmr.msra.gmra.mrb[0].mxu0 %vm5476_vm3, %v12310_v14  ;;  %14090 = vmatpush3.bf16.msra.mxu1 %v14089_v13  ;;  %v12332_v41 = vld [vmem:[%s16373_s9 + $0xe0] sm:$0xff]  ;;  %v14101_v45 = vpack.c.bf16 %v12299_v38, %v12298_v37  ;;  %v12301_v58 = vld [vmem:[%s15915_s23 + $0x13] sm:$0xff]  ;;  %9700 = vst.msk [vmem:[#allocation11 + $0x138] sm:$0xff] (%p8394_p7), %vm3032_vm10, %v14425_v2  ;;  %9701 = vst.msk [vmem:[#allocation11 + $0x140] sm:$0xff] (%p8394_p7), %vm3032_vm10, %v14425_v2 }
 0xb0e   : >> { %14114 = vmatpush3.bf16.msra.mxu0 %v14113_v15  ;;  %13612 = vmatprep.mubr.msk.f32.mxu1 %vm14439_vm7, %v14440_v0  ;;  %v14125_v48 = vpack.c.bf16 %v12333_v42, %v12332_v41  ;;  %v12335_v59 = vld [vmem:[%s15915_s23 + $0x33] sm:$0xff]  ;;  %9706 = vst.msk [vmem:[#allocation11 + $0x168] sm:$0xff] (%p8394_p7), %vm3032_vm10, %v14425_v2  ;;  %9707 = vst.msk [vmem:[#allocation11 + $0x170] sm:$0xff] (%p8394_p7), %vm3032_vm10, %v14425_v2  ;;  %v16214_v35 = vld [vmem:[%s16376_s12] ss:$0 sm:$0xff] (%p8394_p7) }
 0xb0f   : >> { %13668 = vmatprep.mubr.msk.f32.mxu0 %vm14439_vm7, %v14440_v0  ;;  %14091 = vmatprep.subr.bf16.mxu1 %v14438_v54  ;;  %9712 = vst.msk [vmem:[#allocation11 + $0x198] sm:$0xff] (%p8394_p7), %vm3032_vm10, %v14425_v2  ;;  %9713 = vst.msk [vmem:[#allocation11 + $0x1a0] sm:$0xff] (%p8394_p7), %vm3032_vm10, %v14425_v2 }
 0xb10   : >> { %14115 = vmatprep.subr.bf16.mxu0 %v14438_v54  ;;  %9715 = vst.msk [vmem:[#allocation11 + $0x1b0] sm:$0xff] (%p8394_p7), %vm3032_vm10, %v14425_v2  ;;  %9716 = vst.msk [vmem:[#allocation11 + $0x1b8] sm:$0xff] (%p8394_p7), %vm3032_vm10, %v14425_v2 }
 0xb11   : > { %9668 = vst.msk [vmem:[#allocation11 + $0x38] sm:$0xff] (%p8394_p7), %vm3032_vm10, %v14425_v2  ;;  %9674 = vst.msk [vmem:[#allocation11 + $0x68] sm:$0xff] (%p8394_p7), %vm3032_vm10, %v14425_v2 }
 0xb12   : > { %9667 = vst.msk [vmem:[#allocation11 + $0x30] sm:$0xff] (%p8394_p7), %vm3032_vm10, %v14425_v2  ;;  %9673 = vst.msk [vmem:[#allocation11 + $0x60] sm:$0xff] (%p8394_p7), %vm3032_vm10, %v14425_v2 }
 0xb13   : > { %9680 = vst.msk [vmem:[#allocation11 + $0x98] sm:$0xff] (%p8394_p7), %vm3032_vm10, %v14425_v2  ;;  %9686 = vst.msk [vmem:[#allocation11 + $0xc8] sm:$0xff] (%p8394_p7), %vm3032_vm10, %v14425_v2 }
 0xb14   : >> { %13613 = vmatmul.mubr.msk.f32.vlgmr.msra.gmra.mrb[0].mxu1 %vm5476_vm3, %v8555_v23  ;;  %9679 = vst.msk [vmem:[#allocation11 + $0x90] sm:$0xff] (%p8394_p7), %vm3032_vm10, %v14425_v2  ;;  %9685 = vst.msk [vmem:[#allocation11 + $0xc0] sm:$0xff] (%p8394_p7), %vm3032_vm10, %v14425_v2 }
 0xb15   : >> { %13669 = vmatmul.mubr.msk.f32.vlgmr.msra.gmra.mrb[0].mxu0 %vm5476_vm3, %v12314_v25  ;;  %14093 = vmatpush3.bf16.msra.mxu1 %v14092_v24  ;;  %9692 = vst.msk [vmem:[#allocation11 + $0xf8] sm:$0xff] (%p8394_p7), %vm3032_vm10, %v14425_v2  ;;  %9698 = vst.msk [vmem:[#allocation11 + $0x128] sm:$0xff] (%p8394_p7), %vm3032_vm10, %v14425_v2 }
 0xb16   : >> { %14117 = vmatpush3.bf16.msra.mxu0 %v14116_v8  ;;  %13619 = vmatprep.mubr.msk.f32.mxu1 %vm14439_vm7, %v14440_v0  ;;  %9691 = vst.msk [vmem:[#allocation11 + $0xf0] sm:$0xff] (%p8394_p7), %vm3032_vm10, %v14425_v2  ;;  %9697 = vst.msk [vmem:[#allocation11 + $0x120] sm:$0xff] (%p8394_p7), %vm3032_vm10, %v14425_v2 }
 0xb17   : >> { %13675 = vmatprep.mubr.msk.f32.mxu0 %vm14439_vm7, %v14440_v0  ;;  %14094 = vmatprep.subr.bf16.mxu1 %v14438_v54  ;;  %9704 = vst.msk [vmem:[#allocation11 + $0x158] sm:$0xff] (%p8394_p7), %vm3032_vm10, %v14425_v2  ;;  %9710 = vst.msk [vmem:[#allocation11 + $0x188] sm:$0xff] (%p8394_p7), %vm3032_vm10, %v14425_v2 }
 0xb18   : >> { %14118 = vmatprep.subr.bf16.mxu0 %v14438_v54  ;;  %9703 = vst.msk [vmem:[#allocation11 + $0x150] sm:$0xff] (%p8394_p7), %vm3032_vm10, %v14425_v2  ;;  %9709 = vst.msk [vmem:[#allocation11 + $0x180] sm:$0xff] (%p8394_p7), %vm3032_vm10, %v14425_v2 }
 0xb19   : > { %9663 = vst.msk [vmem:[#allocation11 + $0x10] sm:$0x7] (%p8394_p7), %vm9662_vm13, %v14425_v2  ;;  %9666 = vst.msk [vmem:[#allocation11 + $0x28] sm:$0x7] (%p8394_p7), %vm9662_vm13, %v14425_v2 }
 0xb1a   : > { %9669 = vst.msk [vmem:[#allocation11 + $0x40] sm:$0x7] (%p8394_p7), %vm9662_vm13, %v14425_v2  ;;  %9672 = vst.msk [vmem:[#allocation11 + $0x58] sm:$0x7] (%p8394_p7), %vm9662_vm13, %v14425_v2 }
 0xb1b   : > { %9678 = vst.msk [vmem:[#allocation11 + $0x88] sm:$0x7] (%p8394_p7), %vm9662_vm13, %v14425_v2  ;;  %9684 = vst.msk [vmem:[#allocation11 + $0xb8] sm:$0x7] (%p8394_p7), %vm9662_vm13, %v14425_v2 }
 0xb1c   : >> { %13620 = vmatmul.mubr.msk.f32.vlgmr.msra.gmra.mrb[0].mxu1 %vm5476_vm3, %v8633_v19  ;;  %9690 = vst.msk [vmem:[#allocation11 + $0xe8] sm:$0x7] (%p8394_p7), %vm9662_vm13, %v14425_v2  ;;  %9696 = vst.msk [vmem:[#allocation11 + $0x118] sm:$0x7] (%p8394_p7), %vm9662_vm13, %v14425_v2 }
 0xb1d   : >> { %13676 = vmatmul.mubr.msk.f32.vlgmr.msra.gmra.mrb[0].mxu0 %vm5476_vm3, %v12318_v21  ;;  %14096 = vmatpush3.bf16.msra.mxu1 %v14095_v20  ;;  %9702 = vst.msk [vmem:[#allocation11 + $0x148] sm:$0x7] (%p8394_p7), %vm9662_vm13, %v14425_v2  ;;  %9708 = vst.msk [vmem:[#allocation11 + $0x178] sm:$0x7] (%p8394_p7), %vm9662_vm13, %v14425_v2 }
 0xb1e   : >> { %14120 = vmatpush3.bf16.msra.mxu0 %v14119_v47  ;;  %13626 = vmatprep.mubr.msk.f32.mxu1 %vm14439_vm7, %v14440_v0  ;;  %9714 = vst.msk [vmem:[#allocation11 + $0x1a8] sm:$0x7] (%p8394_p7), %vm9662_vm13, %v14425_v2  ;;  %9717 = vst.msk [vmem:[#allocation11 + $0x1c0] sm:$0x7] (%p8394_p7), %vm9662_vm13, %v14425_v2 }
 0xb1f   : >> { %13682 = vmatprep.mubr.msk.f32.mxu0 %vm14439_vm7, %v14440_v0  ;;  %14097 = vmatprep.subr.bf16.mxu1 %v14438_v54  ;;  %9675 = vst.msk [vmem:[#allocation11 + $0x70] sm:$0x7] (%p8394_p7), %vm9662_vm13, %v14425_v2  ;;  %9681 = vst.msk [vmem:[#allocation11 + $0xa0] sm:$0x7] (%p8394_p7), %vm9662_vm13, %v14425_v2 }
 0xb20   : >> { %14121 = vmatprep.subr.bf16.mxu0 %v14438_v54  ;;  %9687 = vst.msk [vmem:[#allocation11 + $0xd0] sm:$0x7] (%p8394_p7), %vm9662_vm13, %v14425_v2  ;;  %9693 = vst.msk [vmem:[#allocation11 + $0x100] sm:$0x7] (%p8394_p7), %vm9662_vm13, %v14425_v2 }
 0xb21   : > { %9699 = vst.msk [vmem:[#allocation11 + $0x130] sm:$0x7] (%p8394_p7), %vm9662_vm13, %v14425_v2  ;;  %9705 = vst.msk [vmem:[#allocation11 + $0x160] sm:$0x7] (%p8394_p7), %vm9662_vm13, %v14425_v2 }
 0xb22   : > { %9711 = vst.msk [vmem:[#allocation11 + $0x190] sm:$0x7] (%p8394_p7), %vm9662_vm13, %v14425_v2 }
 0xb24   : >> { %13627 = vmatmul.mubr.msk.f32.vlgmr.msra.gmra.mrb[0].mxu1 %vm5476_vm3, %v12289_v33 }
 0xb25   : >> { %13683 = vmatmul.mubr.msk.f32.vlgmr.msra.gmra.mrb[0].mxu0 %vm5476_vm3, %v12323_v28  ;;  %14099 = vmatpush3.bf16.msra.mxu1 %v14098_v34 }
 0xb26   : >> { %14123 = vmatpush3.bf16.msra.mxu0 %v14122_v44  ;;  %13633 = vmatprep.mubr.msk.f32.mxu1 %vm14439_vm7, %v14440_v0 }
 0xb27   : >> { %13689 = vmatprep.mubr.msk.f32.mxu0 %vm14439_vm7, %v14440_v0  ;;  %14100 = vmatprep.subr.bf16.mxu1 %v14438_v54 }
 0xb28   : >> { %14124 = vmatprep.subr.bf16.mxu0 %v14438_v54 }
 0xb2c   : >> { %13634 = vmatmul.mubr.msk.f32.vlgmr.msra.gmra.mrb[0].mxu1 %vm5476_vm3, %v12293_v43 }
 0xb2d   : >> { %13690 = vmatmul.mubr.msk.f32.vlgmr.msra.gmra.mrb[0].mxu0 %vm5476_vm3, %v12327_v46  ;;  %14102 = vmatpush3.bf16.msra.mxu1 %v14101_v45 }
 0xb2e   : >> { %14126 = vmatpush3.bf16.msra.mxu0 %v14125_v48  ;;  %13640 = vmatprep.mubr.msk.f32.mxu1 %vm14439_vm7, %v14440_v0 }
 0xb2f   : >> { %13696 = vmatprep.mubr.msk.f32.mxu0 %vm14439_vm7, %v14440_v0  ;;  %14103 = vmatprep.subr.bf16.mxu1 %v14438_v54 }
 0xb30   : >> { %14127 = vmatprep.subr.bf16.mxu0 %v14438_v54 }
 0xb34   : >> { %13641 = vmatmul.mubr.msk.f32.vlgmr.msra.gmra.mrb[0].mxu1 %vm5476_vm3, %v12297_v53 }
 0xb35   : >> { %13697 = vmatmul.mubr.msk.f32.vlgmr.msra.gmra.mrb[0].mxu0 %vm5476_vm3, %v12331_v56  ;;  %14105 = vmatpush3.bf16.msra.mxu1 %v14104_v55 }
 0xb36   : >> { %14129 = vmatpush3.bf16.msra.mxu0 %v14128_v57  ;;  %13647 = vmatprep.mubr.msk.f32.mxu1 %vm14439_vm7, %v14440_v0 }
 0xb37   : >> { %13703 = vmatprep.mubr.msk.f32.mxu0 %vm14439_vm7, %v14440_v0 }
 0xb3c   : >> { %13648 = vmatmul.mubr.msk.f32.vlgmr.msra.gmra.mrb[0].mxu1 %vm5476_vm3, %v12301_v58 }
 0xb3d   : >> { %13704 = vmatmul.mubr.msk.f32.vlgmr.msra.gmra.mrb[0].mxu0 %vm5476_vm3, %v12335_v59  ;;  %13713 = vmatprep.mubr.msk.f32.mxu1 (%p8394_p7), %vm3032_vm10, %v15858_v39 }
 0xb3e   : > { %13708 = vmatprep.mubr.msk.f32.mxu0 (%p8394_p7), %vm3032_vm10, %v15858_v39 }
 0xc0f   : >> { %v9021_v54 = vpop.f32.mrb[0].mxu1 }
 0xc10   : >> { %v14251_v60 = vadd.f32 %v15877_v40, %v9021_v54  ;;  %v9651_v61 = vpop.f32.mrb[0].mxu0  ;;  %v13649_v62 = vpop.f32.mrb[1].mxu1  ;;  %8396 = sbr.rel (!%p8394_p7) target bundleno = 2813 (0xafd), region = 313 }
 0xc11   : >> { %v13705_v63 = vpop.f32.mrb[1].mxu0 }
 0xc12   : >> { %v14252_v1 = vadd.f32 %v14251_v60, %v9651_v61 }
 0xc14   : >> { %v9656_v5 = vmax.f32 %v14252_v1, 0.0 }
 0xc16   : >> { %9659 = vst.msk [vmem:[%s9658_s18] sm:$0xff] %vm3032_vm10, %v9656_v5 }
 0xc1d   : > { %v9722_v40 = vld [vmem:[#allocation10] sm:$0xff]  ;;  %v9808_v0 = vld [vmem:[#allocation10 + $0x8] sm:$0xff]  ;;  %v9888_v6 = vld [vmem:[#allocation10 + $0x10] sm:$0xff] }
 0xc1e   : > { %13706 = vmatprep.subr.mxu0 %v9722_v40  ;;  %13711 = vmatprep.subr.mxu1 %v9808_v0  ;;  %v9968_v3 = vld [vmem:[#allocation10 + $0x18] sm:$0xff]  ;;  %v10048_v10 = vld [vmem:[#allocation10 + $0x20] sm:$0xff]  ;;  %v10128_v11 = vld [vmem:[#allocation10 + $0x28] sm:$0xff] }
 0xc1f   : > { %13707 = vmatpush3.msra.mxu0 %v9722_v40  ;;  %13712 = vmatpush3.msra.mxu1 %v9808_v0  ;;  %v10208_v2 = vld [vmem:[#allocation10 + $0x30] sm:$0xff]  ;;  %v10288_v4 = vld [vmem:[#allocation10 + $0x38] sm:$0xff] }
 0xc20   : > { %13716 = vmatprep.subr.mxu0 %v9888_v6  ;;  %13721 = vmatprep.subr.mxu1 %v9968_v3 }
 0xc21   : > { %13709 = vmatmul.mubr.msk.f32.vlgmr.msra.gmra.mrb[0].mxu0 %vm3032_vm10, %v12340_v9  ;;  %13714 = vmatmul.mubr.msk.f32.vlgmr.msra.gmra.mrb[0].mxu1 %vm3032_vm10, %v12340_v9 }
 0xc22   : > { %13717 = vmatpush3.msra.mxu0 %v9888_v6  ;;  %13722 = vmatpush3.msra.mxu1 %v9968_v3 }
 0xc23   : > { %13718 = vmatprep.mubr.msk.f32.mxu0 %vm3032_vm10, %v15858_v39  ;;  %13723 = vmatprep.mubr.msk.f32.mxu1 %vm3032_vm10, %v15858_v39 }
 0xc24   : > { %13726 = vmatprep.subr.mxu0 %v10048_v10  ;;  %13731 = vmatprep.subr.mxu1 %v10128_v11 }
 0xc25   : > { %13719 = vmatmul.mubr.msk.f32.vlgmr.msra.gmra.mrb[2].mxu0 %vm3032_vm10, %v12340_v9  ;;  %13724 = vmatmul.mubr.msk.f32.vlgmr.msra.gmra.mrb[2].mxu1 %vm3032_vm10, %v12340_v9 }
 0xc26   : > { %13727 = vmatpush3.msra.mxu0 %v10048_v10  ;;  %13732 = vmatpush3.msra.mxu1 %v10128_v11 }
 0xc27   : > { %13728 = vmatprep.mubr.msk.f32.mxu0 %vm3032_vm10, %v15858_v39  ;;  %13733 = vmatprep.mubr.msk.f32.mxu1 %vm3032_vm10, %v15858_v39 }
 0xc28   : > { %13736 = vmatprep.subr.mxu0 %v10208_v2  ;;  %13741 = vmatprep.subr.mxu1 %v10288_v4 }
 0xc29   : > { %13729 = vmatmul.mubr.msk.f32.vlgmr.msra.gmra.mrb[4].mxu0 %vm3032_vm10, %v12340_v9  ;;  %13734 = vmatmul.mubr.msk.f32.vlgmr.msra.gmra.mrb[4].mxu1 %vm3032_vm10, %v12340_v9 }
 0xc2a   : > { %13737 = vmatpush3.msra.mxu0 %v10208_v2  ;;  %13742 = vmatpush3.msra.mxu1 %v10288_v4 }
 0xc2b   : > { %13738 = vmatprep.mubr.msk.f32.mxu0 %vm3032_vm10, %v15858_v39  ;;  %13743 = vmatprep.mubr.msk.f32.mxu1 %vm3032_vm10, %v15858_v39 }
 0xc2d   : > { %13739 = vmatmul.mubr.msk.f32.vlgmr.msra.gmra.mrb[6].mxu0 %vm3032_vm10, %v12340_v9  ;;  %13744 = vmatmul.mubr.msk.f32.vlgmr.msra.gmra.mrb[6].mxu1 %vm3032_vm10, %v12340_v9 }
 0xcf4   : > { %v13710_v13 = vpop.f32.mrb[0].mxu0  ;;  %v13715_v14 = vpop.f32.mrb[0].mxu1 }
 0xcf5   : > { %9806 = vst.msk [vmem:[#allocation11 + $0x3a] sm:$0x7f] %vm9805_vm15, %v13710_v13  ;;  %9886 = vst.msk [vmem:[#allocation11 + $0x6a] sm:$0x7f] %vm9805_vm15, %v13715_v14  ;;  %v9794_v15 = vpop.f32.mrb[1].mxu0  ;;  %v9875_v16 = vpop.f32.mrb[1].mxu1 }
 0xcf6   : > { %9804 = vst.msk [vmem:[#allocation11 + $0x32] sm:$0xff] %vm3032_vm10, %v9794_v15  ;;  %9885 = vst.msk [vmem:[#allocation11 + $0x62] sm:$0xff] %vm3032_vm10, %v9875_v16 }
 0xcf8   : > { %v13720_v39 = vpop.f32.mrb[2].mxu0  ;;  %v13725_v17 = vpop.f32.mrb[2].mxu1 }
 0xcf9   : > { %9966 = vst.msk [vmem:[#allocation11 + $0x9a] sm:$0x7f] %vm9805_vm15, %v13720_v39  ;;  %10046 = vst.msk [vmem:[#allocation11 + $0xca] sm:$0x7f] %vm9805_vm15, %v13725_v17  ;;  %v9955_v18 = vpop.f32.mrb[3].mxu0  ;;  %v10035_v22 = vpop.f32.mrb[3].mxu1 }
 0xcfa   : > { %9965 = vst.msk [vmem:[#allocation11 + $0x92] sm:$0xff] %vm3032_vm10, %v9955_v18  ;;  %10045 = vst.msk [vmem:[#allocation11 + $0xc2] sm:$0xff] %vm3032_vm10, %v10035_v22 }
 0xcfc   : > { %v13730_v23 = vpop.f32.mrb[4].mxu0  ;;  %v13735_v24 = vpop.f32.mrb[4].mxu1 }
 0xcfd   : > { %10126 = vst.msk [vmem:[#allocation11 + $0xfa] sm:$0x7f] %vm9805_vm15, %v13730_v23  ;;  %10206 = vst.msk [vmem:[#allocation11 + $0x12a] sm:$0x7f] %vm9805_vm15, %v13735_v24  ;;  %v10115_v25 = vpop.f32.mrb[5].mxu0  ;;  %v10195_v8 = vpop.f32.mrb[5].mxu1 }
 0xcfe   : > { %10125 = vst.msk [vmem:[#allocation11 + $0xf2] sm:$0xff] %vm3032_vm10, %v10115_v25  ;;  %10205 = vst.msk [vmem:[#allocation11 + $0x122] sm:$0xff] %vm3032_vm10, %v10195_v8 }
 0xd00   : > { %v13740_v26 = vpop.f32.mrb[6].mxu0  ;;  %v13745_v27 = vpop.f32.mrb[6].mxu1 }
 0xd01   : > { %10286 = vst.msk [vmem:[#allocation11 + $0x15a] sm:$0x7f] %vm9805_vm15, %v13740_v26  ;;  %10366 = vst.msk [vmem:[#allocation11 + $0x18a] sm:$0x7f] %vm9805_vm15, %v13745_v27  ;;  %v10275_v29 = vpop.f32.mrb[7].mxu0  ;;  %v10355_v12 = vpop.f32.mrb[7].mxu1 }
 0xd02   : > { %10285 = vst.msk [vmem:[#allocation11 + $0x152] sm:$0xff] %vm3032_vm10, %v10275_v29  ;;  %10365 = vst.msk [vmem:[#allocation11 + $0x182] sm:$0xff] %vm3032_vm10, %v10355_v12 }
 0xd03 LB: >> { %v10384_v19 = vld [vmem:[%s16375_s11] sm:$0xff]  ;;  %v12360_v21 = vld [vmem:[%s16375_s11 + $0x8] sm:$0xff]  ;;  %s10380_s15 = smul.u32 24, %s14423_s21  ;;  %v12363_v34 = vld [vmem:[%s16375_s11 + $0x10] sm:$0xff]  ;;  %s12429_s20 = sshll.u32 %s14423_s21, 4  ;;  %s14423_s21 = sphi %s16232_s21, %s10379_s21  }
 0xd04   : >> { %v12391_v20 = vld [vmem:[%s16375_s11 + $0x40] sm:$0xff]  ;;  %13746 = vmatprep.subr.mxu1 %v10384_v19  ;;  %v12396_v47 = vld [vmem:[%s16375_s11 + $0x48] sm:$0xff]  ;;  %v12401_v44 = vld [vmem:[%s16375_s11 + $0x50] sm:$0xff]  ;;  %s10379_s21 = sadd.s32 1, %s14423_s21  }
 0xd05   : >> { %13786 = vmatprep.subr.mxu0 %v12391_v20  ;;  %13747 = vmatpush3.msra.mxu1 %v10384_v19  ;;  %s16250_s16 = scalar_lea.vmem [#allocation11], %s10380_s15  ;;  %v12366_v42 = vld [vmem:[%s16375_s11 + $0x18] sm:$0xff]  ;;  %v12371_v50 = vld [vmem:[%s16375_s11 + $0x20] sm:$0xff]  ;;  %v12376_v57 = vld [vmem:[%s16375_s11 + $0x28] sm:$0xff]  ;;  %s11783_s15 = scalar_lea.vmem %s14655_s19, %s12429_s20 }
 0xd06   : >> { %13787 = vmatpush3.msra.mxu0 %v12391_v20  ;;  %13751 = vmatprep.subr.mxu1 %v12360_v21  ;;  %v12406_v45 = vld [vmem:[%s16375_s11 + $0x58] sm:$0xff]  ;;  %v12411_v52 = vld [vmem:[%s16375_s11 + $0x60] sm:$0xff]  ;;  %v12416_v59 = vld [vmem:[%s16375_s11 + $0x68] sm:$0xff]  ;;  %p10376_p8 = scmp.ge.s32.totalorder %s10379_s21, 16  }
 0xd07   : >> { %13791 = vmatprep.subr.mxu0 %v12396_v47  ;;  %v12381_v62 = vld [vmem:[%s16375_s11 + $0x30] sm:$0xff]  ;;  %v12386_v6 = vld [vmem:[%s16375_s11 + $0x38] sm:$0xff] }
 0xd08   : >> { %v12421_v1 = vld [vmem:[%s16375_s11 + $0x70] sm:$0xff]  ;;  %v12426_v3 = vld [vmem:[%s16375_s11 + $0x78] sm:$0xff] }
 0xd09   : >> { %v10382_v30 = vld [vmem:[%s16250_s16] sm:$0xff]  ;;  %v12389_v31 = vld [vmem:[%s16250_s16 + $0x30] sm:$0xff]  ;;  %v10383_v36 = vld [vmem:[%s16250_s16 + $0x8] sm:$0xff] }
 0xd0a   : >> { %13748 = vmatprep.mubr.msk.f32.mxu1 %vm3032_vm10, %v10382_v30  ;;  %13788 = vmatprep.mubr.msk.f32.mxu0 %vm3032_vm10, %v12389_v31  ;;  %v12390_v32 = vld [vmem:[%s16250_s16 + $0x38] sm:$0xff]  ;;  %v10468_v33 = vld [vmem:[%s16250_s16 + $0x1] sm:$0xff]  ;;  %v10469_v37 = vld [vmem:[%s16250_s16 + $0x9] sm:$0xff] }
 0xd0b   : >> { %13749 = vmatmul.mubr.msk.f32.vlgmr.msra.gmra.mrb[0].mxu1 %vm3032_vm10, %v10383_v36  ;;  %13789 = vmatmul.mubr.msk.f32.vlgmr.msra.gmra.mrb[0].mxu0 %vm3032_vm10, %v12390_v32  ;;  %v12394_v28 = vld [vmem:[%s16250_s16 + $0x31] sm:$0xff]  ;;  %v12395_v38 = vld [vmem:[%s16250_s16 + $0x39] sm:$0xff]  ;;  %v10555_v41 = vld [vmem:[%s16250_s16 + $0x2] sm:$0xff] }
 0xd0c   : >> { %13752 = vmatpush3.msra.mxu1 %v12360_v21  ;;  %13792 = vmatpush3.msra.mxu0 %v12396_v47  ;;  %v12399_v43 = vld [vmem:[%s16250_s16 + $0x32] sm:$0xff]  ;;  %v10556_v46 = vld [vmem:[%s16250_s16 + $0xa] sm:$0xff]  ;;  %v12400_v48 = vld [vmem:[%s16250_s16 + $0x3a] sm:$0xff] }
 0xd0d   : >> { %13753 = vmatprep.mubr.msk.f32.mxu1 %vm3032_vm10, %v10468_v33  ;;  %13756 = vmatprep.subr.mxu1 %v12363_v34  ;;  %v10642_v49 = vld [vmem:[%s16250_s16 + $0x3] sm:$0xff]  ;;  %v12404_v51 = vld [vmem:[%s16250_s16 + $0x33] sm:$0xff]  ;;  %v10643_v53 = vld [vmem:[%s16250_s16 + $0xb] sm:$0xff] }
 0xd0e   : >> { %13793 = vmatprep.mubr.msk.f32.mxu0 %vm3032_vm10, %v12394_v28  ;;  %13796 = vmatprep.subr.mxu0 %v12401_v44  ;;  %v12405_v55 = vld [vmem:[%s16250_s16 + $0x3b] sm:$0xff]  ;;  %v12409_v58 = vld [vmem:[%s16250_s16 + $0x48] sm:$0xff]  ;;  %v12410_v60 = vld [vmem:[%s16250_s16 + $0x50] sm:$0xff] }
 0xd0f   : >> { %v12369_v56 = vld [vmem:[%s16250_s16 + $0x18] sm:$0xff]  ;;  %v12370_v54 = vld [vmem:[%s16250_s16 + $0x20] sm:$0xff]  ;;  %v12414_v63 = vld [vmem:[%s16250_s16 + $0x49] sm:$0xff] }
 0xd10   : >> { %v12374_v61 = vld [vmem:[%s16250_s16 + $0x19] sm:$0xff]  ;;  %v12375_v5 = vld [vmem:[%s16250_s16 + $0x21] sm:$0xff]  ;;  %v12415_v40 = vld [vmem:[%s16250_s16 + $0x51] sm:$0xff] }
 0xd11   : >> { %v12379_v0 = vld [vmem:[%s16250_s16 + $0x1a] sm:$0xff]  ;;  %v12419_v7 = vld [vmem:[%s16250_s16 + $0x4a] sm:$0xff]  ;;  %v12380_v9 = vld [vmem:[%s16250_s16 + $0x22] sm:$0xff] }
 0xd12   : >> { %v12420_v10 = vld [vmem:[%s16250_s16 + $0x52] sm:$0xff]  ;;  %v12384_v11 = vld [vmem:[%s16250_s16 + $0x1b] sm:$0xff]  ;;  %v12385_v4 = vld [vmem:[%s16250_s16 + $0x23] sm:$0xff] }
 0xd13   : >> { %13754 = vmatmul.mubr.msk.f32.vlgmr.msra.gmra.mrb[0].mxu1 %vm3032_vm10, %v10469_v37  ;;  %13794 = vmatmul.mubr.msk.f32.vlgmr.msra.gmra.mrb[0].mxu0 %vm3032_vm10, %v12395_v38  ;;  %v12424_v2 = vld [vmem:[%s16250_s16 + $0x4b] sm:$0xff]  ;;  %v12425_v13 = vld [vmem:[%s16250_s16 + $0x53] sm:$0xff] }
 0xd14   : >> { %13757 = vmatpush3.msra.mxu1 %v12363_v34  ;;  %13797 = vmatpush3.msra.mxu0 %v12401_v44 }
 0xd15   : >> { %13758 = vmatprep.mubr.msk.f32.mxu1 %vm3032_vm10, %v10555_v41  ;;  %13761 = vmatprep.subr.mxu1 %v12366_v42 }
 0xd16   : >> { %13798 = vmatprep.mubr.msk.f32.mxu0 %vm3032_vm10, %v12399_v43  ;;  %13801 = vmatprep.subr.mxu0 %v12406_v45 }
 0xd1b   : >> { %13759 = vmatmul.mubr.msk.f32.vlgmr.msra.gmra.mrb[0].mxu1 %vm3032_vm10, %v10556_v46  ;;  %13799 = vmatmul.mubr.msk.f32.vlgmr.msra.gmra.mrb[0].mxu0 %vm3032_vm10, %v12400_v48 }
 0xd1c   : >> { %13762 = vmatpush3.msra.mxu1 %v12366_v42  ;;  %13802 = vmatpush3.msra.mxu0 %v12406_v45 }
 0xd1d   : >> { %13763 = vmatprep.mubr.msk.f32.mxu1 %vm3032_vm10, %v10642_v49  ;;  %13766 = vmatprep.subr.mxu1 %v12371_v50 }
 0xd1e   : >> { %13803 = vmatprep.mubr.msk.f32.mxu0 %vm3032_vm10, %v12404_v51  ;;  %13806 = vmatprep.subr.mxu0 %v12411_v52 }
 0xd23   : >> { %13764 = vmatmul.mubr.msk.f32.vlgmr.msra.gmra.mrb[0].mxu1 %vm3032_vm10, %v10643_v53  ;;  %13804 = vmatmul.mubr.msk.f32.vlgmr.msra.gmra.mrb[0].mxu0 %vm3032_vm10, %v12405_v55 }
 0xd24   : >> { %13767 = vmatpush3.msra.mxu1 %v12371_v50  ;;  %13807 = vmatpush3.msra.mxu0 %v12411_v52 }
 0xd25   : >> { %13768 = vmatprep.mubr.msk.f32.mxu1 %vm3032_vm10, %v12369_v56  ;;  %13771 = vmatprep.subr.mxu1 %v12376_v57 }
 0xd26   : >> { %13808 = vmatprep.mubr.msk.f32.mxu0 %vm3032_vm10, %v12409_v58  ;;  %13811 = vmatprep.subr.mxu0 %v12416_v59 }
 0xd2b   : >> { %13769 = vmatmul.mubr.msk.f32.vlgmr.msra.gmra.mrb[0].mxu1 %vm3032_vm10, %v12370_v54  ;;  %13809 = vmatmul.mubr.msk.f32.vlgmr.msra.gmra.mrb[0].mxu0 %vm3032_vm10, %v12410_v60 }
 0xd2c   : >> { %13772 = vmatpush3.msra.mxu1 %v12376_v57  ;;  %13812 = vmatpush3.msra.mxu0 %v12416_v59 }
 0xd2d   : >> { %13773 = vmatprep.mubr.msk.f32.mxu1 %vm3032_vm10, %v12374_v61  ;;  %13776 = vmatprep.subr.mxu1 %v12381_v62 }
 0xd2e   : >> { %13813 = vmatprep.mubr.msk.f32.mxu0 %vm3032_vm10, %v12414_v63  ;;  %13816 = vmatprep.subr.mxu0 %v12421_v1 }
 0xd33   : >> { %13774 = vmatmul.mubr.msk.f32.vlgmr.msra.gmra.mrb[0].mxu1 %vm3032_vm10, %v12375_v5  ;;  %13814 = vmatmul.mubr.msk.f32.vlgmr.msra.gmra.mrb[0].mxu0 %vm3032_vm10, %v12415_v40 }
 0xd34   : >> { %13777 = vmatpush3.msra.mxu1 %v12381_v62  ;;  %13817 = vmatpush3.msra.mxu0 %v12421_v1 }
 0xd35   : >> { %13778 = vmatprep.mubr.msk.f32.mxu1 %vm3032_vm10, %v12379_v0  ;;  %13781 = vmatprep.subr.mxu1 %v12386_v6 }
 0xd36   : >> { %13818 = vmatprep.mubr.msk.f32.mxu0 %vm3032_vm10, %v12419_v7  ;;  %13821 = vmatprep.subr.mxu0 %v12426_v3 }
 0xd3b   : >> { %13779 = vmatmul.mubr.msk.f32.vlgmr.msra.gmra.mrb[0].mxu1 %vm3032_vm10, %v12380_v9  ;;  %13819 = vmatmul.mubr.msk.f32.vlgmr.msra.gmra.mrb[0].mxu0 %vm3032_vm10, %v12420_v10 }
 0xd3c   : >> { %13782 = vmatpush3.msra.mxu1 %v12386_v6  ;;  %13822 = vmatpush3.msra.mxu0 %v12426_v3 }
 0xd3d   : >> { %13783 = vmatprep.mubr.msk.f32.mxu1 %vm3032_vm10, %v12384_v11  ;;  %13823 = vmatprep.mubr.msk.f32.mxu0 %vm3032_vm10, %v12424_v2 }
 0xd43   : >> { %13784 = vmatmul.mubr.msk.f32.vlgmr.msra.gmra.mrb[0].mxu1 %vm3032_vm10, %v12385_v4  ;;  %13824 = vmatmul.mubr.msk.f32.vlgmr.msra.gmra.mrb[0].mxu0 %vm3032_vm10, %v12425_v13 }
 0xe16   : >> { %v13785_v14 = vpop.f32.mrb[0].mxu1  ;;  %v13825_v15 = vpop.f32.mrb[0].mxu0  ;;  %10378 = sbr.rel (!%p10376_p8) target bundleno = 3331 (0xd03), region = 324 }
 0xe17   : >> { %v14281_v16 = vadd.f32 %v13785_v14, %v16214_v35  ;;  %v11069_v39 = vpop.f32.mrb[1].mxu1  ;;  %v11771_v17 = vpop.f32.mrb[1].mxu0 }
 0xe18   : >> { %v14283_v18 = vadd.f32 %v16214_v35, %v11069_v39 }
 0xe19   : >> { %v14282_v22 = vadd.f32 %v14281_v16, %v13825_v15 }
 0xe1a   : >> { %v14284_v23 = vadd.f32 %v14283_v18, %v11771_v17 }
 0xe1b   : >> { %11785 = vst.msk [vmem:[%s11783_s15 + $0x8] sm:$0xff] %vm441_vm0, %v14282_v22 }
 0xe1c   : >> { %11784 = vst.msk [vmem:[%s11783_s15] sm:$0xff] %vm441_vm0, %v14284_v23 }
 0xe1d PF: > { %s23_s25 = sadd.s32 1, %s14403_s25  }
 0xe1e   : > { %p20_p9 = scmp.ge.s32.totalorder %s23_s25, 4  }
 0xe20   :  { %22 = sbr.rel (!%p20_p9) target bundleno = 1 (0x1), region = 335 }

</bundles_post_ra>
